<compile_context>
chip_gen: v7x
topology: tpu7x:2x2x1
jax: 0.10.0
libtpu: 0.0.40
codegen_flags: <defaults>
</compile_context>

<pallas_src>
import functools
import re

import jax
import jax.numpy as jnp
from jax import lax
from jax.experimental import pallas as pl
from jax.experimental.pallas import tpu as pltpu

_BN_EPS = 1e-5              # nn.BatchNorm2d default
_LANE = 128                 # TPU lane width (output / hidden channel padding)
_MXU_DTYPE = jnp.bfloat16   # matmul operand dtype; accumulation stays f32


# ---------------------------------------------------------------------------
# helpers
# ---------------------------------------------------------------------------
def _round_up(n, m):
    return ((n + m - 1) // m) * m


def _fold_bn(bn):
    scale = bn["gamma"] / jnp.sqrt(bn["var"] + _BN_EPS)
    bias = bn["beta"] - bn["mean"] * scale
    return scale, bias


def _pad_last(a, target):
    pad = target - a.shape[-1]
    if pad == 0:
        return a
    cfg = [(0, 0)] * (a.ndim - 1) + [(0, pad)]
    return jnp.pad(a, cfg)


def _tpu_generation():
    """Best-effort TPU generation (5, 6, 7, ...); 0 if unknown."""
    try:
        kind = jax.devices()[0].device_kind
    except Exception:
        return 0
    m = re.search(r"(\d+)", kind)
    return int(m.group(1)) if m else 0


def _pick_tile_rows(*, h_out, w, w_out, chid_p, cout, cin_skip, stride,
                    tap_bytes, budget_bytes, prefer_multi, has_expand):
    """Largest H-tile (divisor of h_out) whose per-tile working set fits the budget.

    prefer_multi keeps >= 2 H-tiles (for v7x megacore when the batch axis alone
    cannot occupy both TensorCores)."""
    cout_p = _round_up(cout, _LANE)

    def tile_bytes(th):
        rows_in = (th - 1) * stride + 3
        by = 0
        if has_expand:
            # hid scratch + f32 matmul result + bf16 matmul operand
            by += rows_in * (w + 2) * chid_p * (tap_bytes + 4 + 2)
        # depthwise acc / tap temporaries + y (f32) + ym (bf16)
        by += th * w_out * chid_p * (2 * tap_bytes + 4 + 2)
        # pre-crop f32 projection result + double-buffered output block
        by += th * w_out * (2 * cout_p * 4 + 2 * cout * 4)
        # double-buffered skip block (expand case only)
        by += 2 * th * w * cin_skip * 4
        return by

    best, best_multi = 1, None
    for th in range(1, h_out + 1):
        if h_out % th or tile_bytes(th) > budget_bytes:
            continue
        best = th
        if th <= h_out // 2:
            best_multi = th
    return best_multi if (prefer_multi and best_multi is not None) else best


# ---------------------------------------------------------------------------
# fused kernel
# ---------------------------------------------------------------------------
def _make_fused_kernel(*, has_expand, use_skip, stride, tile_rows, h, w,
                       h_out, w_out, cout, chid_p, cout_p, tap_dtype):
    rows_in = (tile_rows - 1) * stride + 3   # haloed input rows per output tile
    wp2 = w + 2                              # spatially padded width
    h_need = (tile_rows - 1) * stride + 1    # rows read per tap (before H subsample)
    w_need = (w_out - 1) * stride + 1        # cols read per tap (before W subsample)
    # Is the last tap row of the last tile the bottom zero-padding row?
    bottom_is_pad = ((h_out - 1) * stride == h - 1)

    def kernel(*refs):
        if has_expand:
            if use_skip:
                (x_ref, skip_ref, ew_ref, hb_ref, dw_ref, pw_ref, pb_ref,
                 o_ref, hid_ref) = refs
            else:
                (x_ref, ew_ref, hb_ref, dw_ref, pw_ref, pb_ref,
                 o_ref, hid_ref) = refs
        else:
            (x_ref, hb_ref, dw_ref, pw_ref, pb_ref, o_ref) = refs

        t = pl.program_id(1)
        row_start = t * (tile_rows * stride)          # first padded input row of this tile

        # ---- expansion 1x1 conv (BN scale folded into weights) + bias + ReLU ----------
        if has_expand:
            pix_step = tile_rows * stride * wp2
            pix_start = t * pix_step
            if pix_step % 8 == 0:
                pix_start = pl.multiple_of(pix_start, 8)
            # x is flattened to (pixels, Cin_k): the matmul operand needs no reshape.
            xm = x_ref[0, pl.ds(pix_start, rows_in * wp2), :]
            hid = jnp.dot(xm.astype(_MXU_DTYPE), ew_ref[...],
                          preferred_element_type=jnp.float32)       # (rows_in*wp2, Chid_p)
            hid = jnp.maximum(hid + hb_ref[0], 0.0)                 # bias only; ReLU
            hid_ref[...] = hid.reshape(rows_in, wp2, chid_p).astype(tap_dtype)

            # The depthwise conv expects ZERO padding of the hidden tensor, but
            # ReLU(bias) of a zero-padded input pixel is generally non-zero.
            # Zero only the 1-pixel halo ring (O(perimeter), not O(tile)).
            zcol = jnp.zeros((rows_in, 1, chid_p), tap_dtype)
            hid_ref[:, pl.ds(0, 1), :] = zcol
            hid_ref[:, pl.ds(w + 1, 1), :] = zcol

            @pl.when(t == 0)
            def _():
                hid_ref[pl.ds(0, 1), :, :] = jnp.zeros((1, wp2, chid_p), tap_dtype)

            if bottom_is_pad:
                @pl.when(t == pl.num_programs(1) - 1)
                def _():
                    hid_ref[pl.ds(rows_in - 1, 1), :, :] = jnp.zeros(
                        (1, wp2, chid_p), tap_dtype)

            def tap(kh, kw):
                return hid_ref[pl.ds(kh, h_need), pl.ds(kw, w_need), :]
        else:
            # No expansion: the depthwise input is the (genuinely zero-padded) image.
            def tap(kh, kw):
                return x_ref[0, pl.ds(row_start + kh, h_need), pl.ds(kw, w_need), :]

        # ---- depthwise 3x3 (BN scale folded into weights) + bias + ReLU6 --------------
        acc = jnp.zeros((tile_rows, w_out, chid_p), tap_dtype)
        for kh in range(3):
            for kw in range(3):
                tp = tap(kh, kw)
                if stride != 1:
                    # subsample BEFORE the multiply-add -> stride-2 VALU work halved
                    tp = lax.slice(tp, (0, 0, 0), (h_need, w_need, chid_p),
                                   (stride, stride, 1))
                acc = acc + tp * dw_ref[kh * 3 + kw]
        y = acc.astype(jnp.float32) + hb_ref[1]
        y = jnp.clip(y, 0.0, 6.0)                                   # ReLU6

        # ---- projection 1x1 conv (BN scale folded) + bias (+ residual), crop lanes ----
        ym = y.reshape(tile_rows * w_out, chid_p).astype(_MXU_DTYPE)
        out = jnp.dot(ym, pw_ref[...], preferred_element_type=jnp.float32) + pb_ref[...]
        out = out.reshape(tile_rows, w_out, cout_p)[:, :, :cout]    # crop folded into store
        if use_skip:                                                # stride==1 and cin==cout
            if has_expand:
                out = out + skip_ref[0]
            else:
                out = out + x_ref[0, pl.ds(row_start + 1, tile_rows),
                                  pl.ds(1, w), :][:, :, :cout]
        o_ref[0] = out.astype(o_ref.dtype)

    return kernel


# ---------------------------------------------------------------------------
# forward pass (Pallas-backed)
# ---------------------------------------------------------------------------
def inverted_residual_forward(params, x_nchw, *, in_channels, out_channels,
                              dw_stride, expansion_ratio):
    use_skip = dw_stride == 1 and in_channels == out_channels
    has_expand = expansion_ratio != 1.0
    b, cin, h, w = x_nchw.shape
    assert cin == in_channels
    # int() truncation matches the PyTorch module exactly.
    hidden = int(in_channels * expansion_ratio)
    cout = out_channels

    chid_p = _round_up(hidden, _LANE)
    cout_p = _round_up(cout, _LANE)
    cin_k = _round_up(cin, 16)           # small K padding for the expansion matmul only
    wp2 = w + 2
    h_out = (h + 2 - 3) // dw_stride + 1
    w_out = (w + 2 - 3) // dw_stride + 1
    if use_skip:
        assert h_out == h and w_out == w and cin == cout  # residual-add shape assumptions

    gen = _tpu_generation()
    # bf16 depthwise taps on v6e/v7x (bf16 VPU); f32 on v5e / unknown.
    tap_dtype = jnp.bfloat16 if (gen >= 6 and has_expand) else jnp.float32

    # ---- fold BN scales into conv weights (f32, BEFORE any bf16 cast) -----------------
    if has_expand:
        es, eb = _fold_bn(params["expand_bn"])
        ew = params["expand_w"] * es[None, :]                         # (Cin, hidden) f32
        ew = _pad_last(jnp.pad(ew, ((0, cin_k - cin), (0, 0))), chid_p).astype(_MXU_DTYPE)
        eb_p = _pad_last(eb, chid_p)
    else:
        ew = None
        eb_p = jnp.zeros((chid_p,), jnp.float32)
    ds_, db = _fold_bn(params["dw_bn"])
    dw = params["dw_w"].reshape(9, hidden) * ds_[None, :]
    dw = _pad_last(dw, chid_p).astype(tap_dtype)                      # (9, Chid_p)
    hb = jnp.stack([eb_p, _pad_last(db, chid_p)])                     # (2, Chid_p) biases
    ps_, pb = _fold_bn(params["proj_bn"])
    pw = params["proj_w"] * ps_[None, :]                              # (hidden, Cout) f32
    pw = _pad_last(jnp.pad(pw, ((0, chid_p - hidden), (0, 0))), cout_p).astype(_MXU_DTYPE)
    pb_p = _pad_last(pb, cout_p).reshape(1, cout_p)

    # ---- input layout: NCHW -> NHWC, one spatial zero-pad, minimal channel padding ----
    x_nhwc = jnp.transpose(x_nchw, (0, 2, 3, 1))                      # (B, H, W, Cin)
    if has_expand:
        xp = jnp.pad(x_nhwc, ((0, 0), (1, 1), (1, 1), (0, cin_k - cin)))
        x_main = xp.reshape(b, (h + 2) * wp2, cin_k)                  # flattened pixels
        cx = cin_k
    else:
        # ratio == 1: the image IS the depthwise input; pad channels to the lane width
        # so the depthwise / projection stay lane-dense.
        x_main = jnp.pad(x_nhwc, ((0, 0), (1, 1), (1, 1), (0, chid_p - cin)))
        cx = chid_p

    # ---- generation-aware VMEM budget & tile selection ---------------------------------
    if gen >= 7:
        vmem_limit = 48 * 1024 * 1024        # v7x: 64 MiB physical per TensorCore
    elif gen >= 4:
        vmem_limit = 96 * 1024 * 1024        # v4/v5e/v6e: 128 MiB physical
    else:
        vmem_limit = 16 * 1024 * 1024
    weights = ([ew, hb, dw, pw, pb_p] if has_expand else [hb, dw, pw, pb_p])
    weight_bytes = sum(int(a.size) * a.dtype.itemsize for a in weights)
    fixed = 2 * (h + 2) * wp2 * cx * 4 + 2 * weight_bytes            # dbl-buffered residents
    budget = max(2 << 20, int(0.75 * (vmem_limit - fixed)))
    tile_rows = _pick_tile_rows(
        h_out=h_out, w=w, w_out=w_out, chid_p=chid_p, cout=cout,
        cin_skip=(cin if (use_skip and has_expand) else 0), stride=dw_stride,
        tap_bytes=jnp.dtype(tap_dtype).itemsize, budget_bytes=budget,
        prefer_multi=(gen >= 7 and b < 2), has_expand=has_expand)
    n_t = h_out // tile_rows
    rows_in = (tile_rows - 1) * dw_stride + 3

    kernel = _make_fused_kernel(
        has_expand=has_expand, use_skip=use_skip, stride=dw_stride,
        tile_rows=tile_rows, h=h, w=w, h_out=h_out, w_out=w_out,
        cout=cout, chid_p=chid_p, cout_p=cout_p, tap_dtype=tap_dtype)

    def _resident(arr):   # grid-invariant weights / biases stay VMEM-resident
        return pl.BlockSpec(arr.shape, lambda bb, tt: (0,) * arr.ndim)

    if has_expand:
        in_specs = [pl.BlockSpec((1, (h + 2) * wp2, cin_k), lambda bb, tt: (bb, 0, 0))]
        operands = [x_main]
        if use_skip:
            in_specs.append(pl.BlockSpec((1, tile_rows, w, cin),
                                         lambda bb, tt: (bb, tt, 0, 0)))
            operands.append(x_nhwc)
        in_specs += [_resident(a) for a in (ew, hb, dw, pw, pb_p)]
        operands += [ew, hb, dw, pw, pb_p]
        scratch_shapes = [pltpu.VMEM((rows_in, wp2, chid_p), tap_dtype)]
    else:
        in_specs = [pl.BlockSpec((1, h + 2, wp2, chid_p), lambda bb, tt: (bb, 0, 0, 0))]
        operands = [x_main]
        in_specs += [_resident(a) for a in (hb, dw, pw, pb_p)]
        operands += [hb, dw, pw, pb_p]
        scratch_shapes = []

    flops = (18 * b * h_out * w_out * chid_p                      # depthwise MACs
             + 2 * b * h_out * w_out * chid_p * cout_p)           # projection
    if has_expand:
        flops += 2 * b * n_t * rows_in * wp2 * cin_k * chid_p     # expansion (incl. halo)
    bytes_accessed = (sum(int(a.size) * a.dtype.itemsize for a in operands)
                      + b * h_out * w_out * cout * 4)

    out = pl.pallas_call(
        kernel,
        grid=(b, n_t),
        in_specs=in_specs,
        out_specs=pl.BlockSpec((1, tile_rows, w_out, cout),
                               lambda bb, tt: (bb, tt, 0, 0)),
        out_shape=jax.ShapeDtypeStruct((b, h_out, w_out, cout), jnp.float32),
        scratch_shapes=scratch_shapes,
        compiler_params=pltpu.CompilerParams(
            dimension_semantics=("parallel", "parallel"),
            vmem_limit_bytes=vmem_limit),
        cost_estimate=pl.CostEstimate(flops=int(flops), transcendentals=0,
                                      bytes_accessed=int(bytes_accessed)),
    )(*operands)

    return jnp.transpose(out, (0, 3, 1, 2))       # NHWC -> NCHW (crop already in-kernel)


# ---------------------------------------------------------------------------
# parameter init (deterministic, synthetic)
# ---------------------------------------------------------------------------
def _bn_init(key, c):
    k1, k2, k3, k4 = jax.random.split(key, 4)
    return {
        "gamma": 1.0 + 0.1 * jax.random.normal(k1, (c,), jnp.float32),
        "beta": 0.1 * jax.random.normal(k2, (c,), jnp.float32),
        "mean": 0.1 * jax.random.normal(k3, (c,), jnp.float32),
        "var": 1.0 + 0.1 * jnp.abs(jax.random.normal(k4, (c,), jnp.float32)),
    }


def init_params(key, in_channels, out_channels, expansion_ratio):
    hidden = int(in_channels * expansion_ratio)
    keys = jax.random.split(key, 6)
    params = {}
    if expansion_ratio != 1.0:
        params["expand_w"] = 0.2 * jax.random.normal(
            keys[0], (in_channels, hidden), jnp.float32)
        params["expand_bn"] = _bn_init(keys[1], hidden)
    params["dw_w"] = 0.2 * jax.random.normal(keys[2], (3, 3, hidden), jnp.float32)
    params["dw_bn"] = _bn_init(keys[3], hidden)
    params["proj_w"] = 0.2 * jax.random.normal(
        keys[4], (hidden, out_channels), jnp.float32)
    params["proj_bn"] = _bn_init(keys[5], out_channels)
    return params


# ---------------------------------------------------------------------------
# pure-JAX reference (for correctness check)
# ---------------------------------------------------------------------------
def reference_forward(params, x_nchw, *, in_channels, out_channels,
                      dw_stride, expansion_ratio):
    hidden = int(in_channels * expansion_ratio)
    x = jnp.transpose(x_nchw, (0, 2, 3, 1))
    y = x
    if expansion_ratio != 1.0:
        wv = params["expand_w"].reshape(1, 1, in_channels, hidden)
        y = lax.conv_general_dilated(y, wv, (1, 1), "VALID",
                                     dimension_numbers=("NHWC", "HWIO", "NHWC"))
        s, b = _fold_bn(params["expand_bn"])
        y = jnp.maximum(y * s + b, 0.0)
    wd = params["dw_w"].reshape(3, 3, 1, hidden)
    y = lax.conv_general_dilated(y, wd, (dw_stride, dw_stride),
                                 ((1, 1), (1, 1)),
                                 dimension_numbers=("NHWC", "HWIO", "NHWC"),
                                 feature_group_count=hidden)
    s, b = _fold_bn(params["dw_bn"])
    y = jnp.clip(y * s + b, 0.0, 6.0)
    wp = params["proj_w"].reshape(1, 1, hidden, out_channels)
    y = lax.conv_general_dilated(y, wp, (1, 1), "VALID",
                                 dimension_numbers=("NHWC", "HWIO", "NHWC"))
    s, b = _fold_bn(params["proj_bn"])
    y = y * s + b
    out = jnp.transpose(y, (0, 3, 1, 2))
    if dw_stride == 1 and in_channels == out_channels:
        out = out + x_nchw
    return out


# ---------------------------------------------------------------------------
if __name__ == "__main__":
    key = jax.random.PRNGKey(0)
    k_param, k_x = jax.random.split(key)

    B, C_IN, C_OUT, H, W = 2, 4, 4, 16, 16
    DW_STRIDE = 1
    EXPANSION = 2.0   # hidden dims = 8; skip connection active (stride 1, cin == cout)

    params = init_params(k_param, C_IN, C_OUT, EXPANSION)
    x = jax.random.normal(k_x, (B, C_IN, H, W), jnp.float32)

    fwd = jax.jit(functools.partial(
        inverted_residual_forward, in_channels=C_IN, out_channels=C_OUT,
        dw_stride=DW_STRIDE, expansion_ratio=EXPANSION))
    out = jax.block_until_ready(fwd(params, x))

    ref = jax.block_until_ready(reference_forward(
        params, x, in_channels=C_IN, out_channels=C_OUT,
        dw_stride=DW_STRIDE, expansion_ratio=EXPANSION))

    assert out.shape == (B, C_OUT, H, W), out.shape
    # tolerance covers bf16 MXU operands / bf16 depthwise taps vs f32 conv reference
    if not jnp.allclose(out, ref, atol=3e-2, rtol=3e-2):
        err = float(jnp.max(jnp.abs(out - ref)))
        raise AssertionError(
            f"Pallas output does not match JAX reference (max|diff|={err:.4g})")

    print("KERNEL_OK")
</pallas_src>

<mosaic_0001>
module attributes {stable_mosaic.version = 11 : i64} {
  func.func @kernel(%arg0: i32, %arg1: i32, %arg2: memref<1x324x16xf32, #tpu.memory_space<vmem>>, %arg3: memref<1x16x16x4xf32, #tpu.memory_space<vmem>>, %arg4: memref<16x128xbf16, #tpu.memory_space<vmem>>, %arg5: memref<2x128xf32, #tpu.memory_space<vmem>>, %arg6: memref<9x128xf32, #tpu.memory_space<vmem>>, %arg7: memref<128x128xbf16, #tpu.memory_space<vmem>>, %arg8: memref<1x128xf32, #tpu.memory_space<vmem>>, %arg9: memref<1x16x16x4xf32, #tpu.memory_space<vmem>>, %arg10: memref<18x18x128xf32, #tpu.memory_space<vmem>>) attributes {dimension_semantics = [#tpu.dimension_semantics<parallel>, #tpu.dimension_semantics<parallel>], iteration_bounds = array<i64: 2, 1>, scalar_prefetch = 0 : i64, scratch_operands = 1 : i64, tpu.core_type = #tpu.core_type<tc>, window_params = [{transform_indices = @transform_0, window_bounds = array<i64: 1, 324, 16>}, {transform_indices = @transform_1, window_bounds = array<i64: 1, 16, 16, 4>}, {pipeline_mode = #tpu.pipeline_mode<synchronous>, transform_indices = @transform_2, window_bounds = array<i64: 16, 128>}, {pipeline_mode = #tpu.pipeline_mode<synchronous>, transform_indices = @transform_3, window_bounds = array<i64: 2, 128>}, {pipeline_mode = #tpu.pipeline_mode<synchronous>, transform_indices = @transform_4, window_bounds = array<i64: 9, 128>}, {pipeline_mode = #tpu.pipeline_mode<synchronous>, transform_indices = @transform_5, window_bounds = array<i64: 128, 128>}, {pipeline_mode = #tpu.pipeline_mode<synchronous>, transform_indices = @transform_6, window_bounds = array<i64: 1, 128>}, {transform_indices = @transform_7, window_bounds = array<i64: 1, 16, 16, 4>}]} {
    %c288_i32 = arith.constant 288 : i32
    %0 = arith.muli %arg1, %c288_i32 : i32
    %1 = tpu.assume_multiple %0, 8 : i32
    %c0 = arith.constant 0 : index
    %2 = arith.index_cast %1 : i32 to index
    %c0_0 = arith.constant 0 : index
    %3 = vector.load %arg2[%c0, %2, %c0_0] : memref<1x324x16xf32, #tpu.memory_space<vmem>>, vector<1x324x16xf32>
    %4 = vector.shape_cast %3 : vector<1x324x16xf32> to vector<324x16xf32>
    %5 = arith.truncf %4 : vector<324x16xf32> to vector<324x16xbf16>
    %c0_1 = arith.constant 0 : index
    %c0_2 = arith.constant 0 : index
    %6 = vector.load %arg4[%c0_1, %c0_2] : memref<16x128xbf16, #tpu.memory_space<vmem>>, vector<16x128xbf16>
    %cst = arith.constant dense<0.000000e+00> : vector<324x128xf32>
    %7 = tpu.matmul %5, %6, %cst {dimension_numbers = #tpu.dot_dimension_numbers<[1], [0], [0], [1], [0, 0, 1, 1], [], []>} : vector<324x16xbf16>, vector<16x128xbf16>, vector<324x128xf32> -> vector<324x128xf32>
    %c0_3 = arith.constant 0 : index
    %c0_4 = arith.constant 0 : index
    %8 = vector.load %arg5[%c0_3, %c0_4] : memref<2x128xf32, #tpu.memory_space<vmem>>, vector<1x128xf32>
    %9 = vector.shape_cast %8 : vector<1x128xf32> to vector<128xf32>
    %10 = vector.shape_cast %9 : vector<128xf32> to vector<1x128xf32>
    %11 = vector.broadcast %10 : vector<1x128xf32> to vector<324x128xf32>
    %12 = arith.addf %7, %11 : vector<324x128xf32>
    %cst_5 = arith.constant 0.000000e+00 : f32
    %13 = vector.broadcast %cst_5 : f32 to vector<324x128xf32>
    %14 = arith.maximumf %12, %13 : vector<324x128xf32>
    %15 = vector.shape_cast %14 : vector<324x128xf32> to vector<18x18x128xf32>
    %c0_6 = arith.constant 0 : index
    %c0_7 = arith.constant 0 : index
    %c0_8 = arith.constant 0 : index
    %16 = vector.load %arg10[%c0_6, %c0_7, %c0_8] : memref<18x18x128xf32, #tpu.memory_space<vmem>>, vector<18x18x128xf32>
    tpu.vector_store %arg10[%c0_6, %c0_7, %c0_8], %15 {strides = array<i32>} : memref<18x18x128xf32, #tpu.memory_space<vmem>>, vector<18x18x128xf32>,
    %cst_9 = arith.constant 0.000000e+00 : f32
    %17 = vector.broadcast %cst_9 : f32 to vector<18x1x128xf32>
    %c0_10 = arith.constant 0 : index
    %c0_11 = arith.constant 0 : index
    %c0_12 = arith.constant 0 : index
    %18 = vector.load %arg10[%c0_10, %c0_11, %c0_12] : memref<18x18x128xf32, #tpu.memory_space<vmem>>, vector<18x1x128xf32>
    tpu.vector_store %arg10[%c0_10, %c0_11, %c0_12], %17 {strides = array<i32>} : memref<18x18x128xf32, #tpu.memory_space<vmem>>, vector<18x1x128xf32>,
    %c0_13 = arith.constant 0 : index
    %c17 = arith.constant 17 : index
    %c0_14 = arith.constant 0 : index
    %19 = vector.load %arg10[%c0_13, %c17, %c0_14] : memref<18x18x128xf32, #tpu.memory_space<vmem>>, vector<18x1x128xf32>
    tpu.vector_store %arg10[%c0_13, %c17, %c0_14], %17 {strides = array<i32>} : memref<18x18x128xf32, #tpu.memory_space<vmem>>, vector<18x1x128xf32>,
    %c0_i32 = arith.constant 0 : i32
    %20 = arith.cmpi eq, %arg1, %c0_i32 : i32
    %21 = arith.extui %20 : i1 to i32
    %c0_i32_15 = arith.constant 0 : i32
    %22 = arith.cmpi ne, %21, %c0_i32_15 : i32
    scf.if %22 {
      %cst_73 = arith.constant 0.000000e+00 : f32
      %114 = vector.broadcast %cst_73 : f32 to vector<1x18x128xf32>
      %c0_74 = arith.constant 0 : index
      %c0_75 = arith.constant 0 : index
      %c0_76 = arith.constant 0 : index
      %115 = vector.load %arg10[%c0_74, %c0_75, %c0_76] : memref<18x18x128xf32, #tpu.memory_space<vmem>>, vector<1x18x128xf32>
      tpu.vector_store %arg10[%c0_74, %c0_75, %c0_76], %114 {strides = array<i32>} : memref<18x18x128xf32, #tpu.memory_space<vmem>>, vector<1x18x128xf32>,
    } else {
    }
    %c0_i32_16 = arith.constant 0 : i32
    %23 = arith.cmpi eq, %arg1, %c0_i32_16 : i32
    %24 = arith.extui %23 : i1 to i32
    %c0_i32_17 = arith.constant 0 : i32
    %25 = arith.cmpi ne, %24, %c0_i32_17 : i32
    scf.if %25 {
      %cst_73 = arith.constant 0.000000e+00 : f32
      %114 = vector.broadcast %cst_73 : f32 to vector<1x18x128xf32>
      %c17_74 = arith.constant 17 : index
      %c0_75 = arith.constant 0 : index
      %c0_76 = arith.constant 0 : index
      %115 = vector.load %arg10[%c17_74, %c0_75, %c0_76] : memref<18x18x128xf32, #tpu.memory_space<vmem>>, vector<1x18x128xf32>
      tpu.vector_store %arg10[%c17_74, %c0_75, %c0_76], %114 {strides = array<i32>} : memref<18x18x128xf32, #tpu.memory_space<vmem>>, vector<1x18x128xf32>,
    } else {
    }
    %cst_18 = arith.constant 0.000000e+00 : f32
    %26 = vector.broadcast %cst_18 : f32 to vector<16x16x128xf32>
    %c0_19 = arith.constant 0 : index
    %c0_20 = arith.constant 0 : index
    %c0_21 = arith.constant 0 : index
    %27 = vector.load %arg10[%c0_19, %c0_20, %c0_21] : memref<18x18x128xf32, #tpu.memory_space<vmem>>, vector<16x16x128xf32>
    %c0_22 = arith.constant 0 : index
    %c0_23 = arith.constant 0 : index
    %28 = vector.load %arg6[%c0_22, %c0_23] : memref<9x128xf32, #tpu.memory_space<vmem>>, vector<1x128xf32>
    %29 = vector.shape_cast %28 : vector<1x128xf32> to vector<128xf32>
    %30 = vector.shape_cast %29 : vector<128xf32> to vector<1x1x128xf32>
    %31 = vector.broadcast %30 : vector<1x1x128xf32> to vector<16x16x128xf32>
    %32 = arith.mulf %27, %31 : vector<16x16x128xf32>
    %33 = arith.addf %26, %32 : vector<16x16x128xf32>
    %c0_24 = arith.constant 0 : index
    %c1 = arith.constant 1 : index
    %c0_25 = arith.constant 0 : index
    %34 = vector.load %arg10[%c0_24, %c1, %c0_25] : memref<18x18x128xf32, #tpu.memory_space<vmem>>, vector<16x16x128xf32>
    %c1_26 = arith.constant 1 : index
    %c0_27 = arith.constant 0 : index
    %35 = vector.load %arg6[%c1_26, %c0_27] : memref<9x128xf32, #tpu.memory_space<vmem>>, vector<1x128xf32>
    %36 = vector.shape_cast %35 : vector<1x128xf32> to vector<128xf32>
    %37 = vector.shape_cast %36 : vector<128xf32> to vector<1x1x128xf32>
    %38 = vector.broadcast %37 : vector<1x1x128xf32> to vector<16x16x128xf32>
    %39 = arith.mulf %34, %38 : vector<16x16x128xf32>
    %40 = arith.addf %33, %39 : vector<16x16x128xf32>
    %c0_28 = arith.constant 0 : index
    %c2 = arith.constant 2 : index
    %c0_29 = arith.constant 0 : index
    %41 = vector.load %arg10[%c0_28, %c2, %c0_29] : memref<18x18x128xf32, #tpu.memory_space<vmem>>, vector<16x16x128xf32>
    %c2_30 = arith.constant 2 : index
    %c0_31 = arith.constant 0 : index
    %42 = vector.load %arg6[%c2_30, %c0_31] : memref<9x128xf32, #tpu.memory_space<vmem>>, vector<1x128xf32>
    %43 = vector.shape_cast %42 : vector<1x128xf32> to vector<128xf32>
    %44 = vector.shape_cast %43 : vector<128xf32> to vector<1x1x128xf32>
    %45 = vector.broadcast %44 : vector<1x1x128xf32> to vector<16x16x128xf32>
    %46 = arith.mulf %41, %45 : vector<16x16x128xf32>
    %47 = arith.addf %40, %46 : vector<16x16x128xf32>
    %c1_32 = arith.constant 1 : index
    %c0_33 = arith.constant 0 : index
    %c0_34 = arith.constant 0 : index
    %48 = vector.load %arg10[%c1_32, %c0_33, %c0_34] : memref<18x18x128xf32, #tpu.memory_space<vmem>>, vector<16x16x128xf32>
    %c3 = arith.constant 3 : index
    %c0_35 = arith.constant 0 : index
    %49 = vector.load %arg6[%c3, %c0_35] : memref<9x128xf32, #tpu.memory_space<vmem>>, vector<1x128xf32>
    %50 = vector.shape_cast %49 : vector<1x128xf32> to vector<128xf32>
    %51 = vector.shape_cast %50 : vector<128xf32> to vector<1x1x128xf32>
    %52 = vector.broadcast %51 : vector<1x1x128xf32> to vector<16x16x128xf32>
    %53 = arith.mulf %48, %52 : vector<16x16x128xf32>
    %54 = arith.addf %47, %53 : vector<16x16x128xf32>
    %c1_36 = arith.constant 1 : index
    %c1_37 = arith.constant 1 : index
    %c0_38 = arith.constant 0 : index
    %55 = vector.load %arg10[%c1_36, %c1_37, %c0_38] : memref<18x18x128xf32, #tpu.memory_space<vmem>>, vector<16x16x128xf32>
    %c4 = arith.constant 4 : index
    %c0_39 = arith.constant 0 : index
    %56 = vector.load %arg6[%c4, %c0_39] : memref<9x128xf32, #tpu.memory_space<vmem>>, vector<1x128xf32>
    %57 = vector.shape_cast %56 : vector<1x128xf32> to vector<128xf32>
    %58 = vector.shape_cast %57 : vector<128xf32> to vector<1x1x128xf32>
    %59 = vector.broadcast %58 : vector<1x1x128xf32> to vector<16x16x128xf32>
    %60 = arith.mulf %55, %59 : vector<16x16x128xf32>
    %61 = arith.addf %54, %60 : vector<16x16x128xf32>
    %c1_40 = arith.constant 1 : index
    %c2_41 = arith.constant 2 : index
    %c0_42 = arith.constant 0 : index
    %62 = vector.load %arg10[%c1_40, %c2_41, %c0_42] : memref<18x18x128xf32, #tpu.memory_space<vmem>>, vector<16x16x128xf32>
    %c5 = arith.constant 5 : index
    %c0_43 = arith.constant 0 : index
    %63 = vector.load %arg6[%c5, %c0_43] : memref<9x128xf32, #tpu.memory_space<vmem>>, vector<1x128xf32>
    %64 = vector.shape_cast %63 : vector<1x128xf32> to vector<128xf32>
    %65 = vector.shape_cast %64 : vector<128xf32> to vector<1x1x128xf32>
    %66 = vector.broadcast %65 : vector<1x1x128xf32> to vector<16x16x128xf32>
    %67 = arith.mulf %62, %66 : vector<16x16x128xf32>
    %68 = arith.addf %61, %67 : vector<16x16x128xf32>
    %c2_44 = arith.constant 2 : index
    %c0_45 = arith.constant 0 : index
    %c0_46 = arith.constant 0 : index
    %69 = vector.load %arg10[%c2_44, %c0_45, %c0_46] : memref<18x18x128xf32, #tpu.memory_space<vmem>>, vector<16x16x128xf32>
    %c6 = arith.constant 6 : index
    %c0_47 = arith.constant 0 : index
    %70 = vector.load %arg6[%c6, %c0_47] : memref<9x128xf32, #tpu.memory_space<vmem>>, vector<1x128xf32>
    %71 = vector.shape_cast %70 : vector<1x128xf32> to vector<128xf32>
    %72 = vector.shape_cast %71 : vector<128xf32> to vector<1x1x128xf32>
    %73 = vector.broadcast %72 : vector<1x1x128xf32> to vector<16x16x128xf32>
    %74 = arith.mulf %69, %73 : vector<16x16x128xf32>
    %75 = arith.addf %68, %74 : vector<16x16x128xf32>
    %c2_48 = arith.constant 2 : index
    %c1_49 = arith.constant 1 : index
    %c0_50 = arith.constant 0 : index
    %76 = vector.load %arg10[%c2_48, %c1_49, %c0_50] : memref<18x18x128xf32, #tpu.memory_space<vmem>>, vector<16x16x128xf32>
    %c7 = arith.constant 7 : index
    %c0_51 = arith.constant 0 : index
    %77 = vector.load %arg6[%c7, %c0_51] : memref<9x128xf32, #tpu.memory_space<vmem>>, vector<1x128xf32>
    %78 = vector.shape_cast %77 : vector<1x128xf32> to vector<128xf32>
    %79 = vector.shape_cast %78 : vector<128xf32> to vector<1x1x128xf32>
    %80 = vector.broadcast %79 : vector<1x1x128xf32> to vector<16x16x128xf32>
    %81 = arith.mulf %76, %80 : vector<16x16x128xf32>
    %82 = arith.addf %75, %81 : vector<16x16x128xf32>
    %c2_52 = arith.constant 2 : index
    %c2_53 = arith.constant 2 : index
    %c0_54 = arith.constant 0 : index
    %83 = vector.load %arg10[%c2_52, %c2_53, %c0_54] : memref<18x18x128xf32, #tpu.memory_space<vmem>>, vector<16x16x128xf32>
    %c8 = arith.constant 8 : index
    %c0_55 = arith.constant 0 : index
    %84 = vector.load %arg6[%c8, %c0_55] : memref<9x128xf32, #tpu.memory_space<vmem>>, vector<1x128xf32>
    %85 = vector.shape_cast %84 : vector<1x128xf32> to vector<128xf32>
    %86 = vector.shape_cast %85 : vector<128xf32> to vector<1x1x128xf32>
    %87 = vector.broadcast %86 : vector<1x1x128xf32> to vector<16x16x128xf32>
    %88 = arith.mulf %83, %87 : vector<16x16x128xf32>
    %89 = arith.addf %82, %88 : vector<16x16x128xf32>
    %c1_56 = arith.constant 1 : index
    %c0_57 = arith.constant 0 : index
    %90 = vector.load %arg5[%c1_56, %c0_57] : memref<2x128xf32, #tpu.memory_space<vmem>>, vector<1x128xf32>
    %91 = vector.shape_cast %90 : vector<1x128xf32> to vector<128xf32>
    %92 = vector.shape_cast %91 : vector<128xf32> to vector<1x1x128xf32>
    %93 = vector.broadcast %92 : vector<1x1x128xf32> to vector<16x16x128xf32>
    %94 = arith.addf %89, %93 : vector<16x16x128xf32>
    %cst_58 = arith.constant 0.000000e+00 : f32
    %cst_59 = arith.constant 6.000000e+00 : f32
    %95 = vector.broadcast %cst_58 : f32 to vector<16x16x128xf32>
    %96 = arith.maximumf %95, %94 : vector<16x16x128xf32>
    %97 = vector.broadcast %cst_59 : f32 to vector<16x16x128xf32>
    %98 = arith.minimumf %97, %96 : vector<16x16x128xf32>
    %99 = vector.shape_cast %98 : vector<16x16x128xf32> to vector<256x128xf32>
    %100 = arith.truncf %99 : vector<256x128xf32> to vector<256x128xbf16>
    %c0_60 = arith.constant 0 : index
    %c0_61 = arith.constant 0 : index
    %101 = vector.load %arg7[%c0_60, %c0_61] : memref<128x128xbf16, #tpu.memory_space<vmem>>, vector<128x128xbf16>
    %cst_62 = arith.constant dense<0.000000e+00> : vector<256x128xf32>
    %102 = tpu.matmul %100, %101, %cst_62 {dimension_numbers = #tpu.dot_dimension_numbers<[1], [0], [0], [1], [0, 0, 1, 1], [], []>} : vector<256x128xbf16>, vector<128x128xbf16>, vector<256x128xf32> -> vector<256x128xf32>
    %c0_63 = arith.constant 0 : index
    %c0_64 = arith.constant 0 : index
    %103 = vector.load %arg8[%c0_63, %c0_64] : memref<1x128xf32, #tpu.memory_space<vmem>>, vector<1x128xf32>
    %104 = vector.broadcast %103 : vector<1x128xf32> to vector<256x128xf32>
    %105 = arith.addf %102, %104 : vector<256x128xf32>
    %106 = vector.shape_cast %105 : vector<256x128xf32> to vector<16x16x128xf32>
    %107 = vector.extract_strided_slice %106 {offsets = [0, 0, 0], sizes = [16, 16, 4], strides = [1, 1, 1]} : vector<16x16x128xf32> to vector<16x16x4xf32>
    %c0_65 = arith.constant 0 : index
    %c0_66 = arith.constant 0 : index
    %c0_67 = arith.constant 0 : index
    %c0_68 = arith.constant 0 : index
    %108 = vector.load %arg3[%c0_65, %c0_66, %c0_67, %c0_68] : memref<1x16x16x4xf32, #tpu.memory_space<vmem>>, vector<1x16x16x4xf32>
    %109 = vector.shape_cast %108 : vector<1x16x16x4xf32> to vector<16x16x4xf32>
    %110 = arith.addf %107, %109 : vector<16x16x4xf32>
    %c0_69 = arith.constant 0 : index
    %c0_70 = arith.constant 0 : index
    %c0_71 = arith.constant 0 : index
    %c0_72 = arith.constant 0 : index
    %111 = vector.load %arg9[%c0_69, %c0_70, %c0_71, %c0_72] : memref<1x16x16x4xf32, #tpu.memory_space<vmem>>, vector<1x16x16x4xf32>
    %112 = vector.shape_cast %111 : vector<1x16x16x4xf32> to vector<16x16x4xf32>
    %113 = vector.shape_cast %110 : vector<16x16x4xf32> to vector<1x16x16x4xf32>
    tpu.vector_store %arg9[%c0_69, %c0_70, %c0_71, %c0_72], %113 {strides = array<i32>} : memref<1x16x16x4xf32, #tpu.memory_space<vmem>>, vector<1x16x16x4xf32>,
    return
  }
  func.func @transform_0(%arg0: i32, %arg1: i32) -> (i32, i32, i32) {
    %c0_i32 = arith.constant 0 : i32
    %c0_i32_0 = arith.constant 0 : i32
    %c0_i32_1 = arith.constant 0 : i32
    return %arg0, %c0_i32, %c0_i32_0 : i32, i32, i32
  }
  func.func @transform_1(%arg0: i32, %arg1: i32) -> (i32, i32, i32, i32) {
    %c0_i32 = arith.constant 0 : i32
    %c0_i32_0 = arith.constant 0 : i32
    %c0_i32_1 = arith.constant 0 : i32
    return %arg0, %arg1, %c0_i32, %c0_i32_0 : i32, i32, i32, i32
  }
  func.func @transform_2(%arg0: i32, %arg1: i32) -> (i32, i32) {
    %c0_i32 = arith.constant 0 : i32
    %c0_i32_0 = arith.constant 0 : i32
    %c0_i32_1 = arith.constant 0 : i32
    return %c0_i32, %c0_i32_0 : i32, i32
  }
  func.func @transform_3(%arg0: i32, %arg1: i32) -> (i32, i32) {
    %c0_i32 = arith.constant 0 : i32
    %c0_i32_0 = arith.constant 0 : i32
    %c0_i32_1 = arith.constant 0 : i32
    return %c0_i32, %c0_i32_0 : i32, i32
  }
  func.func @transform_4(%arg0: i32, %arg1: i32) -> (i32, i32) {
    %c0_i32 = arith.constant 0 : i32
    %c0_i32_0 = arith.constant 0 : i32
    %c0_i32_1 = arith.constant 0 : i32
    return %c0_i32, %c0_i32_0 : i32, i32
  }
  func.func @transform_5(%arg0: i32, %arg1: i32) -> (i32, i32) {
    %c0_i32 = arith.constant 0 : i32
    %c0_i32_0 = arith.constant 0 : i32
    %c0_i32_1 = arith.constant 0 : i32
    return %c0_i32, %c0_i32_0 : i32, i32
  }
  func.func @transform_6(%arg0: i32, %arg1: i32) -> (i32, i32) {
    %c0_i32 = arith.constant 0 : i32
    %c0_i32_0 = arith.constant 0 : i32
    %c0_i32_1 = arith.constant 0 : i32
    return %c0_i32, %c0_i32_0 : i32, i32
  }
  func.func @transform_7(%arg0: i32, %arg1: i32) -> (i32, i32, i32, i32) {
    %c0_i32 = arith.constant 0 : i32
    %c0_i32_0 = arith.constant 0 : i32
    %c0_i32_1 = arith.constant 0 : i32
    return %arg0, %arg1, %c0_i32, %c0_i32_0 : i32, i32, i32, i32
  }
}

</mosaic_0001>

<bundles_post_ra>
// kernel: inverted_residual_forward.1
= control target key start
LH: loop header
LB: loop body
LE: loop exit
PB: predicated region body
PF: predicated region fallthrough
CT: control target
= control target key end

     0   :  { %s4198_s24 = smov 0   ;;  %s4200_s25 = smov 0   ;;  %s5755_s0 = inlined_call_operand.vmem [shape: f32[2,324,16], index: 0, kind: input, shape index: {}]   ;;  %s5756_s1 = inlined_call_operand.vmem [shape: f32[2,16,16,4], index: 1, kind: input, shape index: {}]   ;;  %s5757_s2 = inlined_call_operand.vmem [shape: bf16[16,128], index: 2, kind: input, shape index: {}]   ;;  %s5758_s3 = inlined_call_operand.vmem [shape: f32[2,128], index: 3, kind: input, shape index: {}]   ;;  %s5759_s4 = inlined_call_operand.vmem [shape: f32[9,128], index: 4, kind: input, shape index: {}]   ;;  %s5760_s5 = inlined_call_operand.vmem [shape: bf16[128,128], index: 5, kind: input, shape index: {}]   ;;  %s5761_s6 = inlined_call_operand.vmem [shape: f32[1,128], index: 6, kind: input, shape index: {}]   ;;  %s5762_s7 = inlined_call_operand.vmem [shape: f32[2,16,16,4], index: 7, kind: output, shape index: {}]  }
   0x1   :  { %s4202_s26 = smov 0  }
   0x2 LB: > { %s29_s27 = sadd.s32 1, %s4149_s25  ;;  %p3819_p0 = scmp.ge.s32.totalorder %s4153_s26, 1  ;;  %s4153_s26 = sphi %s4202_s26, %s17_s26   ;;  %s4149_s25 = sphi %s4200_s25, %s5769_s25   ;;  %s4145_s24 = sphi %s4198_s24, %s5768_s24  }
   0x3   : > { %p31_p1 = scmp.ge.s32.totalorder %s29_s27, 2  ;;  %p269_p2 = scmp.lt.s32.totalorder %s4153_s26, 3 }
   0x5   : > { %s5771_s27 = smov (%p31_p1, %s29_s27), 0  ;;  %p270_p3 = pnand %p3819_p0, %p269_p2 }
   0x7   : > { %273 = sbr.rel (%p270_p3) target bundleno = 752 (0x2f0), region = 48 }
   0xe   : > { %v4099_v0 = vld [vmem:[%s5757_s2] sm:$0xff]   ;;  %v4155_v1 = vmov 0.0   ;;  %p316_p4 = scmp.lt.s32.totalorder %s4145_s24, 1  ;;  %vm4156_vm0 = vmmov 0   ;;  %vm421_vm1 = vcmask 130048   ;;  %vm3672_vm2 = vcmask 31744  }
   0xf   : > { %3935 = vmatprep.subr.bf16.mxu0 %v4155_v1  ;;  %4069 = vmatprep.subr.bf16.mxu1 %v4155_v1  ;;  %2342 = vst [vmem:[#allocation2 + $0x8] sm:$0xff] %v4155_v1  ;;  %2346 = vst [vmem:[#allocation2 + $0x1a0] sm:$0xff] %v4155_v1 }
  0x10   : > { %3936 = vmatpush3.bf16.msra.mxu0 %v4099_v0  ;;  %3937 = vmatprep.mubr.msk.bf16.mxu0 %vm4156_vm0, %v4155_v1  ;;  %s5773_s24 = smov (!%p316_p4, %s4145_s24), 1 }
  0x11   : > { %4070 = vmatpush3.bf16.msra.mxu1 %v4099_v0  ;;  %3997 = vmatprep.mubr.msk.bf16.mxu1 %vm4156_vm0, %v4155_v1  ;;  %s4071_s30 = smul.u32 328, %s5773_s24  ;;  %v4100_v0 = vld [vmem:[%s5760_s5] sm:$0xff]   ;;  %s3887_s15 = sshll.u32 %s5773_s24, 8 }
  0x12   : > { %4021 = vmatprep.subr.bf16.mxu1 %v4100_v0  ;;  %s5606_s18 = scalar_lea.vmem %s5756_s1, %s3887_s15  ;;  %s5619_s22 = scalar_lea.vmem %s5762_s7, %s3887_s15 }
  0x13   : > { %s4233_s10 = scalar_lea.vmem %s5755_s0, %s4071_s30 }
  0x14   : > { %v346_v2 = vld [vmem:[%s4233_s10] sm:$0xff]  ;;  %v347_v3 = vld [vmem:[%s4233_s10 + $0x8] sm:$0xff]  ;;  %v348_v5 = vld [vmem:[%s4233_s10 + $0x10] sm:$0xff] }
  0x15   : > { %v387_v4 = vpack.c.bf16 %v347_v3, %v346_v2  ;;  %v349_v6 = vld [vmem:[%s4233_s10 + $0x18] sm:$0xff]  ;;  %v376_v7 = vld [vmem:[%s4233_s10 + $0xf0] sm:$0xff]  ;;  %v378_v11 = vld [vmem:[%s4233_s10 + $0x100] sm:$0xff] }
  0x16   : > { %v388_v8 = vpack.c.bf16 %v349_v6, %v348_v5  ;;  %v377_v9 = vld [vmem:[%s4233_s10 + $0xf8] sm:$0xff]  ;;  %v379_v12 = vld [vmem:[%s4233_s10 + $0x108] sm:$0xff]  ;;  %v350_v13 = vld [vmem:[%s4233_s10 + $0x20] sm:$0xff] }
  0x17   : > { %3938 = vmatmul.mubr.msk.bf16.vlgmr.msra.gmra.mrb[0].mxu0 %vm421_vm1, %v387_v4  ;;  %v402_v10 = vpack.c.bf16 %v377_v9, %v376_v7  ;;  %v351_v14 = vld [vmem:[%s4233_s10 + $0x28] sm:$0xff]  ;;  %v403_v15 = vpack.c.bf16 %v379_v12, %v378_v11  ;;  %v380_v17 = vld [vmem:[%s4233_s10 + $0x110] sm:$0xff]  ;;  %v381_v18 = vld [vmem:[%s4233_s10 + $0x118] sm:$0xff]  ;;  %v4157_v9 = vmov 1983009808   ;;  %v771_v11 = vlaneseq }
  0x18   : > { %3941 = vmatprep.mubr.msk.bf16.mxu0 %vm4156_vm0, %v4155_v1  ;;  %v389_v16 = vpack.c.bf16 %v351_v14, %v350_v13  ;;  %v352_v19 = vld [vmem:[%s4233_s10 + $0x30] sm:$0xff]  ;;  %v353_v20 = vld [vmem:[%s4233_s10 + $0x38] sm:$0xff]  ;;  %v404_v21 = vpack.c.bf16 %v381_v18, %v380_v17  ;;  %v382_v23 = vld [vmem:[%s4233_s10 + $0x120] sm:$0xff] }
  0x19   : > { %3998 = vmatmul.mubr.msk.bf16.vlgmr.msra.gmra.mrb[0].mxu1 %vm421_vm1, %v402_v10  ;;  %v390_v22 = vpack.c.bf16 %v353_v20, %v352_v19  ;;  %v383_v24 = vld [vmem:[%s4233_s10 + $0x128] sm:$0xff]  ;;  %v354_v25 = vld [vmem:[%s4233_s10 + $0x40] sm:$0xff]  ;;  %v384_v29 = vld [vmem:[%s4233_s10 + $0x130] sm:$0xff]  ;;  %v769_v10 = vunpack.c.l.s4 %v4157_v9  ;;  %v772_v13 = vshrl.u32 %v771_v11, 7 }
  0x1a   : > { %4001 = vmatprep.mubr.msk.bf16.mxu1 %vm4156_vm0, %v4155_v1  ;;  %v355_v26 = vld [vmem:[%s4233_s10 + $0x48] sm:$0xff]  ;;  %v405_v27 = vpack.c.bf16 %v383_v24, %v382_v23  ;;  %v385_v30 = vld [vmem:[%s4233_s10 + $0x138] sm:$0xff]  ;;  %v356_v31 = vld [vmem:[%s4233_s10 + $0x50] sm:$0xff]  ;;  %4022 = vmatpush3.bf16.msra.mxu1 %v4100_v0 }
  0x1b   : > { %v391_v28 = vpack.c.bf16 %v355_v26, %v354_v25  ;;  %v357_v32 = vld [vmem:[%s4233_s10 + $0x58] sm:$0xff]  ;;  %v406_v33 = vpack.c.bf16 %v385_v30, %v384_v29  ;;  %v386_v35 = vld [vmem:[%s4233_s10 + $0x140] sm:$0xf]  ;;  %v359_v37 = vld [vmem:[%s4233_s10 + $0x68] sm:$0xff]  ;;  %v770_v12 = vunpack.c.0.s8 %v769_v10 }
  0x1c   : > { %v392_v34 = vpack.c.bf16 %v357_v32, %v356_v31  ;;  %v358_v36 = vld [vmem:[%s4233_s10 + $0x60] sm:$0xff]  ;;  %v407_v38 = vpack.c.bf16 %v386_v35, %v386_v35  ;;  %v360_v40 = vld [vmem:[%s4233_s10 + $0x70] sm:$0xff]  ;;  %v361_v41 = vld [vmem:[%s4233_s10 + $0x78] sm:$0xff] }
  0x1d   : > { %v393_v39 = vpack.c.bf16 %v359_v37, %v358_v36  ;;  %v394_v42 = vpack.c.bf16 %v361_v41, %v360_v40  ;;  %v362_v43 = vld [vmem:[%s4233_s10 + $0x80] sm:$0xff]  ;;  %v363_v44 = vld [vmem:[%s4233_s10 + $0x88] sm:$0xff]  ;;  %v364_v46 = vld [vmem:[%s4233_s10 + $0x90] sm:$0xff]  ;;  %v4365_v17 = vsub.s32 %v770_v12, %v772_v13 }
  0x1e   : > { %v395_v45 = vpack.c.bf16 %v363_v44, %v362_v43  ;;  %v365_v47 = vld [vmem:[%s4233_s10 + $0x98] sm:$0xff]  ;;  %v366_v49 = vld [vmem:[%s4233_s10 + $0xa0] sm:$0xff]  ;;  %v367_v50 = vld [vmem:[%s4233_s10 + $0xa8] sm:$0xff] }
  0x1f   : > { %3942 = vmatmul.mubr.msk.bf16.gmra.mrb[4].mxu0 %vm421_vm1, %v388_v8  ;;  %v396_v48 = vpack.c.bf16 %v365_v47, %v364_v46  ;;  %v397_v51 = vpack.c.bf16 %v367_v50, %v366_v49  ;;  %v368_v52 = vld [vmem:[%s4233_s10 + $0xb0] sm:$0xff]  ;;  %v369_v53 = vld [vmem:[%s4233_s10 + $0xb8] sm:$0xff]  ;;  %v370_v55 = vld [vmem:[%s4233_s10 + $0xc0] sm:$0xff] }
  0x20   : > { %3945 = vmatprep.mubr.msk.bf16.mxu0 %vm4156_vm0, %v4155_v1  ;;  %v398_v54 = vpack.c.bf16 %v369_v53, %v368_v52  ;;  %v371_v56 = vld [vmem:[%s4233_s10 + $0xc8] sm:$0xff]  ;;  %v372_v58 = vld [vmem:[%s4233_s10 + $0xd0] sm:$0xff]  ;;  %v373_v59 = vld [vmem:[%s4233_s10 + $0xd8] sm:$0xff] }
  0x21   : > { %4002 = vmatmul.mubr.msk.bf16.gmra.mrb[4].mxu1 %vm421_vm1, %v403_v15  ;;  %v399_v57 = vpack.c.bf16 %v371_v56, %v370_v55  ;;  %v400_v60 = vpack.c.bf16 %v373_v59, %v372_v58  ;;  %v374_v61 = vld [vmem:[%s4233_s10 + $0xe0] sm:$0xff]  ;;  %v375_v62 = vld [vmem:[%s4233_s10 + $0xe8] sm:$0xff]  ;;  %v4102_v3 = vld [vmem:[%s5760_s5 + $0x10] sm:$0xff]  }
  0x22   : > { %4005 = vmatprep.mubr.msk.bf16.mxu1 %vm4156_vm0, %v4155_v1  ;;  %v401_v63 = vpack.c.bf16 %v375_v62, %v374_v61  ;;  %v4101_v2 = vld [vmem:[%s5760_s5 + $0x8] sm:$0xff]   ;;  %v4103_v4 = vld [vmem:[%s5760_s5 + $0x18] sm:$0xff]   ;;  %v4104_v5 = vld [vmem:[%s5760_s5 + $0x20] sm:$0xff]  }
  0x23   : > { %4023 = vmatprep.subr.bf16.mxu1 %v4101_v2  ;;  %v4105_v6 = vld [vmem:[%s5760_s5 + $0x28] sm:$0xff]   ;;  %v4106_v7 = vld [vmem:[%s5760_s5 + $0x30] sm:$0xff]   ;;  %v4107_v8 = vld [vmem:[%s5760_s5 + $0x38] sm:$0xff]  }
  0x24   : > { %4024 = vmatpush3.bf16.msra.mxu1 %v4101_v2  ;;  %v4362_v14 = vld [vmem:[%s5758_s3] ss:$0 sm:$0xff] }
  0x25   : > { %4025 = vmatprep.subr.bf16.mxu1 %v4102_v3 }
  0x27   : > { %3946 = vmatmul.mubr.msk.bf16.gmra.mrb[8].mxu0 %vm421_vm1, %v389_v16 }
  0x28   : > { %3949 = vmatprep.mubr.msk.bf16.mxu0 %vm4156_vm0, %v4155_v1  ;;  %4026 = vmatpush3.bf16.msra.mxu1 %v4102_v3 }
  0x29   : > { %4006 = vmatmul.mubr.msk.bf16.gmra.mrb[8].mxu1 %vm421_vm1, %v404_v21  ;;  %4027 = vmatprep.subr.bf16.mxu1 %v4103_v4 }
  0x2a   : > { %4009 = vmatprep.mubr.msk.bf16.mxu1 %vm4156_vm0, %v4155_v1 }
  0x2c   : > { %4028 = vmatpush3.bf16.msra.mxu1 %v4103_v4 }
  0x2d   : > { %4029 = vmatprep.subr.bf16.mxu1 %v4104_v5 }
  0x2f   : > { %3950 = vmatmul.mubr.msk.bf16.gmra.mrb[12].mxu0 %vm421_vm1, %v390_v22 }
  0x30   : > { %3953 = vmatprep.mubr.msk.bf16.mxu0 %vm4156_vm0, %v4155_v1  ;;  %4030 = vmatpush3.bf16.msra.mxu1 %v4104_v5 }
  0x31   : > { %4010 = vmatmul.mubr.msk.bf16.gmra.mrb[12].mxu1 %vm421_vm1, %v405_v27  ;;  %4031 = vmatprep.subr.bf16.mxu1 %v4105_v6 }
  0x32   : > { %4013 = vmatprep.mubr.msk.bf16.mxu1 %vm4156_vm0, %v4155_v1 }
  0x34   : > { %4032 = vmatpush3.bf16.msra.mxu1 %v4105_v6 }
  0x35   : > { %4033 = vmatprep.subr.bf16.mxu1 %v4106_v7 }
  0x37   : > { %3954 = vmatmul.mubr.msk.bf16.gmra.mrb[16].mxu0 %vm421_vm1, %v391_v28  ;;  %v4372_v28 = vld [vmem:[%s5759_s4] ss:$0 sm:$0xff] }
  0x38   : > { %3957 = vmatprep.mubr.msk.bf16.mxu0 %vm4156_vm0, %v4155_v1  ;;  %4034 = vmatpush3.bf16.msra.mxu1 %v4106_v7  ;;  %v4379_v44 = vmul.f32 0.0, %v4372_v28 }
  0x39   : > { %4014 = vmatmul.mubr.msk.bf16.gmra.mrb[16].mxu1 %vm421_vm1, %v406_v33  ;;  %4035 = vmatprep.subr.bf16.mxu1 %v4107_v8 }
  0x3a   : > { %4017 = vmatprep.mubr.msk.bf16.mxu1 %vm4156_vm0, %v4155_v1 }
  0x3c   : > { %4036 = vmatpush3.bf16.msra.mxu1 %v4107_v8 }
  0x3f   : > { %3958 = vmatmul.mubr.msk.bf16.gmra.mrb[20].mxu0 %vm421_vm1, %v392_v34 }
  0x40   : > { %3961 = vmatprep.mubr.msk.bf16.mxu0 %vm4156_vm0, %v4155_v1 }
  0x41   : > { %4018 = vmatmul.mubr.msk.bf16.gmra.mrb[20].mxu1 %vm421_vm1, %v407_v38 }
  0x47   : > { %3962 = vmatmul.mubr.msk.bf16.gmra.mrb[24].mxu0 %vm421_vm1, %v393_v39 }
  0x48   : > { %3965 = vmatprep.mubr.msk.bf16.mxu0 %vm4156_vm0, %v4155_v1 }
  0x4f   : > { %3966 = vmatmul.mubr.msk.bf16.gmra.mrb[28].mxu0 %vm421_vm1, %v394_v42 }
  0x50   : > { %3969 = vmatprep.mubr.msk.bf16.mxu0 %vm4156_vm0, %v4155_v1 }
  0x57   : > { %3970 = vmatmul.mubr.msk.bf16.gmra.mrb[32].mxu0 %vm421_vm1, %v395_v45 }
  0x58   : > { %3973 = vmatprep.mubr.msk.bf16.mxu0 %vm4156_vm0, %v4155_v1 }
  0x5f   : > { %3974 = vmatmul.mubr.msk.bf16.gmra.mrb[36].mxu0 %vm421_vm1, %v396_v48 }
  0x60   : > { %3977 = vmatprep.mubr.msk.bf16.mxu0 %vm4156_vm0, %v4155_v1 }
  0x67   : > { %3978 = vmatmul.mubr.msk.bf16.gmra.mrb[40].mxu0 %vm421_vm1, %v397_v51 }
  0x68   : > { %3981 = vmatprep.mubr.msk.bf16.mxu0 %vm4156_vm0, %v4155_v1 }
  0x6f   : > { %3982 = vmatmul.mubr.msk.bf16.gmra.mrb[44].mxu0 %vm421_vm1, %v398_v54 }
  0x70   : > { %3985 = vmatprep.mubr.msk.bf16.mxu0 %vm4156_vm0, %v4155_v1 }
  0x77   : > { %3986 = vmatmul.mubr.msk.bf16.gmra.mrb[48].mxu0 %vm421_vm1, %v399_v57 }
  0x78   : > { %3989 = vmatprep.mubr.msk.bf16.mxu0 %vm4156_vm0, %v4155_v1 }
  0x7f   : > { %3990 = vmatmul.mubr.msk.bf16.gmra.mrb[52].mxu0 %vm421_vm1, %v400_v60 }
  0x80   : > { %3993 = vmatprep.mubr.msk.bf16.mxu0 %vm4156_vm0, %v4155_v1 }
  0x87   : > { %3994 = vmatmul.mubr.msk.bf16.gmra.mrb[56].mxu0 %vm421_vm1, %v401_v63 }
  0xea   : > { %v519_v15 = vpop.f32.mrb[0].mxu0 }
  0xeb   : > { %v520_v16 = vadd.f32 %v4362_v14, %v519_v15  ;;  %v3939_v18 = vpop.f32.mrb[1].mxu0 }
  0xec   : > { %v522_v19 = vpop.f32.mrb[2].mxu0  ;;  %v639_v26 = vpop.f32.mrb[0].mxu1 }
  0xed   : > { %v685_v20 = vmax.f32 %v520_v16, 0.0  ;;  %v3940_v21 = vpop.f32.mrb[3].mxu0  ;;  %v640_v29 = vadd.f32 %v4362_v14, %v639_v26  ;;  %v3999_v30 = vpop.f32.mrb[1].mxu1 }
  0xee   : > { %v642_v35 = vpop.f32.mrb[2].mxu1 }
  0xef   : > { %v767_v22 = vcombine.high %v685_v20, %v685_v20  ;;  %v774_v23 = vrot.slane %v685_v20, %v4365_v17  ;;  %v715_v37 = vmax.f32 %v640_v29, 0.0  ;;  %v643_v38 = vadd.f32 %v4362_v14, %v642_v35  ;;  %v4000_v39 = vpop.f32.mrb[3].mxu1  ;;  %v4414_v35 = vld [vmem:[%s5759_s4 + $0x1] ss:$0 sm:$0xff] }
  0xf1   : > { %v781_v24 = vrot.slane %v767_v22, %v4365_v17  ;;  %v782_v25 = vcombine.high %v774_v23, %v774_v23  ;;  %v1277_v46 = vcombine.high %v715_v37, %v715_v37  ;;  %v4383_v47 = vrot.slane %v715_v37, %v4365_v17 }
  0xf2   : > { %v527_v27 = vpop.f32.mrb[4].mxu0  ;;  %v716_v48 = vmax.f32 %v643_v38, 0.0 }
  0xf3   : > { %v783_v31 = vcombine.high %v781_v24, %v781_v24  ;;  %v1455_v32 = vcombine.low %v774_v23, %v782_v25  ;;  %v528_v33 = vadd.f32 %v4362_v14, %v527_v27  ;;  %v3943_v34 = vpop.f32.mrb[5].mxu0  ;;  %v1291_v53 = vrot.slane %v1277_v46, %v4365_v17 }
  0xf4   : > { %v530_v36 = vpop.f32.mrb[6].mxu0  ;;  %v1292_v54 = vcombine.high %v4383_v47, %v4383_v47  ;;  %v1294_v55 = vcombine.high %v716_v48, %v716_v48  ;;  %v1301_v56 = vrot.slane %v716_v48, %v4365_v17  ;;  %v647_v61 = vpop.f32.mrb[4].mxu1 }
  0xf5   : > { %v1456_v40 = vcombine.low %v781_v24, %v783_v31  ;;  %v687_v41 = vmax.f32 %v528_v33, 0.0  ;;  %v531_v42 = vadd.f32 %v4362_v14, %v530_v36  ;;  %v3944_v43 = vpop.f32.mrb[7].mxu0  ;;  %v1463_v45 = vrot.slane %v1455_v32, %v4365_v17  ;;  %v4003_v4 = vpop.f32.mrb[5].mxu1 }
  0xf6   : > { %v2005_v0 = vcombine.low %v1292_v54, %v1291_v53  ;;  %v1293_v2 = vcombine.high %v1291_v53, %v1291_v53  ;;  %v1308_v3 = vrot.slane %v1294_v55, %v4365_v17  ;;  %v4398_v10 = vpop.f32.mrb[6].mxu1  ;;  %v1309_v15 = vcombine.high %v1301_v56, %v1301_v56 }
  0xf7   : > { %v1470_v49 = vrot.slane %v1456_v40, %v4365_v17  ;;  %v801_v50 = vcombine.high %v687_v41, %v687_v41  ;;  %v808_v51 = vrot.slane %v687_v41, %v4365_v17  ;;  %v688_v52 = vmax.f32 %v531_v42, 0.0  ;;  %v4004_v18 = vpop.f32.mrb[7].mxu1  ;;  %v4423_v42 = vld [vmem:[%s5759_s4 + $0x2] ss:$0 sm:$0xff] }
  0xf8   : > { %v2013_v13 = vrot.slane %v2005_v0, %v4365_v17  ;;  %v1310_v16 = vcombine.high %v1308_v3, %v1308_v3  ;;  %v2006_v26 = vcombine.low %v1293_v2, %v1301_v56  ;;  %3861 = vst.sshfl [vmem:[#allocation2 + $0x148] sm:$0x3 pattern:$0x76325410] %v1309_v15  ;;  %v648_v32 = vadd.f32 %v4362_v14, %v647_v61 }
  0xf9   : > { %v1471_v57 = vcombine.low %v1463_v45, %v1470_v49  ;;  %v815_v58 = vrot.slane %v801_v50, %v4365_v17  ;;  %v816_v59 = vcombine.high %v808_v51, %v808_v51  ;;  %3848 = vst.sshfl [vmem:[#allocation2 + $0x10] sm:$0x3 pattern:$0x76325410] %v808_v51  ;;  %v818_v60 = vcombine.high %v688_v52, %v688_v52 }
  0xfa   : > { %2319 = vst [vmem:[#allocation2 + $0x11] sm:$0x1] %v4155_v1  ;;  %v825_v62 = vrot.slane %v688_v52, %v4365_v17  ;;  %v535_v63 = vpop.f32.mrb[8].mxu0  ;;  %v4404_v27 = vcombine.low %v1308_v3, %v1310_v16  ;;  %2332 = vst [vmem:[#allocation2 + $0x149] sm:$0x1] %v4155_v1  ;;  %v2020_v36 = vrot.slane %v2006_v26, %v4365_v17  ;;  %v4428_v52 = vmax.f32 %v648_v32, 0.0 }
  0xfb   : > { %2247 = vst [vmem:[#allocation2] sm:$0xff] %v1471_v57  ;;  %v1496_v5 = vcombine.low %v816_v59, %v815_v58  ;;  %2343 = vst [vmem:[#allocation2 + $0x10] sm:$0x3] %v4155_v1  ;;  %v817_v6 = vcombine.high %v815_v58, %v815_v58  ;;  %v832_v7 = vrot.slane %v818_v60, %v4365_v17  ;;  %v3947_v9 = vpop.f32.mrb[9].mxu0 }
  0xfc   : > { %v536_v8 = vadd.f32 %v4362_v14, %v535_v63  ;;  %v833_v11 = vcombine.high %v825_v62, %v825_v62  ;;  %v538_v12 = vpop.f32.mrb[10].mxu0  ;;  %2341 = vst [vmem:[#allocation2] sm:$0xff] %v4155_v1  ;;  %v4425_v43 = vpop.f32.mrb[8].mxu1  ;;  %v2021_v51 = vcombine.low %v2013_v13, %v2020_v36 }
  0xfd   : > { %v1504_v19 = vrot.slane %v1496_v5, %v4365_v17  ;;  %v1497_v20 = vcombine.low %v817_v6, %v825_v62  ;;  %v834_v22 = vcombine.high %v832_v7, %v832_v7  ;;  %v3948_v23 = vpop.f32.mrb[11].mxu0  ;;  %v539_v25 = vadd.f32 %v4362_v14, %v538_v12  ;;  %v4007_v53 = vpop.f32.mrb[9].mxu1 }
  0xfe   : > { %v689_v21 = vmax.f32 %v536_v8, 0.0  ;;  %v1513_v24 = vcombine.low %v833_v11, %v832_v7  ;;  %2287 = vst [vmem:[#allocation2 + $0x140] sm:$0xff] %v2021_v51  ;;  %v4442_v8 = vpop.f32.mrb[10].mxu1 }
  0xff   : > { %v1511_v29 = vrot.slane %v1497_v20, %v4365_v17  ;;  %v690_v34 = vmax.f32 %v539_v25, 0.0  ;;  %v4008_v15 = vpop.f32.mrb[11].mxu1 }
 0x100   : > { %v835_v30 = vcombine.high %v689_v21, %v689_v21  ;;  %v842_v31 = vrot.slane %v689_v21, %v4365_v17  ;;  %v1521_v33 = vrot.slane %v1513_v24, %v4365_v17 }
 0x101   : > { %v1512_v38 = vcombine.low %v1504_v19, %v1511_v29  ;;  %v852_v45 = vcombine.high %v690_v34, %v690_v34  ;;  %v859_v46 = vrot.slane %v690_v34, %v4365_v17 }
 0x102   : > { %v849_v39 = vrot.slane %v835_v30, %v4365_v17  ;;  %v850_v40 = vcombine.high %v842_v31, %v842_v31  ;;  %v1514_v41 = vcombine.low %v834_v22, %v842_v31  ;;  %v543_v48 = vpop.f32.mrb[12].mxu0  ;;  %v2450_v49 = vld [vmem:[#allocation2 + $0x9] sm:$0xff]  ;;  %v4457_v31 = vld [vmem:[%s5759_s4 + $0x3] ss:$0 sm:$0xff] }
 0x103   : > { %v2551_v50 = vld [vmem:[#allocation2 + $0xa] sm:$0xff]  ;;  %2250 = vst [vmem:[#allocation2 + $0x18] sm:$0xff] %v1512_v38  ;;  %v544_v56 = vadd.f32 %v4362_v14, %v543_v48  ;;  %v3951_v57 = vpop.f32.mrb[13].mxu0  ;;  %v2487_v58 = vmul.f32 %v4414_v35, %v2450_v49  ;;  %v866_v59 = vrot.slane %v852_v45, %v4365_v17  ;;  %v867_v60 = vcombine.high %v859_v46, %v859_v46  ;;  %v2449_v62 = vld [vmem:[#allocation2 + $0x1] sm:$0xff] }
 0x104   : > { %v851_v54 = vcombine.high %v849_v39, %v849_v39  ;;  %v1528_v55 = vrot.slane %v1514_v41, %v4365_v17  ;;  %3849 = vst.sshfl [vmem:[#allocation2 + $0x28] sm:$0x3 pattern:$0x76325410] %v850_v40  ;;  %2302 = vst [vmem:[#allocation2 + $0x18] sm:$0x1] %v4155_v1  ;;  %v2588_v63 = vmul.f32 %v4423_v42, %v2551_v50 }
 0x105   : > { %2320 = vst [vmem:[#allocation2 + $0x29] sm:$0x1] %v4155_v1  ;;  %v546_v61 = vpop.f32.mrb[14].mxu0  ;;  %v691_v4 = vmax.f32 %v544_v56, 0.0  ;;  %v2550_v7 = vld [vmem:[#allocation2 + $0x2] sm:$0xff]  ;;  %v868_v9 = vcombine.high %v866_v59, %v866_v59  ;;  %v1538_v11 = vcombine.low %v859_v46, %v867_v60  ;;  %v2486_v12 = vmul.f32 %v4414_v35, %v2449_v62  ;;  %v4459_v32 = vpop.f32.mrb[12].mxu1 }
 0x106   : > { %v4439_v2 = vcombine.low %v1521_v33, %v1528_v55  ;;  %v1537_v3 = vcombine.low %v849_v39, %v851_v54  ;;  %v547_v5 = vadd.f32 %v4362_v14, %v546_v61  ;;  %v3952_v6 = vpop.f32.mrb[15].mxu0  ;;  %v2519_v13 = vadd.f32 %v2487_v58, %v4379_v44  ;;  %v4011_v39 = vpop.f32.mrb[13].mxu1  ;;  %v4473_v56 = vld [vmem:[%s5759_s4 + $0x4] ss:$0 sm:$0xff] }
 0x107   : > { %v869_v18 = vcombine.high %v691_v4, %v691_v4  ;;  %v876_v19 = vrot.slane %v691_v4, %v4365_v17  ;;  %v1552_v21 = vrot.slane %v1538_v11, %v4365_v17  ;;  %v1554_v22 = vcombine.low %v866_v59, %v868_v9  ;;  %v4463_v50 = vpop.f32.mrb[14].mxu1 }
 0x108   : > { %v1545_v16 = vrot.slane %v1537_v3, %v4365_v17  ;;  %2251 = vst [vmem:[#allocation2 + $0x20] sm:$0xff] %v4439_v2  ;;  %v692_v20 = vmax.f32 %v547_v5, 0.0  ;;  %v2518_v23 = vadd.f32 %v2486_v12, %v4379_v44  ;;  %v2587_v24 = vmul.f32 %v4423_v42, %v2550_v7  ;;  %v4012_v58 = vpop.f32.mrb[15].mxu1  ;;  %v4483_v3 = vld [vmem:[%s5759_s4 + $0x5] ss:$0 sm:$0xff] }
 0x109   : > { %v883_v25 = vrot.slane %v869_v18, %v4365_v17  ;;  %v884_v26 = vcombine.high %v876_v19, %v876_v19  ;;  %v1562_v34 = vrot.slane %v1554_v22, %v4365_v17  ;;  %v2620_v38 = vadd.f32 %v2588_v63, %v2519_v13 }
 0x10a   : > { %v886_v29 = vcombine.high %v692_v20, %v692_v20  ;;  %v893_v30 = vrot.slane %v692_v20, %v4365_v17  ;;  %v1553_v33 = vcombine.low %v1545_v16, %v1552_v21  ;;  %v551_v36 = vpop.f32.mrb[16].mxu0  ;;  %v2619_v44 = vadd.f32 %v2587_v24, %v2518_v23 }
 0x10b   : > { %v1555_v40 = vcombine.low %v876_v19, %v884_v26  ;;  %3850 = vst.sshfl [vmem:[#allocation2 + $0x40] sm:$0x3 pattern:$0x76325410] %v883_v25  ;;  %v885_v41 = vcombine.high %v883_v25, %v883_v25  ;;  %v3955_v48 = vpop.f32.mrb[17].mxu0  ;;  %v2652_v49 = vld [vmem:[#allocation2 + $0x18] sm:$0xff]  ;;  %v552_v51 = vadd.f32 %v4362_v14, %v551_v36  ;;  %v2690_v55 = vmul.f32 %v4457_v31, %v4439_v2 }
 0x10c   : > { %v900_v45 = vrot.slane %v886_v29, %v4365_v17  ;;  %v901_v46 = vcombine.high %v893_v30, %v893_v30  ;;  %2253 = vst [vmem:[#allocation2 + $0x30] sm:$0xff] %v1553_v33  ;;  %2321 = vst [vmem:[#allocation2 + $0x41] sm:$0x1] %v4155_v1  ;;  %v554_v53 = vpop.f32.mrb[18].mxu0  ;;  %v2689_v54 = vmul.f32 %v4457_v31, %v2652_v49 }
 0x10d   : > { %v4476_v57 = vmul.f32 %v4372_v28, %v2652_v49  ;;  %2303 = vst [vmem:[#allocation2 + $0x30] sm:$0x1] %v4155_v1  ;;  %v1569_v59 = vrot.slane %v1555_v40, %v4365_v17  ;;  %v1578_v60 = vcombine.low %v885_v41, %v893_v30  ;;  %v3956_v63 = vpop.f32.mrb[19].mxu0  ;;  %v693_v4 = vmax.f32 %v552_v51, 0.0 }
 0x10e   : > { %v1579_v61 = vcombine.low %v901_v46, %v900_v45  ;;  %v902_v62 = vcombine.high %v900_v45, %v900_v45  ;;  %v555_v5 = vadd.f32 %v4362_v14, %v554_v53  ;;  %v2721_v6 = vadd.f32 %v2689_v54, %v2619_v44  ;;  %v4514_v46 = vld [vmem:[%s5759_s4 + $0x6] ss:$0 sm:$0xff] }
 0x10f   : > { %v2722_v7 = vadd.f32 %v2690_v55, %v2620_v38  ;;  %v4486_v9 = vld [vmem:[#allocation2 + $0x19] sm:$0xff]  ;;  %v4488_v11 = vld [vmem:[#allocation2 + $0x21] sm:$0xff]  ;;  %v4492_v13 = vcombine.low %v1562_v34, %v1569_v59  ;;  %v1586_v15 = vrot.slane %v1578_v60, %v4365_v17  ;;  %v903_v20 = vcombine.high %v693_v4, %v693_v4 }
 0x110   : > { %v4490_v12 = vld [vmem:[#allocation2 + $0x1a] sm:$0xff]  ;;  %v1593_v16 = vrot.slane %v1579_v61, %v4365_v17  ;;  %v2790_v18 = vmul.f32 %v4473_v56, %v4486_v9  ;;  %v4498_v19 = vld [vmem:[#allocation2 + $0x22] sm:$0xff]  ;;  %v910_v21 = vrot.slane %v693_v4, %v4365_v17  ;;  %v694_v22 = vmax.f32 %v555_v5, 0.0 }
 0x111   : > { %v2791_v23 = vmul.f32 %v4473_v56, %v4488_v11  ;;  %2254 = vst [vmem:[#allocation2 + $0x38] sm:$0xff] %v4492_v13  ;;  %v2891_v26 = vmul.f32 %v4483_v3, %v4490_v12  ;;  %v2892_v29 = vmul.f32 %v4483_v3, %v4498_v19  ;;  %v917_v30 = vrot.slane %v903_v20, %v4365_v17  ;;  %v4532_v20 = vld [vmem:[%s5759_s4 + $0x7] ss:$0 sm:$0xff] }
 0x112   : > { %v1594_v24 = vcombine.low %v1586_v15, %v1593_v16  ;;  %v2822_v25 = vadd.f32 %v2790_v18, %v2721_v6  ;;  %v918_v33 = vcombine.high %v910_v21, %v910_v21  ;;  %v1595_v34 = vcombine.low %v902_v62, %v910_v21  ;;  %v559_v44 = vpop.f32.mrb[20].mxu0 }
 0x113   : > { %v920_v36 = vcombine.high %v694_v22, %v694_v22  ;;  %v927_v38 = vrot.slane %v694_v22, %v4365_v17  ;;  %v560_v39 = vadd.f32 %v4362_v14, %v559_v44  ;;  %v3959_v40 = vpop.f32.mrb[21].mxu0  ;;  %v2823_v41 = vadd.f32 %v2791_v23, %v2722_v7 }
 0x114   : > { %2256 = vst [vmem:[#allocation2 + $0x48] sm:$0xff] %v1594_v24  ;;  %v2923_v45 = vadd.f32 %v2891_v26, %v2822_v25  ;;  %v919_v48 = vcombine.high %v917_v30, %v917_v30  ;;  %v1596_v49 = vcombine.low %v918_v33, %v917_v30  ;;  %v1603_v51 = vrot.slane %v1595_v34, %v4365_v17  ;;  %v562_v54 = vpop.f32.mrb[22].mxu0  ;;  %v4519_v55 = vld [vmem:[#allocation2 + $0x30] sm:$0xff] }
 0x115   : > { %2304 = vst [vmem:[#allocation2 + $0x48] sm:$0x1] %v4155_v1  ;;  %v934_v53 = vrot.slane %v920_v36, %v4365_v17  ;;  %v935_v58 = vcombine.high %v927_v38, %v927_v38  ;;  %v695_v59 = vmax.f32 %v560_v39, 0.0  ;;  %v563_v60 = vadd.f32 %v4362_v14, %v562_v54  ;;  %v3960_v61 = vpop.f32.mrb[23].mxu0 }
 0x116   : > { %v2924_v62 = vadd.f32 %v2892_v29, %v2823_v41  ;;  %v1610_v63 = vrot.slane %v1596_v49, %v4365_v17  ;;  %3851 = vst.sshfl [vmem:[#allocation2 + $0x58] sm:$0x3 pattern:$0x76325410] %v919_v48  ;;  %v2993_v5 = vmul.f32 %v4514_v46, %v4519_v55  ;;  %v2994_v6 = vmul.f32 %v4514_v46, %v4492_v13 }
 0x117   : > { %v936_v4 = vcombine.high %v934_v53, %v934_v53  ;;  %2322 = vst [vmem:[#allocation2 + $0x59] sm:$0x1] %v4155_v1  ;;  %v1619_v7 = vcombine.low %v927_v38, %v935_v58  ;;  %v937_v15 = vcombine.high %v695_v59, %v695_v59  ;;  %v944_v16 = vrot.slane %v695_v59, %v4365_v17  ;;  %v4558_v58 = vld [vmem:[%s5759_s4 + $0x8] ss:$0 sm:$0xff] }
 0x118   : > { %v696_v18 = vmax.f32 %v563_v60, 0.0  ;;  %v4534_v21 = vcombine.low %v1603_v51, %v1610_v63  ;;  %v3025_v23 = vadd.f32 %v2993_v5, %v2923_v45  ;;  %v3026_v24 = vadd.f32 %v2994_v6, %v2924_v62  ;;  %v4536_v25 = vld [vmem:[#allocation2 + $0x31] sm:$0xff]  ;;  %v4538_v26 = vld [vmem:[#allocation2 + $0x39] sm:$0xff] }
 0x119   : > { %v1620_v22 = vcombine.low %v934_v53, %v936_v4  ;;  %v1627_v29 = vrot.slane %v1619_v7, %v4365_v17  ;;  %v951_v30 = vrot.slane %v937_v15, %v4365_v17  ;;  %v952_v33 = vcombine.high %v944_v16, %v944_v16  ;;  %v4551_v53 = vld [vmem:[#allocation2 + $0x32] sm:$0xff]  ;;  %v4553_v54 = vld [vmem:[#allocation2 + $0x3a] sm:$0xff] }
 0x11a   : > { %v954_v34 = vcombine.high %v696_v18, %v696_v18  ;;  %2257 = vst [vmem:[#allocation2 + $0x50] sm:$0xff] %v4534_v21  ;;  %v961_v44 = vrot.slane %v696_v18, %v4365_v17  ;;  %v567_v38 = vpop.f32.mrb[24].mxu0  ;;  %v3094_v39 = vmul.f32 %v4532_v20, %v4536_v25  ;;  %v3095_v40 = vmul.f32 %v4532_v20, %v4538_v26 }
 0x11b   : > { %v1634_v36 = vrot.slane %v1620_v22, %v4365_v17  ;;  %v953_v41 = vcombine.high %v951_v30, %v951_v30  ;;  %v1636_v45 = vcombine.low %v944_v16, %v952_v33  ;;  %v568_v49 = vadd.f32 %v4362_v14, %v567_v38  ;;  %v3963_v51 = vpop.f32.mrb[25].mxu0  ;;  %v4573_v33 = vld [vmem:[%s5758_s3 + $0x1] ss:$0 sm:$0xff] }
 0x11c   : > { %v968_v48 = vrot.slane %v954_v34, %v4365_v17  ;;  %v969_v60 = vcombine.high %v961_v44, %v961_v44  ;;  %3852 = vst.sshfl [vmem:[#allocation2 + $0x70] sm:$0x3 pattern:$0x76325410] %v961_v44  ;;  %v570_v61 = vpop.f32.mrb[26].mxu0  ;;  %v3126_v62 = vadd.f32 %v3094_v39, %v3025_v23  ;;  %v3127_v63 = vadd.f32 %v3095_v40, %v3026_v24 }
 0x11d   : > { %v1635_v59 = vcombine.low %v1627_v29, %v1634_v36  ;;  %v1637_v4 = vcombine.low %v951_v30, %v953_v41  ;;  %v1644_v5 = vrot.slane %v1636_v45, %v4365_v17  ;;  %2323 = vst [vmem:[#allocation2 + $0x71] sm:$0x1] %v4155_v1  ;;  %v697_v6 = vmax.f32 %v568_v49, 0.0  ;;  %v3964_v15 = vpop.f32.mrb[27].mxu0  ;;  %v4577_v36 = vpop.f32.mrb[16].mxu1 }
 0x11e   : > { %v970_v7 = vcombine.high %v968_v48, %v968_v48  ;;  %v1660_v16 = vcombine.low %v969_v60, %v968_v48  ;;  %v571_v18 = vadd.f32 %v4362_v14, %v570_v61  ;;  %v3195_v22 = vmul.f32 %v4558_v58, %v4551_v53  ;;  %v4015_v41 = vpop.f32.mrb[17].mxu1 }
 0x11f   : > { %2259 = vst [vmem:[#allocation2 + $0x60] sm:$0xff] %v1635_v59  ;;  %v3196_v29 = vmul.f32 %v4558_v58, %v4553_v54  ;;  %v1651_v23 = vrot.slane %v1637_v4, %v4365_v17  ;;  %v971_v24 = vcombine.high %v697_v6, %v697_v6  ;;  %v978_v30 = vrot.slane %v697_v6, %v4365_v17  ;;  %v4583_v59 = vpop.f32.mrb[18].mxu1 }
 0x120   : > { %2305 = vst [vmem:[#allocation2 + $0x60] sm:$0x1] %v4155_v1  ;;  %v2388_v34 = vmul.f32 %v4372_v28, %v4439_v2  ;;  %v1668_v44 = vrot.slane %v1660_v16, %v4365_v17  ;;  %v698_v38 = vmax.f32 %v571_v18, 0.0  ;;  %v3227_v39 = vadd.f32 %v3195_v22, %v3126_v62  ;;  %v4016_v15 = vpop.f32.mrb[19].mxu1 }
 0x121   : > { %v3228_v40 = vadd.f32 %v3196_v29, %v3127_v63  ;;  %v4580_v45 = vcombine.low %v1644_v5, %v1651_v23  ;;  %v985_v48 = vrot.slane %v971_v24, %v4365_v17  ;;  %v986_v49 = vcombine.high %v978_v30, %v978_v30 }
 0x122   : > { %v1661_v51 = vcombine.low %v970_v7, %v978_v30  ;;  %v988_v60 = vcombine.high %v698_v38, %v698_v38  ;;  %v995_v61 = vrot.slane %v698_v38, %v4365_v17  ;;  %v575_v2 = vpop.f32.mrb[28].mxu0  ;;  %v3264_v4 = vadd.f32 %v4573_v33, %v3227_v39 }
 0x123   : > { %v3265_v6 = vadd.f32 %v4573_v33, %v3228_v40  ;;  %2260 = vst [vmem:[#allocation2 + $0x68] sm:$0xff] %v4580_v45  ;;  %v1677_v63 = vcombine.low %v986_v49, %v985_v48  ;;  %v987_v5 = vcombine.high %v985_v48, %v985_v48  ;;  %v576_v16 = vadd.f32 %v4362_v14, %v575_v2  ;;  %v3967_v7 = vpop.f32.mrb[29].mxu0 }
 0x124   : > { %v1675_v62 = vrot.slane %v1661_v51, %v4365_v17  ;;  %v1002_v18 = vrot.slane %v988_v60, %v4365_v17  ;;  %v1003_v22 = vcombine.high %v995_v61, %v995_v61  ;;  %v578_v29 = vpop.f32.mrb[30].mxu0  ;;  %v3296_v23 = vmax.f32 %v3264_v4, 0.0 }
 0x125   : > { %v3297_v24 = vmax.f32 %v3265_v6, 0.0  ;;  %v1685_v38 = vrot.slane %v1677_v63, %v4365_v17  ;;  %v1678_v39 = vcombine.low %v987_v5, %v995_v61  ;;  %v699_v40 = vmax.f32 %v576_v16, 0.0  ;;  %v3968_v41 = vpop.f32.mrb[31].mxu0 }
 0x126   : > { %v1676_v30 = vcombine.low %v1668_v44, %v1675_v62  ;;  %v1004_v15 = vcombine.high %v1002_v18, %v1002_v18  ;;  %3853 = vst.sshfl [vmem:[#allocation2 + $0x88] sm:$0x3 pattern:$0x76325410] %v1003_v22  ;;  %v579_v49 = vadd.f32 %v4362_v14, %v578_v29  ;;  %v3328_v48 = vmin.f32 %v3296_v23, 6.0 }
 0x127   : > { %v3329_v51 = vmin.f32 %v3297_v24, 6.0  ;;  %v1692_v2 = vrot.slane %v1678_v39, %v4365_v17  ;;  %2324 = vst [vmem:[#allocation2 + $0x89] sm:$0x1] %v4155_v1  ;;  %v1005_v60 = vcombine.high %v699_v40, %v699_v40  ;;  %v1012_v4 = vrot.slane %v699_v40, %v4365_v17 }
 0x128   : > { %2262 = vst [vmem:[#allocation2 + $0x78] sm:$0xff] %v1676_v30  ;;  %v2488_v44 = vmul.f32 %v4414_v35, %v4486_v9  ;;  %v1701_v61 = vcombine.low %v1002_v18, %v1004_v15  ;;  %v700_v6 = vmax.f32 %v579_v49, 0.0  ;;  %v2489_v63 = vmul.f32 %v4414_v35, %v4488_v11 }
 0x129   : > { %2306 = vst [vmem:[#allocation2 + $0x78] sm:$0x1] %v4155_v1  ;;  %v3360_v62 = vpack.c.bf16 %v3329_v51, %v3328_v48  ;;  %v4602_v5 = vcombine.low %v1685_v38, %v1692_v2  ;;  %v1019_v16 = vrot.slane %v1005_v60, %v4365_v17  ;;  %v1020_v7 = vcombine.high %v1012_v4, %v1012_v4 }
 0x12a   : > { %v2520_v22 = vadd.f32 %v2488_v44, %v4476_v57  ;;  %v1709_v29 = vrot.slane %v1701_v61, %v4365_v17  ;;  %v1022_v23 = vcombine.high %v700_v6, %v700_v6  ;;  %v1029_v9 = vrot.slane %v700_v6, %v4365_v17  ;;  %v583_v1 = vpop.f32.mrb[32].mxu0 }
 0x12b   : > { %4037 = vmatprep.mubr.bf16.mxu1 %v3360_v62  ;;  %v2521_v18 = vadd.f32 %v2489_v63, %v2388_v34  ;;  %2263 = vst [vmem:[#allocation2 + $0x80] sm:$0xff] %v4602_v5  ;;  %v1021_v24 = vcombine.high %v1019_v16, %v1019_v16  ;;  %v1702_v30 = vcombine.low %v1012_v4, %v1020_v7  ;;  %v3971_v38 = vpop.f32.mrb[33].mxu0  ;;  %v4620_v63 = vld [vmem:[#allocation2 + $0x8] sm:$0xff] }
 0x12c   : > { %v584_v11 = vadd.f32 %v4362_v14, %v583_v1  ;;  %v2589_v39 = vmul.f32 %v4423_v42, %v4490_v12  ;;  %v1036_v57 = vrot.slane %v1022_v23, %v4365_v17  ;;  %v1037_v40 = vcombine.high %v1029_v9, %v1029_v9  ;;  %v586_v41 = vpop.f32.mrb[34].mxu0 }
 0x12d   : > { %v2590_v15 = vmul.f32 %v4423_v42, %v4498_v19  ;;  %v2691_v34 = vmul.f32 %v4457_v31, %v4519_v55  ;;  %v1716_v49 = vrot.slane %v1702_v30, %v4365_v17  ;;  %v1718_v48 = vcombine.low %v1019_v16, %v1021_v24  ;;  %v3972_v60 = vpop.f32.mrb[35].mxu0 }
 0x12e   : > { %v701_v51 = vmax.f32 %v584_v11, 0.0  ;;  %v587_v2 = vadd.f32 %v4362_v14, %v586_v41  ;;  %v1719_v4 = vcombine.low %v1029_v9, %v1037_v40  ;;  %3854 = vst.sshfl [vmem:[#allocation2 + $0xa0] sm:$0x3 pattern:$0x76325410] %v1036_v57  ;;  %v1038_v12 = vcombine.high %v1036_v57, %v1036_v57 }
 0x12f   : > { %v2621_v44 = vadd.f32 %v2589_v39, %v2520_v22  ;;  %v2622_v61 = vadd.f32 %v2590_v15, %v2521_v18  ;;  %v1717_v6 = vcombine.low %v1709_v29, %v1716_v49  ;;  %v1726_v62 = vrot.slane %v1718_v48, %v4365_v17  ;;  %2325 = vst [vmem:[#allocation2 + $0xa1] sm:$0x1] %v4620_v63  ;;  %v4635_v49 = vld [vmem:[#allocation2 + $0x48] sm:$0xff] }
 0x130   : > { %v1039_v19 = vcombine.high %v701_v51, %v701_v51  ;;  %v1046_v7 = vrot.slane %v701_v51, %v4365_v17  ;;  %v1733_v16 = vrot.slane %v1719_v4, %v4365_v17  ;;  %v702_v23 = vmax.f32 %v587_v2, 0.0 }
 0x131   : > { %v2692_v9 = vmul.f32 %v4457_v31, %v4492_v13  ;;  %v2723_v1 = vadd.f32 %v2691_v34, %v2621_v44  ;;  %2265 = vst [vmem:[#allocation2 + $0x90] sm:$0xff] %v1717_v6  ;;  %v2792_v24 = vmul.f32 %v4473_v56, %v4536_v25  ;;  %v2793_v34 = vmul.f32 %v4473_v56, %v4538_v26 }
 0x132   : > { %v1053_v22 = vrot.slane %v1039_v19, %v4365_v17  ;;  %v1054_v29 = vcombine.high %v1046_v7, %v1046_v7  ;;  %v1742_v18 = vcombine.low %v1038_v12, %v1046_v7  ;;  %2307 = vst [vmem:[#allocation2 + $0x90] sm:$0x1] %v4620_v63  ;;  %v1734_v30 = vcombine.low %v1726_v62, %v1733_v16  ;;  %v591_v57 = vpop.f32.mrb[36].mxu0  ;;  %v4643_v19 = vld [vmem:[#allocation2 + $0x49] sm:$0xff]  ;;  %v4645_v7 = vld [vmem:[#allocation2 + $0x51] sm:$0xff] }
 0x133   : > { %v1056_v11 = vcombine.high %v702_v23, %v702_v23  ;;  %v1063_v38 = vrot.slane %v702_v23, %v4365_v17  ;;  %v2724_v39 = vadd.f32 %v2692_v9, %v2622_v61  ;;  %v3975_v48 = vpop.f32.mrb[37].mxu0  ;;  %v2824_v60 = vadd.f32 %v2792_v24, %v2723_v1  ;;  %v4647_v23 = vpop.f32.mrb[20].mxu1  ;;  %v4653_v24 = vld [vmem:[#allocation2 + $0x52] sm:$0xff] }
 0x134   : > { %v1743_v40 = vcombine.low %v1054_v29, %v1053_v22  ;;  %v1750_v41 = vrot.slane %v1742_v18, %v4365_v17  ;;  %v1055_v15 = vcombine.high %v1053_v22, %v1053_v22  ;;  %2266 = vst [vmem:[#allocation2 + $0x98] sm:$0xff] %v1734_v30  ;;  %v2893_v4 = vmul.f32 %v4483_v3, %v4551_v53  ;;  %v594_v12 = vpop.f32.mrb[38].mxu0  ;;  %v4651_v18 = vld [vmem:[#allocation2 + $0x4a] sm:$0xff]  ;;  %v4019_v30 = vpop.f32.mrb[21].mxu1 }
 0x135   : > { %v1070_v51 = vrot.slane %v1056_v11, %v4365_v17  ;;  %v1071_v2 = vcombine.high %v1063_v38, %v1063_v38  ;;  %v2825_v6 = vadd.f32 %v2793_v34, %v2724_v39  ;;  %v2894_v62 = vmul.f32 %v4483_v3, %v4553_v54  ;;  %v3976_v16 = vpop.f32.mrb[39].mxu0  ;;  %5763 = vst [vmem:[#allocation3_spill] sm:$0xff] %v4647_v23 }
 0x136   : > { %v1757_v44 = vrot.slane %v1743_v40, %v4365_v17  ;;  %v1759_v61 = vcombine.low %v1055_v15, %v1063_v38  ;;  %v2925_v22 = vadd.f32 %v2893_v4, %v2824_v60  ;;  %v2995_v29 = vmul.f32 %v4514_v46, %v4635_v49  ;;  %v682_v15 = vpop.f32.mrb[22].mxu1 }
 0x137   : > { %v1072_v9 = vcombine.high %v1070_v51, %v1070_v51  ;;  %v1760_v1 = vcombine.low %v1071_v2, %v1070_v51  ;;  %v2926_v39 = vadd.f32 %v2894_v62, %v2825_v6  ;;  %v2996_v40 = vmul.f32 %v4514_v46, %v4534_v21  ;;  %v4020_v60 = vpop.f32.mrb[23].mxu1 }
 0x138   : > { %v1758_v11 = vcombine.low %v1750_v41, %v1757_v44  ;;  %v1767_v38 = vrot.slane %v1759_v61, %v4365_v17  ;;  %v3027_v48 = vadd.f32 %v2995_v29, %v2925_v22  ;;  %v3096_v51 = vmul.f32 %v4532_v20, %v4643_v19 }
 0x139   : > { %v1774_v34 = vrot.slane %v1760_v1, %v4365_v17  ;;  %3855 = vst.sshfl [vmem:[#allocation2 + $0xb8] sm:$0x3 pattern:$0x76325410] %v1072_v9  ;;  %v3097_v2 = vmul.f32 %v4532_v20, %v4645_v7  ;;  %v3028_v41 = vadd.f32 %v2996_v40, %v2926_v39  ;;  %v3197_v4 = vmul.f32 %v4558_v58, %v4651_v18 }
 0x13a   : > { %2268 = vst [vmem:[#allocation2 + $0xa8] sm:$0xff] %v1758_v11  ;;  %2326 = vst [vmem:[#allocation2 + $0xb9] sm:$0x1] %v4620_v63  ;;  %v3198_v44 = vmul.f32 %v4558_v58, %v4653_v24  ;;  %v592_v61 = vadd.f32 %v4362_v14, %v591_v57  ;;  %v3128_v62 = vadd.f32 %v3096_v51, %v3027_v48  ;;  %v599_v9 = vpop.f32.mrb[40].mxu0 }
 0x13b   : > { %2308 = vst [vmem:[#allocation2 + $0xa8] sm:$0x1] %v4620_v63  ;;  %v1775_v6 = vcombine.low %v1767_v38, %v1774_v34  ;;  %v595_v16 = vadd.f32 %v4362_v14, %v594_v12  ;;  %v2389_v1 = vmul.f32 %v4372_v28, %v4519_v55  ;;  %v3129_v22 = vadd.f32 %v3097_v2, %v3028_v41  ;;  %v3979_v11 = vpop.f32.mrb[41].mxu0 }
 0x13c   : > { %v703_v29 = vmax.f32 %v592_v61, 0.0  ;;  %v600_v30 = vadd.f32 %v4362_v14, %v599_v9  ;;  %v2390_v39 = vmul.f32 %v4372_v28, %v4492_v13  ;;  %v3229_v57 = vadd.f32 %v3197_v4, %v3128_v62  ;;  %v4680_v15 = vpop.f32.mrb[42].mxu0 }
 0x13d   : > { %2269 = vst [vmem:[#allocation2 + $0xb0] sm:$0xff] %v1775_v6  ;;  %v704_v40 = vmax.f32 %v595_v16, 0.0  ;;  %v2490_v38 = vmul.f32 %v4414_v35, %v4536_v25  ;;  %v2491_v12 = vmul.f32 %v4414_v35, %v4538_v26  ;;  %v3230_v55 = vadd.f32 %v3198_v44, %v3129_v22  ;;  %v3980_v51 = vpop.f32.mrb[43].mxu0 }
 0x13e   : > { %v1073_v34 = vcombine.high %v703_v29, %v703_v29  ;;  %v1080_v48 = vrot.slane %v703_v29, %v4365_v17  ;;  %v705_v14 = vmax.f32 %v600_v30, 0.0  ;;  %v3266_v2 = vadd.f32 %v4573_v33, %v3229_v57 }
 0x13f   : > { %v1090_v13 = vcombine.high %v704_v40, %v704_v40  ;;  %v1097_v60 = vrot.slane %v704_v40, %v4365_v17  ;;  %v2522_v41 = vadd.f32 %v2490_v38, %v2389_v1  ;;  %v3267_v4 = vadd.f32 %v4573_v33, %v3230_v55 }
 0x140   : > { %v1087_v25 = vrot.slane %v1073_v34, %v4365_v17  ;;  %v1088_v61 = vcombine.high %v1080_v48, %v1080_v48  ;;  %v1107_v26 = vcombine.high %v705_v14, %v705_v14  ;;  %v3298_v6 = vmax.f32 %v3266_v2, 0.0 }
 0x141   : > { %v1104_v44 = vrot.slane %v1090_v13, %v4365_v17  ;;  %v1105_v62 = vcombine.high %v1097_v60, %v1097_v60  ;;  %v1114_v16 = vrot.slane %v705_v14, %v4365_v17  ;;  %v3299_v9 = vmax.f32 %v3267_v4, 0.0 }
 0x142   : > { %v1089_v22 = vcombine.high %v1087_v25, %v1087_v25  ;;  %v1783_v29 = vcombine.low %v1080_v48, %v1088_v61  ;;  %v4690_v30 = vrot.slane %v1107_v26, %v4365_v17  ;;  %v3330_v11 = vmin.f32 %v3298_v6, 6.0  ;;  %v607_v38 = vpop.f32.mrb[44].mxu0 }
 0x143   : > { %v1106_v1 = vcombine.high %v1104_v44, %v1104_v44  ;;  %v1800_v57 = vcombine.low %v1097_v60, %v1105_v62  ;;  %v1122_v40 = vcombine.high %v1114_v16, %v1114_v16  ;;  %3856 = vst.sshfl [vmem:[#allocation2 + $0xd0] sm:$0x3 pattern:$0x76325410] %v1114_v16  ;;  %v3331_v55 = vmin.f32 %v3299_v9, 6.0  ;;  %v3983_v14 = vpop.f32.mrb[45].mxu0 }
 0x144   : > { %v1784_v34 = vcombine.low %v1087_v25, %v1089_v22  ;;  %v1791_v51 = vrot.slane %v1783_v29, %v4365_v17  ;;  %2327 = vst [vmem:[#allocation2 + $0xd1] sm:$0x1] %v4620_v63  ;;  %v2523_v2 = vadd.f32 %v2491_v12, %v2390_v39  ;;  %v2591_v60 = vmul.f32 %v4423_v42, %v4551_v53  ;;  %v4700_v61 = vpop.f32.mrb[46].mxu0  ;;  %v4712_v9 = vld [vmem:[#allocation2 + $0x60] sm:$0xff] }
 0x145   : > { %v1801_v13 = vcombine.low %v1104_v44, %v1106_v1  ;;  %v1808_v48 = vrot.slane %v1800_v57, %v4365_v17  ;;  %v4696_v4 = vcombine.low %v1122_v40, %v4690_v30  ;;  %v3361_v26 = vpack.c.bf16 %v3331_v55, %v3330_v11  ;;  %v3984_v12 = vpop.f32.mrb[47].mxu0  ;;  %v4714_v22 = vld [vmem:[#allocation2 + $0x61] sm:$0xff]  ;;  %v4720_v57 = vld [vmem:[#allocation2 + $0x69] sm:$0xff] }
 0x146   : > { %v1798_v25 = vrot.slane %v1784_v34, %v4365_v17  ;;  %v2592_v6 = vmul.f32 %v4423_v42, %v4553_v54  ;;  %v2693_v39 = vmul.f32 %v4457_v31, %v4635_v49  ;;  %v2623_v16 = vadd.f32 %v2591_v60, %v2522_v41  ;;  %v4722_v40 = vld [vmem:[#allocation2 + $0x62] sm:$0xff]  ;;  %v4724_v41 = vld [vmem:[#allocation2 + $0x6a] sm:$0xff] }
 0x147   : > { %v1815_v44 = vrot.slane %v1801_v13, %v4365_v17  ;;  %v2694_v53 = vmul.f32 %v4457_v31, %v4534_v21  ;;  %4038 = vmatmul.mubr.bf16.vlgmr.msra.gmra.mrb[24].mxu1 %v3361_v26  ;;  %v2794_v11 = vmul.f32 %v4473_v56, %v4643_v19  ;;  %v2795_v1 = vmul.f32 %v4473_v56, %v4645_v7 }
 0x148   : > { %v1799_v29 = vcombine.low %v1791_v51, %v1798_v25  ;;  %v2624_v54 = vadd.f32 %v2592_v6, %v2523_v2  ;;  %v2725_v34 = vadd.f32 %v2693_v39, %v2623_v16  ;;  %v2895_v14 = vmul.f32 %v4483_v3, %v4651_v18  ;;  %v4748_v16 = vld [vmem:[%s5758_s3] ss:$0 sm:$0xff] }
 0x149   : > { %v1816_v55 = vcombine.low %v1808_v48, %v1815_v44  ;;  %v2896_v51 = vmul.f32 %v4483_v3, %v4653_v24  ;;  %v2997_v13 = vmul.f32 %v4514_v46, %v4712_v9  ;;  %v2998_v60 = vmul.f32 %v4514_v46, %v4580_v45 }
 0x14a   : > { %2271 = vst [vmem:[#allocation2 + $0xc0] sm:$0xff] %v1799_v29  ;;  %v2726_v2 = vadd.f32 %v2694_v53, %v2624_v54  ;;  %v3098_v26 = vmul.f32 %v4532_v20, %v4714_v22  ;;  %v2826_v48 = vadd.f32 %v2794_v11, %v2725_v34  ;;  %v3099_v25 = vmul.f32 %v4532_v20, %v4720_v57  ;;  %v4743_v12 = vpop.f32.mrb[48].mxu0 }
 0x14b   : > { %2309 = vst [vmem:[#allocation2 + $0xc0] sm:$0x1] %v4620_v63  ;;  %2272 = vst [vmem:[#allocation2 + $0xc8] sm:$0xff] %v1816_v55  ;;  %v3199_v6 = vmul.f32 %v4558_v58, %v4722_v40  ;;  %v3200_v39 = vmul.f32 %v4558_v58, %v4724_v41  ;;  %v603_v53 = vadd.f32 %v4748_v16, %v4680_v15  ;;  %v3987_v11 = vpop.f32.mrb[49].mxu0 }
 0x14c   : > { %v2827_v44 = vadd.f32 %v2795_v1, %v2726_v2  ;;  %v1123_v29 = vcombine.high %v4690_v30, %v4690_v30  ;;  %v608_v54 = vadd.f32 %v4748_v16, %v607_v38  ;;  %v2927_v55 = vadd.f32 %v2895_v14, %v2826_v48  ;;  %v4761_v37 = vpop.f32.mrb[50].mxu0 }
 0x14d   : > { %v2391_v34 = vmul.f32 %v4372_v28, %v4635_v49  ;;  %v2392_v1 = vmul.f32 %v4372_v28, %v4534_v21  ;;  %v2492_v2 = vmul.f32 %v4414_v35, %v4643_v19  ;;  %v706_v15 = vmax.f32 %v603_v53, 0.0  ;;  %v3988_v38 = vpop.f32.mrb[51].mxu0 }
 0x14e   : > { %v2928_v0 = vadd.f32 %v2896_v51, %v2827_v44  ;;  %v707_v62 = vmax.f32 %v608_v54, 0.0  ;;  %v2493_v30 = vmul.f32 %v4414_v35, %v4645_v7  ;;  %v3029_v11 = vadd.f32 %v2997_v13, %v2927_v55 }
 0x14f   : > { %v2524_v14 = vadd.f32 %v2492_v2, %v2391_v34  ;;  %v2593_v49 = vmul.f32 %v4423_v42, %v4651_v18  ;;  %v2594_v28 = vmul.f32 %v4423_v42, %v4653_v24  ;;  %v1124_v48 = vcombine.high %v706_v15, %v706_v15 }
 0x150   : > { %v3030_v21 = vadd.f32 %v2998_v60, %v2928_v0  ;;  %v1131_v19 = vrot.slane %v706_v15, %v4365_v17  ;;  %v1141_v23 = vcombine.high %v707_v62, %v707_v62  ;;  %v3130_v51 = vadd.f32 %v3098_v26, %v3029_v11 }
 0x151   : > { %v1148_v44 = vrot.slane %v707_v62, %v4365_v17  ;;  %v2525_v53 = vadd.f32 %v2493_v30, %v2392_v1  ;;  %v2625_v54 = vadd.f32 %v2593_v49, %v2524_v14  ;;  %v1138_v7 = vrot.slane %v1124_v48, %v4365_v17 }
 0x152   : > { %v3131_v35 = vadd.f32 %v3099_v25, %v3030_v21  ;;  %v1139_v13 = vcombine.high %v1131_v19, %v1131_v19  ;;  %v1825_v55 = vcombine.low %v1123_v29, %v1131_v19  ;;  %v3231_v34 = vadd.f32 %v3199_v6, %v3130_v51  ;;  %v4773_v0 = vpop.f32.mrb[52].mxu0 }
 0x153   : > { %v1155_v18 = vrot.slane %v1141_v23, %v4365_v17  ;;  %v1156_v2 = vcombine.high %v1148_v44, %v1148_v44  ;;  %v2626_v42 = vadd.f32 %v2594_v28, %v2525_v53  ;;  %v1140_v15 = vcombine.high %v1138_v7, %v1138_v7  ;;  %v3991_v62 = vpop.f32.mrb[53].mxu0  ;;  %v4796_v53 = vld [vmem:[#allocation2 + $0x78] sm:$0xff] }
 0x154   : > { %v3232_v24 = vadd.f32 %v3200_v39, %v3131_v35  ;;  %v1839_v60 = vrot.slane %v1825_v55, %v4365_v17  ;;  %v1841_v26 = vcombine.low %v1139_v13, %v1138_v7  ;;  %v3268_v1 = vadd.f32 %v4573_v33, %v3231_v34  ;;  %v4781_v6 = vpop.f32.mrb[54].mxu0  ;;  %v4800_v35 = vld [vmem:[#allocation2 + $0x81] sm:$0xff] }
 0x155   : > { %v1157_v25 = vcombine.high %v1155_v18, %v1155_v18  ;;  %3857 = vst.sshfl [vmem:[#allocation2 + $0xe8] sm:$0x3 pattern:$0x76325410] %v1156_v2  ;;  %v2695_v29 = vmul.f32 %v4457_v31, %v4712_v9  ;;  %v2696_v23 = vmul.f32 %v4457_v31, %v4580_v45  ;;  %v5764_v39 = vrot.slane %v4696_v4, %v4365_v17  ;;  %v3992_v49 = vpop.f32.mrb[55].mxu0  ;;  %v4809_v34 = vld [vmem:[#allocation2 + $0x7a] sm:$0xff] }
 0x156   : > { %v3269_v30 = vadd.f32 %v4573_v33, %v3232_v24  ;;  %v1849_v11 = vrot.slane %v1841_v26, %v4365_v17  ;;  %v1842_v14 = vcombine.low %v1140_v15, %v1148_v44  ;;  %2328 = vst [vmem:[#allocation2 + $0xe9] sm:$0x1] %v4620_v63  ;;  %v3300_v28 = vmax.f32 %v3268_v1, 0.0  ;;  %v4798_v44 = vld [vmem:[#allocation2 + $0x79] sm:$0xff]  ;;  %v4811_v24 = vld [vmem:[#allocation2 + $0x82] sm:$0xff] }
 0x157   : > { %v1840_v38 = vcombine.low %v5764_v39, %v1839_v60  ;;  %v4789_v21 = vcombine.low %v1155_v18, %v1157_v25  ;;  %v2727_v48 = vadd.f32 %v2695_v29, %v2625_v54  ;;  %v2728_v19 = vadd.f32 %v2696_v23, %v2626_v42 }
 0x158   : > { %v3301_v31 = vmax.f32 %v3269_v30, 0.0  ;;  %v1856_v45 = vrot.slane %v1842_v14, %v4365_v17  ;;  %v2796_v51 = vmul.f32 %v4473_v56, %v4714_v22  ;;  %v2797_v4 = vmul.f32 %v4473_v56, %v4720_v57 }
 0x159   : > { %2274 = vst [vmem:[#allocation2 + $0xd8] sm:$0xff] %v1840_v38  ;;  %v3332_v7 = vmin.f32 %v3300_v28, 6.0  ;;  %v1873_v54 = vrot.slane %v4789_v21, %v4365_v17  ;;  %v2897_v13 = vmul.f32 %v4483_v3, %v4722_v40  ;;  %v2898_v55 = vmul.f32 %v4483_v3, %v4724_v41  ;;  %v4875_v21 = vld [vmem:[%s5759_s4] ss:$0 sm:$0xff] }
 0x15a   : > { %2310 = vst [vmem:[#allocation2 + $0xd8] sm:$0x1] %v4620_v63  ;;  %v3333_v56 = vmin.f32 %v3301_v31, 6.0  ;;  %v1857_v18 = vcombine.low %v1849_v11, %v1856_v45  ;;  %v2828_v2 = vadd.f32 %v2796_v51, %v2727_v48  ;;  %v2829_v42 = vadd.f32 %v2797_v4, %v2728_v19  ;;  %v4821_v62 = vpop.f32.mrb[56].mxu0 }
 0x15b   : > { %v2999_v60 = vmul.f32 %v4514_v46, %v4796_v53  ;;  %v3000_v26 = vmul.f32 %v4514_v46, %v4602_v5  ;;  %v3100_v15 = vmul.f32 %v4532_v20, %v4798_v44  ;;  %v3101_v3 = vmul.f32 %v4532_v20, %v4800_v35  ;;  %v3995_v30 = vpop.f32.mrb[57].mxu0 }
 0x15c   : > { %v3362_v1 = vpack.c.bf16 %v3333_v56, %v3332_v7  ;;  %2275 = vst [vmem:[#allocation2 + $0xe0] sm:$0xff] %v1857_v18  ;;  %v2929_v25 = vadd.f32 %v2897_v13, %v2828_v2  ;;  %v2930_v29 = vadd.f32 %v2898_v55, %v2829_v42  ;;  %v3201_v23 = vmul.f32 %v4558_v58, %v4809_v34  ;;  %v4835_v49 = vpop.f32.mrb[58].mxu0 }
 0x15d   : > { %v3202_v39 = vmul.f32 %v4558_v58, %v4811_v24  ;;  %v611_v5 = vadd.f32 %v4748_v16, %v4700_v61  ;;  %v1318_v38 = vrot.slane %v4428_v52, %v4365_v17  ;;  %v5765_v11 = vcombine.high %v4428_v52, %v4428_v52  ;;  %v3996_v61 = vpop.f32.mrb[59].mxu0 }
 0x15e   : > { %4041 = vmatprep.mubr.bf16.mxu1 %v3362_v1  ;;  %v3031_v28 = vadd.f32 %v2999_v60, %v2929_v25  ;;  %v3032_v48 = vadd.f32 %v3000_v26, %v2930_v29  ;;  %v651_v19 = vadd.f32 %v4748_v16, %v4398_v10  ;;  %v616_v31 = vadd.f32 %v4748_v16, %v4743_v12 }
 0x15f   : > { %v1325_v14 = vrot.slane %v5765_v11, %v4365_v17  ;;  %v708_v45 = vmax.f32 %v611_v5, 0.0  ;;  %v1326_v51 = vcombine.high %v1318_v38, %v1318_v38  ;;  %v656_v7 = vadd.f32 %v4748_v16, %v4425_v43 }
 0x160   : > { %v3132_v52 = vadd.f32 %v3100_v15, %v3031_v28  ;;  %v3133_v13 = vadd.f32 %v3101_v3, %v3032_v48  ;;  %v718_v55 = vmax.f32 %v651_v19, 0.0  ;;  %v709_v56 = vmax.f32 %v616_v31, 0.0 }
 0x161   : > { %v1327_v4 = vcombine.high %v1325_v14, %v1325_v14  ;;  %v1158_v18 = vcombine.high %v708_v45, %v708_v45  ;;  %v1165_v2 = vrot.slane %v708_v45, %v4365_v17  ;;  %v2030_v42 = vcombine.low %v1318_v38, %v1326_v51 }
 0x162   : > { %v3233_v10 = vadd.f32 %v3201_v23, %v3132_v52  ;;  %v3234_v26 = vadd.f32 %v3202_v39, %v3133_v13  ;;  %v1328_v1 = vcombine.high %v718_v55, %v718_v55  ;;  %v1335_v12 = vrot.slane %v718_v55, %v4365_v17 }
 0x163   : > { %v2046_v60 = vcombine.low %v1325_v14, %v1327_v4  ;;  %v1172_v25 = vrot.slane %v1158_v18, %v4365_v17  ;;  %v1173_v29 = vcombine.high %v1165_v2, %v1165_v2  ;;  %v2044_v30 = vrot.slane %v2030_v42, %v4365_v17 }
 0x164   : > { %v3270_v15 = vadd.f32 %v4573_v33, %v3233_v10  ;;  %v3271_v3 = vadd.f32 %v4573_v33, %v3234_v26  ;;  %v1342_v5 = vrot.slane %v1328_v1, %v4365_v17  ;;  %v1343_v38 = vcombine.high %v1335_v12, %v1335_v12 }
 0x165   : > { %v2054_v43 = vrot.slane %v2046_v60, %v4365_v17  ;;  %v1174_v11 = vcombine.high %v1172_v25, %v1172_v25  ;;  %v1866_v23 = vcombine.low %v1165_v2, %v1173_v29  ;;  %v5766_v39 = vrot.slane %v4404_v27, %v4365_v17  ;;  %v2357_v2 = vld [vmem:[#allocation2 + $0x68] sm:$0xff] }
 0x166   : > { %v1175_v28 = vcombine.high %v709_v56, %v709_v56  ;;  %v3302_v48 = vmax.f32 %v3270_v15, 0.0  ;;  %v3303_v19 = vmax.f32 %v3271_v3, 0.0  ;;  %v2047_v31 = vcombine.low %v1335_v12, %v1343_v38  ;;  %3862 = vst.sshfl [vmem:[#allocation2 + $0x160] sm:$0x3 pattern:$0x76325410] %v1342_v5 }
 0x167   : > { %v2045_v14 = vcombine.low %v5766_v39, %v2044_v30  ;;  %v1182_v61 = vrot.slane %v709_v56, %v4365_v17  ;;  %v1880_v45 = vrot.slane %v1866_v23, %v4365_v17  ;;  %v1882_v51 = vcombine.low %v1172_v25, %v1174_v11  ;;  %2333 = vst [vmem:[#allocation2 + $0x161] sm:$0x1] %v4620_v63  ;;  %v4883_v30 = vld [vmem:[%s5759_s4 + $0x1] ss:$0 sm:$0xff]  ;;  %v4896_v23 = vld [vmem:[%s5759_s4 + $0x2] ss:$0 sm:$0xff] }
 0x168   : > { %v4858_v4 = vrot.slane %v1175_v28, %v4365_v17  ;;  %v719_v52 = vmax.f32 %v656_v7, 0.0  ;;  %v3334_v13 = vmin.f32 %v3302_v48, 6.0  ;;  %v3335_v27 = vmin.f32 %v3303_v19, 6.0  ;;  %v4891_v38 = vld [vmem:[#allocation2 + $0x80] sm:$0xff] }
 0x169   : > { %2289 = vst [vmem:[#allocation2 + $0x150] sm:$0xff] %v2045_v14  ;;  %v2061_v55 = vrot.slane %v2047_v31, %v4365_v17  ;;  %v1190_v18 = vcombine.high %v1182_v61, %v1182_v61  ;;  %v1881_v56 = vcombine.low %v1873_v54, %v1880_v45  ;;  %v1890_v42 = vrot.slane %v1882_v51, %v4365_v17  ;;  %v4905_v14 = vld [vmem:[%s5759_s4 + $0x3] ss:$0 sm:$0xff] }
 0x16a   : > { %2315 = vst [vmem:[#allocation2 + $0x150] sm:$0x1] %v4620_v63  ;;  %3858 = vst.sshfl [vmem:[#allocation2 + $0x100] sm:$0x3 pattern:$0x76325410] %v4858_v4  ;;  %v1344_v60 = vcombine.high %v1342_v5, %v1342_v5  ;;  %v1345_v10 = vcombine.high %v719_v52, %v719_v52  ;;  %v3363_v26 = vpack.c.bf16 %v3335_v27, %v3334_v13 }
 0x16b   : > { %v2062_v7 = vcombine.low %v2054_v43, %v2061_v55  ;;  %v1883_v1 = vcombine.low %v1182_v61, %v1190_v18  ;;  %2329 = vst [vmem:[#allocation2 + $0x101] sm:$0x1] %v4620_v63  ;;  %v1352_v12 = vrot.slane %v719_v52, %v4365_v17  ;;  %2277 = vst [vmem:[#allocation2 + $0xf0] sm:$0xff] %v1881_v56  ;;  %v4913_v61 = vld [vmem:[#allocation2 + $0x90] sm:$0xff]  ;;  %v4924_v52 = vld [vmem:[%s5759_s4 + $0x4] ss:$0 sm:$0xff] }
 0x16c   : > { %v4870_v25 = vrot.slane %v1345_v10, %v4365_v17  ;;  %v2393_v54 = vmul.f32 %v4875_v21, %v4712_v9  ;;  %v2394_v29 = vmul.f32 %v4875_v21, %v2357_v2  ;;  %v2494_v43 = vmul.f32 %v4883_v30, %v4714_v22  ;;  %4042 = vmatmul.mubr.bf16.gmra.mrb[28].mxu1 %v3363_v26  ;;  %v4930_v55 = vld [vmem:[#allocation2 + $0x99] sm:$0xff] }
 0x16d   : > { %2311 = vst [vmem:[#allocation2 + $0xf0] sm:$0x1] %v4620_v63  ;;  %2290 = vst [vmem:[#allocation2 + $0x158] sm:$0xff] %v2062_v7  ;;  %v1897_v15 = vrot.slane %v1883_v1, %v4365_v17  ;;  %v1360_v3 = vcombine.high %v1352_v12, %v1352_v12  ;;  %v2070_v5 = vcombine.low %v1344_v60, %v1352_v12  ;;  %v4932_v18 = vld [vmem:[#allocation2 + $0x92] sm:$0xff]  ;;  %v4945_v26 = vld [vmem:[#allocation2 + $0x9a] sm:$0xff] }
 0x16e   : > { %v2495_v9 = vmul.f32 %v4883_v30, %v4720_v57  ;;  %v2526_v11 = vadd.f32 %v2494_v43, %v2393_v54  ;;  %v2595_v22 = vmul.f32 %v4896_v23, %v4722_v40  ;;  %v2596_v39 = vmul.f32 %v4896_v23, %v4724_v41  ;;  %v4915_v40 = vld [vmem:[#allocation2 + $0x98] sm:$0xff] }
 0x16f   : > { %v2697_v57 = vmul.f32 %v4905_v14, %v4796_v53  ;;  %v4909_v28 = vcombine.low %v1890_v42, %v1897_v15  ;;  %v2071_v48 = vcombine.low %v1360_v3, %v4870_v25  ;;  %v2078_v19 = vrot.slane %v2070_v5, %v4365_v17  ;;  %v4917_v41 = vld [vmem:[#allocation2 + $0x91] sm:$0xff]  ;;  %v4939_v42 = vld [vmem:[%s5759_s4 + $0x5] ss:$0 sm:$0xff] }
 0x170   : > { %v2527_v31 = vadd.f32 %v2495_v9, %v2394_v29  ;;  %v2627_v45 = vadd.f32 %v2595_v22, %v2526_v11  ;;  %v2698_v51 = vmul.f32 %v4905_v14, %v4891_v38  ;;  %v2798_v13 = vmul.f32 %v4924_v52, %v4798_v44 }
 0x171   : > { %v2799_v27 = vmul.f32 %v4924_v52, %v4800_v35  ;;  %2278 = vst [vmem:[#allocation2 + $0xf8] sm:$0xff] %v4909_v28  ;;  %v2085_v2 = vrot.slane %v2071_v48, %v4365_v17  ;;  %v2899_v60 = vmul.f32 %v4939_v42, %v4809_v34  ;;  %v2900_v10 = vmul.f32 %v4939_v42, %v4811_v24 }
 0x172   : > { %v2628_v56 = vadd.f32 %v2596_v39, %v2527_v31  ;;  %v2729_v7 = vadd.f32 %v2697_v57, %v2627_v45  ;;  %v3001_v1 = vmul.f32 %v4514_v46, %v4913_v61  ;;  %v3002_v12 = vmul.f32 %v4514_v46, %v4915_v40 }
 0x173   : > { %v3102_v54 = vmul.f32 %v4532_v20, %v4917_v41  ;;  %v2086_v29 = vcombine.low %v2078_v19, %v2085_v2  ;;  %v3103_v15 = vmul.f32 %v4532_v20, %v4930_v55  ;;  %v3203_v3 = vmul.f32 %v4558_v58, %v4932_v18 }
 0x174   : > { %v2730_v43 = vadd.f32 %v2698_v51, %v2628_v56  ;;  %v2830_v5 = vadd.f32 %v2798_v13, %v2729_v7  ;;  %v3204_v9 = vmul.f32 %v4558_v58, %v4945_v26  ;;  %v619_v11 = vadd.f32 %v4748_v16, %v4761_v37 }
 0x175   : > { %v1191_v46 = vcombine.high %v4858_v4, %v4858_v4  ;;  %2292 = vst [vmem:[#allocation2 + $0x168] sm:$0xff] %v2086_v29  ;;  %v659_v39 = vadd.f32 %v4748_v16, %v4442_v8  ;;  %v1361_v20 = vcombine.high %v4870_v25, %v4870_v25  ;;  %v664_v57 = vadd.f32 %v4748_v16, %v4459_v32 }
 0x176   : > { %v2831_v22 = vadd.f32 %v2799_v27, %v2730_v43  ;;  %2316 = vst [vmem:[#allocation2 + $0x168] sm:$0x1] %v4620_v63  ;;  %v2931_v58 = vadd.f32 %v2899_v60, %v2830_v5  ;;  %v710_v48 = vmax.f32 %v619_v11, 0.0  ;;  %v667_v37 = vadd.f32 %v4748_v16, %v4463_v50 }
 0x177   : > { %v624_v4 = vadd.f32 %v4748_v16, %v4773_v0  ;;  %v720_v31 = vmax.f32 %v659_v39, 0.0  ;;  %v721_v45 = vmax.f32 %v664_v57, 0.0  ;;  %v4976_v8 = vmul.f32 %v4875_v21, %v4796_v53 }
 0x178   : > { %v2932_v19 = vadd.f32 %v2900_v10, %v2831_v22  ;;  %v3033_v25 = vadd.f32 %v3001_v1, %v2931_v58  ;;  %v1192_v51 = vcombine.high %v710_v48, %v710_v48  ;;  %v1199_v32 = vrot.slane %v710_v48, %v4365_v17 }
 0x179   : > { %v722_v13 = vmax.f32 %v667_v37, 0.0  ;;  %v1362_v2 = vcombine.high %v720_v31, %v720_v31  ;;  %v1369_v56 = vrot.slane %v720_v31, %v4365_v17  ;;  %v1379_v50 = vcombine.high %v721_v45, %v721_v45 }
 0x17a   : > { %v3034_v27 = vadd.f32 %v3002_v12, %v2932_v19  ;;  %v3134_v60 = vadd.f32 %v3102_v54, %v3033_v25  ;;  %v1206_v0 = vrot.slane %v1192_v51, %v4365_v17  ;;  %v1207_v10 = vcombine.high %v1199_v32, %v1199_v32 }
 0x17b   : > { %v1906_v7 = vcombine.low %v1191_v46, %v1199_v32  ;;  %v1376_v43 = vrot.slane %v1362_v2, %v4365_v17  ;;  %v1377_v53 = vcombine.high %v1369_v56, %v1369_v56  ;;  %v2087_v5 = vcombine.low %v1361_v20, %v1369_v56 }
 0x17c   : > { %v3135_v29 = vadd.f32 %v3103_v15, %v3034_v27  ;;  %v3235_v1 = vadd.f32 %v3203_v3, %v3134_v60  ;;  %v1907_v11 = vcombine.low %v1207_v10, %v1206_v0  ;;  %v1386_v12 = vrot.slane %v721_v45, %v4365_v17 }
 0x17d   : > { %v1914_v22 = vrot.slane %v1906_v7, %v4365_v17  ;;  %v1378_v57 = vcombine.high %v1376_v43, %v1376_v43  ;;  %v2088_v58 = vcombine.low %v1377_v53, %v1376_v43  ;;  %v2095_v54 = vrot.slane %v2087_v5, %v4365_v17 }
 0x17e   : > { %v3236_v39 = vadd.f32 %v3204_v9, %v3135_v29  ;;  %v3272_v48 = vadd.f32 %v4573_v33, %v3235_v1  ;;  %v1921_v46 = vrot.slane %v1907_v11, %v4365_v17  ;;  %v1393_v15 = vrot.slane %v1379_v50, %v4365_v17 }
 0x17f   : > { %v1394_v37 = vcombine.high %v1386_v12, %v1386_v12  ;;  %v2102_v3 = vrot.slane %v2088_v58, %v4365_v17  ;;  %3863 = vst.sshfl [vmem:[#allocation2 + $0x178] sm:$0x3 pattern:$0x76325410] %v1378_v57  ;;  %v1396_v19 = vcombine.high %v722_v13, %v722_v13  ;;  %v1403_v31 = vrot.slane %v722_v13, %v4365_v17 }
 0x180   : > { %v3273_v20 = vadd.f32 %v4573_v33, %v3236_v39  ;;  %v3304_v9 = vmax.f32 %v3272_v48, 0.0  ;;  %v1922_v45 = vcombine.low %v1914_v22, %v1921_v46  ;;  %2334 = vst [vmem:[#allocation2 + $0x179] sm:$0x1] %v4620_v63  ;;  %v1395_v25 = vcombine.high %v1393_v15, %v1393_v15 }
 0x181   : > { %v2111_v51 = vcombine.low %v1386_v12, %v1394_v37  ;;  %v2103_v27 = vcombine.low %v2095_v54, %v2102_v3  ;;  %v1410_v2 = vrot.slane %v1396_v19, %v4365_v17  ;;  %v1411_v56 = vcombine.high %v1403_v31, %v1403_v31 }
 0x182   : > { %v3305_v32 = vmax.f32 %v3273_v20, 0.0  ;;  %v3336_v50 = vmin.f32 %v3304_v9, 6.0  ;;  %2280 = vst [vmem:[#allocation2 + $0x108] sm:$0xff] %v1922_v45  ;;  %v2112_v33 = vcombine.low %v1393_v15, %v1395_v25  ;;  %v711_v10 = vmax.f32 %v624_v4, 0.0  ;;  %v5017_v45 = vld [vmem:[#allocation2 + $0xb0] sm:$0xff] }
 0x183   : > { %v2119_v60 = vrot.slane %v2111_v51, %v4365_v17  ;;  %2312 = vst [vmem:[#allocation2 + $0x108] sm:$0x1] %v4620_v63  ;;  %2293 = vst [vmem:[#allocation2 + $0x170] sm:$0xff] %v2103_v27  ;;  %v1412_v13 = vcombine.high %v1410_v2, %v1410_v2  ;;  %v2128_v29 = vcombine.low %v1403_v31, %v1411_v56  ;;  %v5028_v27 = vld [vmem:[#allocation2 + $0xb1] sm:$0xff] }
 0x184   : > { %v3337_v7 = vmin.f32 %v3305_v32, 6.0  ;;  %v1208_v43 = vcombine.high %v1206_v0, %v1206_v0  ;;  %v2126_v53 = vrot.slane %v2112_v33, %v4365_v17  ;;  %v1209_v5 = vcombine.high %v711_v10, %v711_v10 }
 0x185   : > { %v1216_v1 = vrot.slane %v711_v10, %v4365_v17  ;;  %v2396_v11 = vmul.f32 %v4875_v21, %v4891_v38  ;;  %v2129_v12 = vcombine.low %v1410_v2, %v1412_v13  ;;  %v2136_v39 = vrot.slane %v2128_v29, %v4365_v17  ;;  %v5030_v2 = vld [vmem:[#allocation2 + $0xaa] sm:$0xff]  ;;  %v5037_v10 = vld [vmem:[#allocation2 + $0xb2] sm:$0xff]  ;;  %v5044_v13 = vld [vmem:[%s5759_s4 + $0x6] ss:$0 sm:$0xff] }
 0x186   : > { %v3364_v22 = vpack.c.bf16 %v3337_v7, %v3336_v50  ;;  %v2496_v4 = vmul.f32 %v4883_v30, %v4798_v44  ;;  %v2127_v57 = vcombine.low %v2119_v60, %v2126_v53  ;;  %v1223_v58 = vrot.slane %v1209_v5, %v4365_v17  ;;  %v5053_v53 = vld [vmem:[%s5759_s4 + $0x7] ss:$0 sm:$0xff] }
 0x187   : > { %v1224_v54 = vcombine.high %v1216_v1, %v1216_v1  ;;  %v1923_v0 = vcombine.low %v1208_v43, %v1216_v1  ;;  %v2143_v48 = vrot.slane %v2129_v12, %v4365_v17  ;;  %v2497_v46 = vmul.f32 %v4883_v30, %v4800_v35  ;;  %v5062_v12 = vld [vmem:[%s5759_s4 + $0x8] ss:$0 sm:$0xff] }
 0x188   : > { %4045 = vmatprep.mubr.bf16.mxu1 %v3364_v22  ;;  %v2528_v38 = vadd.f32 %v2496_v4, %v4976_v8  ;;  %v2597_v15 = vmul.f32 %v4896_v23, %v4809_v34  ;;  %2295 = vst [vmem:[#allocation2 + $0x180] sm:$0xff] %v2127_v57  ;;  %v1225_v37 = vcombine.high %v1223_v58, %v1223_v58  ;;  %v5015_v8 = vld [vmem:[#allocation2 + $0xa8] sm:$0xff] }
 0x189   : > { %v1924_v20 = vcombine.low %v1224_v54, %v1223_v58  ;;  %v1931_v44 = vrot.slane %v1923_v0, %v4365_v17  ;;  %v2598_v3 = vmul.f32 %v4896_v23, %v4811_v24  ;;  %2317 = vst [vmem:[#allocation2 + $0x180] sm:$0x1] %v4620_v63  ;;  %v2144_v19 = vcombine.low %v2136_v39, %v2143_v48  ;;  %v5019_v34 = vld [vmem:[#allocation2 + $0xa9] sm:$0xff] }
 0x18a   : > { %v2529_v31 = vadd.f32 %v2497_v46, %v2396_v11  ;;  %v2629_v9 = vadd.f32 %v2597_v15, %v2528_v38  ;;  %v2699_v35 = vmul.f32 %v4905_v14, %v4913_v61  ;;  %3859 = vst.sshfl [vmem:[#allocation2 + $0x118] sm:$0x3 pattern:$0x76325410] %v1225_v37  ;;  %v2700_v24 = vmul.f32 %v4905_v14, %v4915_v40 }
 0x18b   : > { %v1938_v25 = vrot.slane %v1924_v20, %v4365_v17  ;;  %v2800_v51 = vmul.f32 %v4924_v52, %v4917_v41  ;;  %v2801_v32 = vmul.f32 %v4924_v52, %v4930_v55  ;;  %2296 = vst [vmem:[#allocation2 + $0x188] sm:$0xff] %v2144_v19  ;;  %2330 = vst [vmem:[#allocation2 + $0x119] sm:$0x1] %v4620_v63 }
 0x18c   : > { %v2630_v56 = vadd.f32 %v2598_v3, %v2529_v31  ;;  %v2731_v50 = vadd.f32 %v2699_v35, %v2629_v9  ;;  %v2901_v33 = vmul.f32 %v4939_v42, %v4932_v18  ;;  %v2902_v60 = vmul.f32 %v4939_v42, %v4945_v26 }
 0x18d   : > { %v5039_v7 = vcombine.low %v1931_v44, %v1938_v25  ;;  %v3003_v29 = vmul.f32 %v5044_v13, %v5015_v8  ;;  %v3004_v43 = vmul.f32 %v5044_v13, %v5017_v45  ;;  %v3104_v5 = vmul.f32 %v5053_v53, %v5019_v34 }
 0x18e   : > { %v2732_v1 = vadd.f32 %v2700_v24, %v2630_v56  ;;  %v2832_v11 = vadd.f32 %v2800_v51, %v2731_v50  ;;  %v3105_v22 = vmul.f32 %v5053_v53, %v5028_v27  ;;  %v3205_v39 = vmul.f32 %v5062_v12, %v5030_v2 }
 0x18f   : > { %2281 = vst [vmem:[#allocation2 + $0x110] sm:$0xff] %v5039_v7  ;;  %v3206_v4 = vmul.f32 %v5062_v12, %v5037_v10  ;;  %v627_v57 = vadd.f32 %v4748_v16, %v4781_v6  ;;  %v672_v58 = vadd.f32 %v4748_v16, %v4577_v36  ;;  %v632_v54 = vadd.f32 %v4748_v16, %v4821_v62 }
 0x190   : > { %v2833_v0 = vadd.f32 %v2801_v32, %v2732_v1  ;;  %v2933_v48 = vadd.f32 %v2901_v33, %v2832_v11  ;;  %v675_v46 = vadd.f32 %v4748_v16, %v4583_v59  ;;  %v635_v38 = vadd.f32 %v4748_v16, %v4835_v49 }
 0x191   : > { %v712_v15 = vmax.f32 %v627_v57, 0.0  ;;  %v723_v37 = vmax.f32 %v672_v58, 0.0  ;;  %v713_v20 = vmax.f32 %v632_v54, 0.0  ;;  %v5081_v6 = vmul.f32 %v4875_v21, %v4913_v61  ;;  %v5093_v58 = vld [vmem:[%s5758_s3 + $0x1] ss:$0 sm:$0xff] }
 0x192   : > { %v2934_v44 = vadd.f32 %v2902_v60, %v2833_v0  ;;  %v3035_v36 = vadd.f32 %v3003_v29, %v2933_v48  ;;  %v724_v3 = vmax.f32 %v675_v46, 0.0  ;;  %v714_v19 = vmax.f32 %v635_v38, 0.0 }
 0x193   : > { %v1226_v62 = vcombine.high %v712_v15, %v712_v15  ;;  %v1233_v31 = vrot.slane %v712_v15, %v4365_v17  ;;  %v1413_v9 = vcombine.high %v723_v37, %v723_v37  ;;  %v1420_v59 = vrot.slane %v723_v37, %v4365_v17 }
 0x194   : > { %v3036_v35 = vadd.f32 %v3004_v43, %v2934_v44  ;;  %v3136_v25 = vadd.f32 %v3104_v5, %v3035_v36  ;;  %v1243_v49 = vcombine.high %v713_v20, %v713_v20  ;;  %v1250_v24 = vrot.slane %v713_v20, %v4365_v17 }
 0x195   : > { %v1240_v51 = vrot.slane %v1226_v62, %v4365_v17  ;;  %v1241_v32 = vcombine.high %v1233_v31, %v1233_v31  ;;  %v1427_v61 = vrot.slane %v1413_v9, %v4365_v17  ;;  %v1428_v56 = vcombine.high %v1420_v59, %v1420_v59  ;;  %3864 = vst.sshfl [vmem:[#allocation2 + $0x190] sm:$0x3 pattern:$0x76325410] %v1420_v59 }
 0x196   : > { %v3137_v50 = vadd.f32 %v3105_v22, %v3036_v35  ;;  %v3237_v33 = vadd.f32 %v3205_v39, %v3136_v25  ;;  %2335 = vst [vmem:[#allocation2 + $0x191] sm:$0x1] %v4620_v63  ;;  %v1257_v60 = vrot.slane %v1243_v49, %v4365_v17  ;;  %v1258_v29 = vcombine.high %v1250_v24, %v1250_v24 }
 0x197   : > { %v1242_v1 = vcombine.high %v1240_v51, %v1240_v51  ;;  %v1947_v43 = vcombine.low %v1233_v31, %v1241_v32  ;;  %v2152_v5 = vcombine.low %v1428_v56, %v1427_v61  ;;  %v1429_v11 = vcombine.high %v1427_v61, %v1427_v61  ;;  %v5110_v61 = vld [vmem:[#allocation2 + $0x8] sm:$0xff] }
 0x198   : > { %v3238_v57 = vadd.f32 %v3206_v4, %v3137_v50  ;;  %v3274_v54 = vadd.f32 %v5093_v58, %v3237_v33  ;;  %v1259_v0 = vcombine.high %v1257_v60, %v1257_v60  ;;  %v1964_v22 = vcombine.low %v1250_v24, %v1258_v29 }
 0x199   : > { %v1948_v39 = vcombine.low %v1240_v51, %v1242_v1  ;;  %v1955_v63 = vrot.slane %v1947_v43, %v4365_v17  ;;  %v2160_v48 = vrot.slane %v2152_v5, %v4365_v17  ;;  %v1437_v46 = vrot.slane %v724_v3, %v4365_v17  ;;  %v5124_v5 = vld [vmem:[#allocation2 + $0xc0] sm:$0xff] }
 0x19a   : > { %v3275_v38 = vadd.f32 %v5093_v58, %v3238_v57  ;;  %v3306_v15 = vmax.f32 %v3274_v54, 0.0  ;;  %v1965_v4 = vcombine.low %v1257_v60, %v1259_v0  ;;  %v1972_v37 = vrot.slane %v1964_v22, %v4365_v17  ;;  %v5132_v54 = vld [vmem:[#allocation2 + $0xc8] sm:$0xff] }
 0x19b   : > { %v1962_v20 = vrot.slane %v1948_v39, %v4365_v17  ;;  %v2153_v44 = vcombine.low %v1429_v11, %v1437_v46  ;;  %v1260_v36 = vcombine.high %v714_v19, %v714_v19  ;;  %v1267_v62 = vrot.slane %v714_v19, %v4365_v17  ;;  %v5140_v39 = vld [vmem:[#allocation2 + $0xc9] sm:$0xff] }
 0x19c   : > { %v3307_v31 = vmax.f32 %v3275_v38, 0.0  ;;  %v3338_v9 = vmin.f32 %v3306_v15, 6.0  ;;  %v1979_v59 = vrot.slane %v1965_v4, %v4365_v17  ;;  %v2398_v35 = vmul.f32 %v4875_v21, %v4915_v40 }
 0x19d   : > { %v1963_v3 = vcombine.low %v1955_v63, %v1962_v20  ;;  %v2167_v25 = vrot.slane %v2153_v44, %v4365_v17  ;;  %v1274_v49 = vrot.slane %v1260_v36, %v4365_v17  ;;  %v1275_v24 = vcombine.high %v1267_v62, %v1267_v62  ;;  %3860 = vst.sshfl [vmem:[#allocation2 + $0x130] sm:$0x3 pattern:$0x76325410] %v1267_v62  ;;  %v5142_v63 = vld [vmem:[#allocation2 + $0xc2] sm:$0xff] }
 0x19e   : > { %v3339_v51 = vmin.f32 %v3307_v31, 6.0  ;;  %v5108_v32 = vcombine.low %v1972_v37, %v1979_v59  ;;  %2331 = vst [vmem:[#allocation2 + $0x131] sm:$0x1] %v5110_v61  ;;  %v2498_v19 = vmul.f32 %v4883_v30, %v4917_v41  ;;  %v2499_v40 = vmul.f32 %v4883_v30, %v4930_v55 }
 0x19f   : > { %2283 = vst [vmem:[#allocation2 + $0x120] sm:$0xff] %v1963_v3  ;;  %v2168_v56 = vcombine.low %v2160_v48, %v2167_v25  ;;  %v1276_v50 = vcombine.high %v1274_v49, %v1274_v49  ;;  %v1988_v33 = vcombine.low %v1275_v24, %v1274_v49  ;;  %v2599_v60 = vmul.f32 %v4896_v23, %v4932_v18  ;;  %v5144_v48 = vld [vmem:[#allocation2 + $0xca] sm:$0xff] }
 0x1a0   : > { %v3365_v29 = vpack.c.bf16 %v3339_v51, %v3338_v9  ;;  %2313 = vst [vmem:[#allocation2 + $0x120] sm:$0x1] %v5110_v61  ;;  %2284 = vst [vmem:[#allocation2 + $0x128] sm:$0xff] %v5108_v32  ;;  %v2530_v1 = vadd.f32 %v2498_v19, %v5081_v6  ;;  %v2531_v43 = vadd.f32 %v2499_v40, %v2398_v35  ;;  %v5134_v6 = vld [vmem:[#allocation2 + $0xc1] sm:$0xff]  ;;  %v5767_v25 = vld [vmem:[#allocation3_spill] sm:$0xff] }
 0x1a1   : > { %v2600_v41 = vmul.f32 %v4896_v23, %v4945_v26  ;;  %2298 = vst [vmem:[#allocation2 + $0x198] sm:$0xff] %v2168_v56  ;;  %v1989_v55 = vcombine.low %v1276_v50, %v4383_v47  ;;  %v1996_v11 = vrot.slane %v1988_v33, %v4365_v17  ;;  %v2701_v18 = vmul.f32 %v4905_v14, %v5015_v8 }
 0x1a2   : > { %v2702_v57 = vmul.f32 %v4905_v14, %v5017_v45  ;;  %4046 = vmatmul.mubr.bf16.gmra.mrb[32].mxu1 %v3365_v29  ;;  %v2631_v0 = vadd.f32 %v2599_v60, %v2530_v1  ;;  %v2802_v22 = vmul.f32 %v4924_v52, %v5019_v34  ;;  %v2803_v47 = vmul.f32 %v4924_v52, %v5028_v27 }
 0x1a3   : > { %v2632_v26 = vadd.f32 %v2600_v41, %v2531_v43  ;;  %2345 = vst [vmem:[#allocation2 + $0x198] sm:$0xff] %v5110_v61  ;;  %v2003_v46 = vrot.slane %v1989_v55, %v4365_v17  ;;  %v2903_v38 = vmul.f32 %v4939_v42, %v5030_v2  ;;  %v2904_v15 = vmul.f32 %v4939_v42, %v5037_v10  ;;  %v5186_v41 = vld [vmem:[#allocation2 + $0xd8] sm:$0xff]  ;;  %v5188_v55 = vld [vmem:[#allocation2 + $0xe0] sm:$0xff] }
 0x1a4   : > { %v3005_v4 = vmul.f32 %v5044_v13, %v5124_v5  ;;  %v2733_v37 = vadd.f32 %v2701_v18, %v2631_v0  ;;  %v3006_v44 = vmul.f32 %v5044_v13, %v5132_v54  ;;  %v3106_v36 = vmul.f32 %v5053_v53, %v5134_v6  ;;  %v5194_v0 = vld [vmem:[#allocation2 + $0xd9] sm:$0xff] }
 0x1a5   : > { %v2734_v20 = vadd.f32 %v2702_v57, %v2632_v26  ;;  %v2004_v62 = vcombine.low %v1996_v11, %v2003_v46  ;;  %v3107_v31 = vmul.f32 %v5053_v53, %v5140_v39  ;;  %v3207_v9 = vmul.f32 %v5062_v12, %v5142_v63  ;;  %v5196_v26 = vld [vmem:[#allocation2 + $0xe1] sm:$0xff] }
 0x1a6   : > { %v3208_v59 = vmul.f32 %v5062_v12, %v5144_v48  ;;  %v2834_v35 = vadd.f32 %v2802_v22, %v2733_v37  ;;  %v680_v49 = vadd.f32 %v4748_v16, %v5767_v25  ;;  %v2399_v24 = vmul.f32 %v4875_v21, %v5015_v8 }
 0x1a7   : > { %v2835_v3 = vadd.f32 %v2803_v47, %v2734_v20  ;;  %2286 = vst [vmem:[#allocation2 + $0x138] sm:$0xff] %v2004_v62  ;;  %v2400_v51 = vmul.f32 %v4875_v21, %v5017_v45  ;;  %v2500_v19 = vmul.f32 %v4883_v30, %v5019_v34  ;;  %v2501_v40 = vmul.f32 %v4883_v30, %v5028_v27 }
 0x1a8   : > { %v2601_v56 = vmul.f32 %v4896_v23, %v5030_v2  ;;  %2314 = vst [vmem:[#allocation2 + $0x138] sm:$0x1] %v5110_v61  ;;  %v2935_v50 = vadd.f32 %v2903_v38, %v2834_v35  ;;  %v725_v33 = vmax.f32 %v680_v49, 0.0  ;;  %v2602_v8 = vmul.f32 %v4896_v23, %v5037_v10  ;;  %v5200_v38 = vld [vmem:[#allocation2 + $0xda] sm:$0xff] }
 0x1a9   : > { %v2936_v16 = vadd.f32 %v2904_v15, %v2835_v3  ;;  %v2532_v60 = vadd.f32 %v2500_v19, %v2399_v24  ;;  %v2533_v29 = vadd.f32 %v2501_v40, %v2400_v51  ;;  %v2703_v45 = vmul.f32 %v4905_v14, %v5124_v5  ;;  %v5202_v15 = vld [vmem:[#allocation2 + $0xe2] sm:$0xff] }
 0x1aa   : > { %v2704_v34 = vmul.f32 %v4905_v14, %v5132_v54  ;;  %v3037_v27 = vadd.f32 %v3005_v4, %v2935_v50  ;;  %v1453_v2 = vrot.slane %v725_v33, %v4365_v17  ;;  %v2804_v43 = vmul.f32 %v4924_v52, %v5134_v6 }
 0x1ab   : > { %v3038_v1 = vadd.f32 %v3006_v44, %v2936_v16  ;;  %v2633_v10 = vadd.f32 %v2601_v56, %v2532_v60  ;;  %v2634_v11 = vadd.f32 %v2602_v8, %v2533_v29  ;;  %v2805_v18 = vmul.f32 %v4924_v52, %v5140_v39 }
 0x1ac   : > { %v2905_v57 = vmul.f32 %v4939_v42, %v5142_v63  ;;  %v3138_v17 = vadd.f32 %v3106_v36, %v3037_v27  ;;  %v1454_v47 = vcombine.high %v1453_v2, %v1453_v2  ;;  %v2906_v46 = vmul.f32 %v4939_v42, %v5144_v48 }
 0x1ad   : > { %v3139_v22 = vadd.f32 %v3107_v31, %v3038_v1  ;;  %v2735_v4 = vadd.f32 %v2703_v45, %v2633_v10  ;;  %v2736_v37 = vadd.f32 %v2704_v34, %v2634_v11  ;;  %v3007_v20 = vmul.f32 %v5044_v13, %v5186_v41 }
 0x1ae   : > { %v3008_v44 = vmul.f32 %v5044_v13, %v5188_v55  ;;  %v3239_v62 = vadd.f32 %v3207_v9, %v3138_v17  ;;  %3865 = vst.sshfl [vmem:[#allocation2 + $0x1a8] sm:$0x3 pattern:$0x76325410] %v1454_v47  ;;  %v3108_v36 = vmul.f32 %v5053_v53, %v5194_v0  ;;  %v3109_v31 = vmul.f32 %v5053_v53, %v5196_v26 }
 0x1af   : > { %v3240_v35 = vadd.f32 %v3208_v59, %v3139_v22  ;;  %2336 = vst [vmem:[#allocation2 + $0x1a9] sm:$0x1] %v5110_v61  ;;  %v2836_v3 = vadd.f32 %v2804_v43, %v2735_v4  ;;  %v2837_v25 = vadd.f32 %v2805_v18, %v2736_v37  ;;  %v3209_v49 = vmul.f32 %v5062_v12, %v5200_v38  ;;  %v5238_v18 = vld [vmem:[#allocation2 + $0xf1] sm:$0xff] }
 0x1b0   : > { %v3210_v24 = vmul.f32 %v5062_v12, %v5202_v15  ;;  %v3276_v9 = vadd.f32 %v5093_v58, %v3239_v62  ;;  %2347 = vst [vmem:[#allocation2 + $0x1a8] sm:$0x3] %v5110_v61  ;;  %v2401_v51 = vmul.f32 %v4875_v21, %v5124_v5  ;;  %v2402_v19 = vmul.f32 %v4875_v21, %v5132_v54  ;;  %v5250_v62 = vld [vmem:[#allocation2 + $0xfa] sm:$0xff] }
 0x1b1   : > { %v3277_v59 = vadd.f32 %v5093_v58, %v3240_v35  ;;  %v2937_v40 = vadd.f32 %v2905_v57, %v2836_v3  ;;  %v2938_v56 = vadd.f32 %v2906_v46, %v2837_v25  ;;  %v2502_v50 = vmul.f32 %v4883_v30, %v5134_v6 }
 0x1b2   : > { %v2503_v16 = vmul.f32 %v4883_v30, %v5140_v39  ;;  %v3308_v33 = vmax.f32 %v3276_v9, 0.0  ;;  %v2603_v60 = vmul.f32 %v4896_v23, %v5142_v63  ;;  %v2604_v29 = vmul.f32 %v4896_v23, %v5144_v48  ;;  %v5236_v63 = vld [vmem:[#allocation2 + $0xf0] sm:$0xff] }
 0x1b3   : > { %v3309_v8 = vmax.f32 %v3277_v59, 0.0  ;;  %v3039_v5 = vadd.f32 %v3007_v20, %v2937_v40  ;;  %v3040_v45 = vadd.f32 %v3008_v44, %v2938_v56  ;;  %v2534_v34 = vadd.f32 %v2502_v50, %v2401_v51  ;;  %v5246_v20 = vld [vmem:[#allocation2 + $0xf9] sm:$0xff] }
 0x1b4   : > { %v2535_v54 = vadd.f32 %v2503_v16, %v2402_v19  ;;  %v3340_v27 = vmin.f32 %v3308_v33, 6.0  ;;  %v2705_v6 = vmul.f32 %v4905_v14, %v5186_v41  ;;  %v2706_v39 = vmul.f32 %v4905_v14, %v5188_v55  ;;  %v5248_v44 = vld [vmem:[#allocation2 + $0xf2] sm:$0xff] }
 0x1b5   : > { %v3341_v1 = vmin.f32 %v3309_v8, 6.0  ;;  %v3140_v2 = vadd.f32 %v3108_v36, %v3039_v5  ;;  %v3141_v43 = vadd.f32 %v3109_v31, %v3040_v45  ;;  %v2635_v10 = vadd.f32 %v2603_v60, %v2534_v34  ;;  %v2671_v5 = vld [vmem:[#allocation2 + $0xf8] sm:$0xff] }
 0x1b6   : > { %v2636_v11 = vadd.f32 %v2604_v29, %v2535_v54  ;;  %v2806_v57 = vmul.f32 %v4924_v52, %v5194_v0  ;;  %v2807_v17 = vmul.f32 %v4924_v52, %v5196_v26  ;;  %v2907_v22 = vmul.f32 %v4939_v42, %v5200_v38 }
 0x1b7   : > { %v3366_v48 = vpack.c.bf16 %v3341_v1, %v3340_v27  ;;  %v3241_v47 = vadd.f32 %v3209_v49, %v3140_v2  ;;  %v3242_v46 = vadd.f32 %v3210_v24, %v3141_v43  ;;  %v2737_v4 = vadd.f32 %v2705_v6, %v2635_v10  ;;  %v5283_v43 = vld [vmem:[#allocation2 + $0x108] sm:$0xff] }
 0x1b8   : > { %v2738_v37 = vadd.f32 %v2706_v39, %v2636_v11  ;;  %v2908_v35 = vmul.f32 %v4939_v42, %v5202_v15  ;;  %v3009_v36 = vmul.f32 %v5044_v13, %v5236_v63  ;;  %v3010_v31 = vmul.f32 %v5044_v13, %v4909_v28 }
 0x1b9   : > { %4049 = vmatprep.mubr.bf16.mxu1 %v3366_v48  ;;  %v3110_v3 = vmul.f32 %v5053_v53, %v5238_v18  ;;  %v3278_v25 = vadd.f32 %v5093_v58, %v3241_v47  ;;  %v3279_v49 = vadd.f32 %v5093_v58, %v3242_v46  ;;  %v2838_v24 = vadd.f32 %v2806_v57, %v2737_v4  ;;  %v5289_v57 = vld [vmem:[#allocation2 + $0x109] sm:$0xff] }
 0x1ba   : > { %v2839_v9 = vadd.f32 %v2807_v17, %v2738_v37  ;;  %v3111_v59 = vmul.f32 %v5053_v53, %v5246_v20  ;;  %v3211_v51 = vmul.f32 %v5062_v12, %v5248_v44  ;;  %v3212_v19 = vmul.f32 %v5062_v12, %v5250_v62  ;;  %v5297_v4 = vld [vmem:[#allocation2 + $0x10a] sm:$0xff]  ;;  %v5299_v37 = vld [vmem:[#allocation2 + $0x112] sm:$0xff] }
 0x1bb   : > { %v2403_v28 = vmul.f32 %v4875_v21, %v5186_v41  ;;  %v3310_v40 = vmax.f32 %v3278_v25, 0.0  ;;  %v3311_v56 = vmax.f32 %v3279_v49, 0.0  ;;  %v2939_v50 = vadd.f32 %v2907_v22, %v2838_v24 }
 0x1bc   : > { %v2940_v16 = vadd.f32 %v2908_v35, %v2839_v9  ;;  %v2404_v33 = vmul.f32 %v4875_v21, %v5188_v55  ;;  %v2504_v8 = vmul.f32 %v4883_v30, %v5194_v0  ;;  %v2505_v60 = vmul.f32 %v4883_v30, %v5196_v26 }
 0x1bd   : > { %v2605_v29 = vmul.f32 %v4896_v23, %v5200_v38  ;;  %v3342_v45 = vmin.f32 %v3310_v40, 6.0  ;;  %v3343_v34 = vmin.f32 %v3311_v56, 6.0  ;;  %v3041_v41 = vadd.f32 %v3009_v36, %v2939_v50 }
 0x1be   : > { %v3042_v54 = vadd.f32 %v3010_v31, %v2940_v16  ;;  %v2536_v27 = vadd.f32 %v2504_v8, %v2403_v28  ;;  %v2537_v1 = vadd.f32 %v2505_v60, %v2404_v33  ;;  %v2606_v6 = vmul.f32 %v4896_v23, %v5202_v15  ;;  %v5291_v15 = vld [vmem:[#allocation2 + $0x111] sm:$0xff] }
 0x1bf   : > { %v2707_v55 = vmul.f32 %v4905_v14, %v5236_v63  ;;  %v3367_v0 = vpack.c.bf16 %v3343_v34, %v3342_v45  ;;  %v3142_v39 = vadd.f32 %v3110_v3, %v3041_v41  ;;  %v2708_v26 = vmul.f32 %v4905_v14, %v2671_v5 }
 0x1c0   : > { %v3143_v2 = vadd.f32 %v3111_v59, %v3042_v54  ;;  %v2637_v38 = vadd.f32 %v2605_v29, %v2536_v27  ;;  %v2638_v10 = vadd.f32 %v2606_v6, %v2537_v1  ;;  %v2808_v11 = vmul.f32 %v4924_v52, %v5238_v18  ;;  %v5326_v6 = vld [vmem:[#allocation2 + $0x120] sm:$0xff] }
 0x1c1   : > { %v2809_v48 = vmul.f32 %v4924_v52, %v5246_v20  ;;  %4050 = vmatmul.mubr.bf16.gmra.mrb[36].mxu1 %v3367_v0  ;;  %v3243_v17 = vadd.f32 %v3211_v51, %v3142_v39  ;;  %v2909_v47 = vmul.f32 %v4939_v42, %v5248_v44  ;;  %v2910_v46 = vmul.f32 %v4939_v42, %v5250_v62 }
 0x1c2   : > { %v3244_v22 = vadd.f32 %v3212_v19, %v3143_v2  ;;  %v2739_v35 = vadd.f32 %v2707_v55, %v2637_v38  ;;  %v2740_v36 = vadd.f32 %v2708_v26, %v2638_v10  ;;  %v3011_v31 = vmul.f32 %v5044_v13, %v5283_v43  ;;  %v5334_v26 = vld [vmem:[#allocation2 + $0x121] sm:$0xff]  ;;  %v5336_v38 = vld [vmem:[#allocation2 + $0x129] sm:$0xff] }
 0x1c3   : > { %v3012_v3 = vmul.f32 %v5044_v13, %v5039_v7  ;;  %v3280_v25 = vadd.f32 %v5093_v58, %v3243_v17  ;;  %v3112_v24 = vmul.f32 %v5053_v53, %v5289_v57  ;;  %v3113_v9 = vmul.f32 %v5053_v53, %v5291_v15  ;;  %v5338_v10 = vld [vmem:[#allocation2 + $0x122] sm:$0xff] }
 0x1c4   : > { %v3281_v49 = vadd.f32 %v5093_v58, %v3244_v22  ;;  %v2840_v59 = vadd.f32 %v2808_v11, %v2739_v35  ;;  %v2841_v51 = vadd.f32 %v2809_v48, %v2740_v36  ;;  %v3213_v19 = vmul.f32 %v5062_v12, %v5297_v4 }
 0x1c5   : > { %v3214_v28 = vmul.f32 %v5062_v12, %v5299_v37  ;;  %v3312_v40 = vmax.f32 %v3280_v25, 0.0  ;;  %v2405_v50 = vmul.f32 %v4875_v21, %v5236_v63  ;;  %v2406_v16 = vmul.f32 %v4875_v21, %v2671_v5 }
 0x1c6   : > { %v3313_v56 = vmax.f32 %v3281_v49, 0.0  ;;  %v2941_v33 = vadd.f32 %v2909_v47, %v2840_v59  ;;  %v2942_v8 = vadd.f32 %v2910_v46, %v2841_v51  ;;  %v2506_v60 = vmul.f32 %v4883_v30, %v5238_v18 }
 0x1c7   : > { %v2507_v29 = vmul.f32 %v4883_v30, %v5246_v20  ;;  %v3344_v45 = vmin.f32 %v3312_v40, 6.0  ;;  %v2607_v41 = vmul.f32 %v4896_v23, %v5248_v44  ;;  %v2608_v54 = vmul.f32 %v4896_v23, %v5250_v62 }
 0x1c8   : > { %v3345_v34 = vmin.f32 %v3313_v56, 6.0  ;;  %v3043_v27 = vadd.f32 %v3011_v31, %v2941_v33  ;;  %v3044_v63 = vadd.f32 %v3012_v3, %v2942_v8  ;;  %v2538_v1 = vadd.f32 %v2506_v60, %v2405_v50  ;;  %v5348_v31 = vld [vmem:[#allocation2 + $0x12a] sm:$0xff] }
 0x1c9   : > { %v2539_v5 = vadd.f32 %v2507_v29, %v2406_v16  ;;  %v2709_v18 = vmul.f32 %v4905_v14, %v5283_v43  ;;  %v2710_v20 = vmul.f32 %v4905_v14, %v5039_v7  ;;  %v2810_v0 = vmul.f32 %v4924_v52, %v5289_v57 }
 0x1ca   : > { %v3368_v55 = vpack.c.bf16 %v3345_v34, %v3344_v45  ;;  %v3144_v44 = vadd.f32 %v3112_v24, %v3043_v27  ;;  %v3145_v39 = vadd.f32 %v3113_v9, %v3044_v63  ;;  %v2639_v2 = vadd.f32 %v2607_v41, %v2538_v1 }
 0x1cb   : > { %v2640_v62 = vadd.f32 %v2608_v54, %v2539_v5  ;;  %v2811_v11 = vmul.f32 %v4924_v52, %v5291_v15  ;;  %v2911_v48 = vmul.f32 %v4939_v42, %v5297_v4  ;;  %v2912_v17 = vmul.f32 %v4939_v42, %v5299_v37 }
 0x1cc   : > { %4053 = vmatprep.mubr.bf16.mxu1 %v3368_v55  ;;  %v3013_v22 = vmul.f32 %v5044_v13, %v5326_v6  ;;  %v3245_v47 = vadd.f32 %v3213_v19, %v3144_v44  ;;  %v3246_v46 = vadd.f32 %v3214_v28, %v3145_v39  ;;  %v2741_v35 = vadd.f32 %v2709_v18, %v2639_v2  ;;  %v5388_v44 = vld [vmem:[#allocation2 + $0x13a] sm:$0xff] }
 0x1cd   : > { %v2742_v36 = vadd.f32 %v2710_v20, %v2640_v62  ;;  %v3014_v3 = vmul.f32 %v5044_v13, %v5108_v32  ;;  %v3114_v25 = vmul.f32 %v5053_v53, %v5334_v26  ;;  %v3115_v49 = vmul.f32 %v5053_v53, %v5336_v38  ;;  %v5392_v62 = vld [vmem:[#allocation2 + $0x140] sm:$0xff] }
 0x1ce   : > { %v3215_v24 = vmul.f32 %v5062_v12, %v5338_v10  ;;  %v3282_v9 = vadd.f32 %v5093_v58, %v3245_v47  ;;  %v3283_v59 = vadd.f32 %v5093_v58, %v3246_v46  ;;  %v2842_v51 = vadd.f32 %v2810_v0, %v2741_v35  ;;  %v5400_v47 = vld [vmem:[#allocation2 + $0x141] sm:$0xff] }
 0x1cf   : > { %v2843_v19 = vadd.f32 %v2811_v11, %v2742_v36  ;;  %v3216_v28 = vmul.f32 %v5062_v12, %v5348_v31  ;;  %v2407_v40 = vmul.f32 %v4875_v21, %v5283_v43  ;;  %v2408_v56 = vmul.f32 %v4875_v21, %v5039_v7 }
 0x1d0   : > { %v2508_v50 = vmul.f32 %v4883_v30, %v5289_v57  ;;  %v3314_v16 = vmax.f32 %v3282_v9, 0.0  ;;  %v3315_v33 = vmax.f32 %v3283_v59, 0.0  ;;  %v2943_v8 = vadd.f32 %v2911_v48, %v2842_v51  ;;  %v5396_v48 = vld [vmem:[#allocation2 + $0x142] sm:$0xff]  ;;  %v5415_v9 = vld [vmem:[%s5759_s4] ss:$0 sm:$0xff] }
 0x1d1   : > { %v2944_v60 = vadd.f32 %v2912_v17, %v2843_v19  ;;  %v2509_v29 = vmul.f32 %v4883_v30, %v5291_v15  ;;  %v2609_v34 = vmul.f32 %v4896_v23, %v5297_v4  ;;  %v2610_v43 = vmul.f32 %v4896_v23, %v5299_v37  ;;  %v5378_v30 = vld [vmem:[#allocation2 + $0x138] sm:$0xff] }
 0x1d2   : > { %v2540_v45 = vadd.f32 %v2508_v50, %v2407_v40  ;;  %v3346_v41 = vmin.f32 %v3314_v16, 6.0  ;;  %v3347_v54 = vmin.f32 %v3315_v33, 6.0  ;;  %v3045_v21 = vadd.f32 %v3013_v22, %v2943_v8  ;;  %v5382_v37 = vld [vmem:[#allocation2 + $0x139] sm:$0xff]  ;;  %v5424_v40 = vld [vmem:[%s5759_s4 + $0x1] ss:$0 sm:$0xff] }
 0x1d3   : > { %v3046_v7 = vadd.f32 %v3014_v3, %v2944_v60  ;;  %v2541_v27 = vadd.f32 %v2509_v29, %v2408_v56  ;;  %v2711_v63 = vmul.f32 %v4905_v14, %v5326_v6  ;;  %v2712_v1 = vmul.f32 %v4905_v14, %v5108_v32 }
 0x1d4   : > { %v2641_v57 = vadd.f32 %v2609_v34, %v2540_v45  ;;  %v3369_v15 = vpack.c.bf16 %v3347_v54, %v3346_v41  ;;  %v3146_v5 = vadd.f32 %v3114_v25, %v3045_v21  ;;  %v2812_v23 = vmul.f32 %v4924_v52, %v5334_v26 }
 0x1d5   : > { %v3147_v4 = vadd.f32 %v3115_v49, %v3046_v7  ;;  %v2642_v55 = vadd.f32 %v2610_v43, %v2541_v27  ;;  %v2813_v20 = vmul.f32 %v4924_v52, %v5336_v38  ;;  %v2913_v0 = vmul.f32 %v4939_v42, %v5338_v10 }
 0x1d6   : > { %v2743_v18 = vadd.f32 %v2711_v63, %v2641_v57  ;;  %4054 = vmatmul.mubr.bf16.gmra.mrb[40].mxu1 %v3369_v15  ;;  %v3247_v14 = vadd.f32 %v3215_v24, %v3146_v5  ;;  %v2914_v2 = vmul.f32 %v4939_v42, %v5348_v31  ;;  %v3015_v11 = vmul.f32 %v5044_v13, %v5378_v30  ;;  %v5457_v15 = vld [vmem:[#allocation2 + $0x150] sm:$0xff] }
 0x1d7   : > { %v3248_v39 = vadd.f32 %v3216_v28, %v3147_v4  ;;  %v2744_v17 = vadd.f32 %v2712_v1, %v2642_v55  ;;  %v3016_v22 = vmul.f32 %v5044_v13, %v5392_v62  ;;  %v3116_v46 = vmul.f32 %v5053_v53, %v5382_v37  ;;  %v5459_v5 = vld [vmem:[#allocation2 + $0x152] sm:$0xff] }
 0x1d8   : > { %v2844_v52 = vadd.f32 %v2812_v23, %v2743_v18  ;;  %v3284_v35 = vadd.f32 %v5093_v58, %v3247_v14  ;;  %v3117_v36 = vmul.f32 %v5053_v53, %v5400_v47  ;;  %v3217_v3 = vmul.f32 %v5062_v12, %v5388_v44  ;;  %v5464_v23 = vld [vmem:[%s5759_s4 + $0x5] ss:$0 sm:$0xff] }
 0x1d9   : > { %v3285_v42 = vadd.f32 %v5093_v58, %v3248_v39  ;;  %v2845_v25 = vadd.f32 %v2813_v20, %v2744_v17  ;;  %v3218_v24 = vmul.f32 %v5062_v12, %v5396_v48  ;;  %v2409_v59 = vmul.f32 %v5415_v9, %v5326_v6  ;;  %v5433_v6 = vld [vmem:[%s5759_s4 + $0x2] ss:$0 sm:$0xff]  ;;  %v5470_v20 = vld [vmem:[#allocation2 + $0x158] sm:$0xff] }
 0x1da   : > { %v2945_v49 = vadd.f32 %v2913_v0, %v2844_v52  ;;  %v3316_v51 = vmax.f32 %v3284_v35, 0.0  ;;  %v2410_v28 = vmul.f32 %v5415_v9, %v5108_v32  ;;  %v2510_v56 = vmul.f32 %v5424_v40, %v5334_v26  ;;  %v5477_v17 = vld [vmem:[#allocation2 + $0x151] sm:$0xff]  ;;  %v5479_v52 = vld [vmem:[#allocation2 + $0x159] sm:$0xff] }
 0x1db   : > { %v3317_v19 = vmax.f32 %v3285_v42, 0.0  ;;  %v2946_v50 = vadd.f32 %v2914_v2, %v2845_v25  ;;  %v2511_v33 = vmul.f32 %v5424_v40, %v5336_v38  ;;  %v2611_v32 = vmul.f32 %v5433_v6, %v5338_v10  ;;  %v5442_v38 = vld [vmem:[%s5759_s4 + $0x3] ss:$0 sm:$0xff]  ;;  %v5485_v42 = vld [vmem:[#allocation2 + $0x15a] sm:$0xff] }
 0x1dc   : > { %v3047_v16 = vadd.f32 %v3015_v11, %v2945_v49  ;;  %v3348_v8 = vmin.f32 %v3316_v51, 6.0  ;;  %v2542_v29 = vadd.f32 %v2510_v56, %v2409_v59  ;;  %v2612_v45 = vmul.f32 %v5433_v6, %v5348_v31  ;;  %v5451_v31 = vld [vmem:[%s5759_s4 + $0x4] ss:$0 sm:$0xff] }
 0x1dd   : > { %v3349_v60 = vmin.f32 %v3317_v19, 6.0  ;;  %v3048_v26 = vadd.f32 %v3016_v22, %v2946_v50  ;;  %v2543_v43 = vadd.f32 %v2511_v33, %v2410_v28  ;;  %v2713_v41 = vmul.f32 %v5442_v38, %v5378_v30 }
 0x1de   : > { %v3148_v34 = vadd.f32 %v3116_v46, %v3047_v16  ;;  %v2643_v21 = vadd.f32 %v2611_v32, %v2542_v29  ;;  %v2714_v10 = vmul.f32 %v5442_v38, %v5392_v62  ;;  %v2814_v7 = vmul.f32 %v5451_v31, %v5382_v37 }
 0x1df   : > { %v3370_v54 = vpack.c.bf16 %v3349_v60, %v3348_v8  ;;  %v3149_v27 = vadd.f32 %v3117_v36, %v3048_v26  ;;  %v2644_v63 = vadd.f32 %v2612_v45, %v2543_v43  ;;  %v2815_v1 = vmul.f32 %v5451_v31, %v5400_v47 }
 0x1e0   : > { %v3249_v57 = vadd.f32 %v3217_v3, %v3148_v34  ;;  %v2745_v4 = vadd.f32 %v2713_v41, %v2643_v21  ;;  %v2915_v55 = vmul.f32 %v5464_v23, %v5388_v44  ;;  %v2916_v18 = vmul.f32 %v5464_v23, %v5396_v48  ;;  %v5510_v41 = vld [vmem:[#allocation2 + $0x170] sm:$0xff] }
 0x1e1   : > { %4057 = vmatprep.mubr.bf16.mxu1 %v3370_v54  ;;  %v3017_v0 = vmul.f32 %v5044_v13, %v5457_v15  ;;  %v3250_v14 = vadd.f32 %v3218_v24, %v3149_v27  ;;  %v2746_v2 = vadd.f32 %v2714_v10, %v2644_v63  ;;  %v3018_v11 = vmul.f32 %v5044_v13, %v5470_v20  ;;  %v5514_v10 = vld [vmem:[#allocation2 + $0x171] sm:$0xff] }
 0x1e2   : > { %v3286_v39 = vadd.f32 %v5093_v58, %v3249_v57  ;;  %v2846_v22 = vadd.f32 %v2814_v7, %v2745_v4  ;;  %v3118_v46 = vmul.f32 %v5053_v53, %v5477_v17  ;;  %v3119_v35 = vmul.f32 %v5053_v53, %v5479_v52  ;;  %v5522_v4 = vld [vmem:[#allocation2 + $0x172] sm:$0xff] }
 0x1e3   : > { %v3219_v36 = vmul.f32 %v5062_v12, %v5459_v5  ;;  %v3287_v3 = vadd.f32 %v5093_v58, %v3250_v14  ;;  %v2847_v49 = vadd.f32 %v2815_v1, %v2746_v2  ;;  %v3220_v24 = vmul.f32 %v5062_v12, %v5485_v42  ;;  %v5520_v1 = vld [vmem:[#allocation2 + $0x168] sm:$0xff] }
 0x1e4   : > { %v3318_v25 = vmax.f32 %v3286_v39, 0.0  ;;  %v2947_v59 = vadd.f32 %v2915_v55, %v2846_v22  ;;  %v2411_v51 = vmul.f32 %v5415_v9, %v5378_v30  ;;  %v2412_v19 = vmul.f32 %v5415_v9, %v5392_v62  ;;  %v5528_v39 = vld [vmem:[#allocation2 + $0x169] sm:$0xff] }
 0x1e5   : > { %v2512_v28 = vmul.f32 %v5424_v40, %v5382_v37  ;;  %v3319_v56 = vmax.f32 %v3287_v3, 0.0  ;;  %v2948_v16 = vadd.f32 %v2916_v18, %v2847_v49  ;;  %v2513_v33 = vmul.f32 %v5424_v40, %v5400_v47 }
 0x1e6   : > { %v3350_v50 = vmin.f32 %v3318_v25, 6.0  ;;  %v3049_v32 = vadd.f32 %v3017_v0, %v2947_v59  ;;  %v2613_v60 = vmul.f32 %v5433_v6, %v5388_v44  ;;  %v2614_v30 = vmul.f32 %v5433_v6, %v5396_v48 }
 0x1e7   : > { %v2544_v8 = vadd.f32 %v2512_v28, %v2411_v51  ;;  %v3351_v29 = vmin.f32 %v3319_v56, 6.0  ;;  %v3050_v45 = vadd.f32 %v3018_v11, %v2948_v16  ;;  %v2545_v62 = vadd.f32 %v2513_v33, %v2412_v19 }
 0x1e8   : > { %v2715_v37 = vmul.f32 %v5442_v38, %v5457_v15  ;;  %v3150_v26 = vadd.f32 %v3118_v46, %v3049_v32  ;;  %v2716_v43 = vmul.f32 %v5442_v38, %v5470_v20  ;;  %v2816_v47 = vmul.f32 %v5451_v31, %v5477_v17 }
 0x1e9   : > { %v2645_v34 = vadd.f32 %v2613_v60, %v2544_v8  ;;  %v3371_v44 = vpack.c.bf16 %v3351_v29, %v3350_v50  ;;  %v3151_v54 = vadd.f32 %v3119_v35, %v3050_v45  ;;  %v2646_v21 = vadd.f32 %v2614_v30, %v2545_v62  ;;  %v3184_v35 = vld [vmem:[#allocation2 + $0x16a] sm:$0xff] }
 0x1ea   : > { %v2817_v48 = vmul.f32 %v5451_v31, %v5479_v52  ;;  %v3251_v7 = vadd.f32 %v3219_v36, %v3150_v26  ;;  %v2917_v57 = vmul.f32 %v5464_v23, %v5459_v5  ;;  %v2918_v63 = vmul.f32 %v5464_v23, %v5485_v42 }
 0x1eb   : > { %v2747_v27 = vadd.f32 %v2715_v37, %v2645_v34  ;;  %4058 = vmatmul.mubr.bf16.gmra.mrb[44].mxu1 %v3371_v44  ;;  %v3252_v55 = vadd.f32 %v3220_v24, %v3151_v54  ;;  %v2748_v18 = vadd.f32 %v2716_v43, %v2646_v21  ;;  %v3019_v0 = vmul.f32 %v5044_v13, %v5520_v1  ;;  %v2984_v37 = vld [vmem:[#allocation2 + $0x180] sm:$0xff]  ;;  %v3086_v44 = vld [vmem:[#allocation2 + $0x189] sm:$0xff] }
 0x1ec   : > { %v3020_v14 = vmul.f32 %v5044_v13, %v5510_v41  ;;  %v3288_v2 = vadd.f32 %v5093_v58, %v3251_v7  ;;  %v3120_v22 = vmul.f32 %v5053_v53, %v5528_v39  ;;  %v3121_v46 = vmul.f32 %v5053_v53, %v5514_v10 }
 0x1ed   : > { %v2848_v11 = vadd.f32 %v2816_v47, %v2747_v27  ;;  %v3289_v36 = vadd.f32 %v5093_v58, %v3252_v55  ;;  %v2849_v3 = vadd.f32 %v2817_v48, %v2748_v18  ;;  %v3221_v25 = vmul.f32 %v5062_v12, %v3184_v35  ;;  %v3085_v47 = vld [vmem:[#allocation2 + $0x181] sm:$0xff] }
 0x1ee   : > { %v3222_v49 = vmul.f32 %v5062_v12, %v5522_v4  ;;  %v3320_v24 = vmax.f32 %v3288_v2, 0.0  ;;  %v2413_v51 = vmul.f32 %v5415_v9, %v5457_v15  ;;  %v2414_v19 = vmul.f32 %v5415_v9, %v5470_v20  ;;  %v3186_v27 = vld [vmem:[#allocation2 + $0x182] sm:$0xff] }
 0x1ef   : > { %v2949_v59 = vadd.f32 %v2917_v57, %v2848_v11  ;;  %v3321_v28 = vmax.f32 %v3289_v36, 0.0  ;;  %v2950_v56 = vadd.f32 %v2918_v63, %v2849_v3  ;;  %v2514_v50 = vmul.f32 %v5424_v40, %v5477_v17 }
 0x1f0   : > { %v2515_v16 = vmul.f32 %v5424_v40, %v5479_v52  ;;  %v3352_v33 = vmin.f32 %v3320_v24, 6.0  ;;  %v2615_v8 = vmul.f32 %v5433_v6, %v5459_v5  ;;  %v2616_v60 = vmul.f32 %v5433_v6, %v5485_v42  ;;  %v2985_v42 = vld [vmem:[#allocation2 + $0x188] sm:$0xff] }
 0x1f1   : > { %v3051_v32 = vadd.f32 %v3019_v0, %v2949_v59  ;;  %v3353_v15 = vmin.f32 %v3321_v28, 6.0  ;;  %v3052_v30 = vadd.f32 %v3020_v14, %v2950_v56  ;;  %v2546_v29 = vadd.f32 %v2514_v50, %v2413_v51  ;;  %v3187_v0 = vld [vmem:[#allocation2 + $0x18a] sm:$0xff] }
 0x1f2   : > { %v2547_v20 = vadd.f32 %v2515_v16, %v2414_v19  ;;  %v2717_v62 = vmul.f32 %v5442_v38, %v5520_v1  ;;  %v2718_v17 = vmul.f32 %v5442_v38, %v5510_v41  ;;  %v2818_v52 = vmul.f32 %v5451_v31, %v5528_v39 }
 0x1f3   : > { %v3152_v45 = vadd.f32 %v3120_v22, %v3051_v32  ;;  %v3372_v26 = vpack.c.bf16 %v3353_v15, %v3352_v33  ;;  %v3153_v5 = vadd.f32 %v3121_v46, %v3052_v30  ;;  %v2647_v34 = vadd.f32 %v2615_v8, %v2546_v29 }
 0x1f4   : > { %v2648_v43 = vadd.f32 %v2616_v60, %v2547_v20  ;;  %v2819_v21 = vmul.f32 %v5451_v31, %v5514_v10  ;;  %v2919_v48 = vmul.f32 %v5464_v23, %v3184_v35  ;;  %v2920_v7 = vmul.f32 %v5464_v23, %v5522_v4 }
 0x1f5   : > { %v3253_v54 = vadd.f32 %v3221_v25, %v3152_v45  ;;  %4061 = vmatprep.mubr.bf16.mxu1 %v3372_v26  ;;  %v3254_v57 = vadd.f32 %v3222_v49, %v3153_v5  ;;  %v2749_v63 = vadd.f32 %v2717_v62, %v2647_v34  ;;  %v3021_v18 = vmul.f32 %v5044_v13, %v2984_v37  ;;  %v4127_v5 = vld [vmem:[%s5759_s4 + $0x6] ss:$0 sm:$0xff] }
 0x1f6   : > { %v2750_v55 = vadd.f32 %v2718_v17, %v2648_v43  ;;  %v3022_v2 = vmul.f32 %v5044_v13, %v2985_v42  ;;  %v3122_v11 = vmul.f32 %v5053_v53, %v3085_v47  ;;  %v3123_v22 = vmul.f32 %v5053_v53, %v3086_v44  ;;  %v3088_v34 = vld [vmem:[#allocation2 + $0x1a1] sm:$0xff] }
 0x1f7   : > { %v3290_v14 = vadd.f32 %v5093_v58, %v3253_v54  ;;  %v3291_v46 = vadd.f32 %v5093_v58, %v3254_v57  ;;  %v2850_v36 = vadd.f32 %v2818_v52, %v2749_v63  ;;  %v3223_v25 = vmul.f32 %v5062_v12, %v3186_v27  ;;  %v3087_v52 = vld [vmem:[#allocation2 + $0x199] sm:$0xff] }
 0x1f8   : > { %v2851_v3 = vadd.f32 %v2819_v21, %v2750_v55  ;;  %v3224_v24 = vmul.f32 %v5062_v12, %v3187_v0  ;;  %v2415_v59 = vmul.f32 %v5415_v9, %v5520_v1  ;;  %v2416_v51 = vmul.f32 %v5415_v9, %v5510_v41 }
 0x1f9   : > { %v3322_v49 = vmax.f32 %v3290_v14, 0.0  ;;  %v3323_v13 = vmax.f32 %v3291_v46, 0.0  ;;  %v2951_v19 = vadd.f32 %v2919_v48, %v2850_v36  ;;  %v2516_v53 = vmul.f32 %v5424_v40, %v5528_v39  ;;  %v3189_v48 = vld [vmem:[#allocation2 + $0x1a2] sm:$0xff]  ;;  %v4130_v36 = vld [vmem:[%s5758_s3 + $0x1] ss:$0 sm:$0xff] }
 0x1fa   : > { %v2952_v28 = vadd.f32 %v2920_v7, %v2851_v3  ;;  %v2517_v50 = vmul.f32 %v5424_v40, %v5514_v10  ;;  %v2617_v16 = vmul.f32 %v5433_v6, %v3184_v35  ;;  %v2618_v12 = vmul.f32 %v5433_v6, %v5522_v4 }
 0x1fb   : > { %v3354_v56 = vmin.f32 %v3322_v49, 6.0  ;;  %v3355_v33 = vmin.f32 %v3323_v13, 6.0  ;;  %v3053_v1 = vadd.f32 %v3021_v18, %v2951_v19  ;;  %v2548_v8 = vadd.f32 %v2516_v53, %v2415_v59  ;;  %v5611_v19 = vld [vmem:[%s5761_s6] ss:$0 sm:$0xff]  ;;  %v3610_v53 = vld [vmem:[%s5606_s18 + $0x10] sm:$0xff] }
 0x1fc   : > { %v3054_v32 = vadd.f32 %v3022_v2, %v2952_v28  ;;  %v2549_v9 = vadd.f32 %v2517_v50, %v2416_v51  ;;  %v2719_v41 = vmul.f32 %v5442_v38, %v2984_v37  ;;  %v2720_v60 = vmul.f32 %v5442_v38, %v2985_v42  ;;  %v3188_v42 = vld [vmem:[#allocation2 + $0x19a] sm:$0xff] }
 0x1fd   : > { %v2820_v39 = vmul.f32 %v5451_v31, %v3085_v47  ;;  %v3373_v15 = vpack.c.bf16 %v3355_v33, %v3354_v56  ;;  %v3154_v30 = vadd.f32 %v3122_v11, %v3053_v1  ;;  %v2649_v40 = vadd.f32 %v2617_v16, %v2548_v8  ;;  %v3608_v16 = vld [vmem:[%s5606_s18] sm:$0xff]  ;;  %v3611_v1 = vld [vmem:[%s5606_s18 + $0x18] sm:$0xff] }
 0x1fe   : > { %v3155_v29 = vadd.f32 %v3123_v22, %v3054_v32  ;;  %v2650_v10 = vadd.f32 %v2618_v12, %v2549_v9  ;;  %v2821_v35 = vmul.f32 %v5451_v31, %v3086_v44  ;;  %v2921_v45 = vmul.f32 %v5464_v23, %v3186_v27 }
 0x1ff   : > { %4062 = vmatmul.mubr.bf16.gmra.mrb[48].mxu1 %v3373_v15  ;;  %v3255_v6 = vadd.f32 %v3223_v25, %v3154_v30  ;;  %v2751_v20 = vadd.f32 %v2719_v41, %v2649_v40  ;;  %v2922_v17 = vmul.f32 %v5464_v23, %v3187_v0  ;;  %v3023_v31 = vmul.f32 %v4127_v5, %v5110_v61  ;;  %v4128_v23 = vld [vmem:[%s5759_s4 + $0x7] ss:$0 sm:$0xff]  ;;  %v4129_v61 = vld [vmem:[%s5759_s4 + $0x8] ss:$0 sm:$0xff]  ;;  %v3614_v40 = vld [vmem:[%s5606_s18 + $0x30] sm:$0xff] }
 0x200   : > { %v3256_v4 = vadd.f32 %v3224_v24, %v3155_v29  ;;  %v2752_v62 = vadd.f32 %v2720_v60, %v2650_v10  ;;  %v3124_v21 = vmul.f32 %v4128_v23, %v3087_v52  ;;  %v3125_v7 = vmul.f32 %v4128_v23, %v3088_v34  ;;  %v3609_v41 = vld [vmem:[%s5606_s18 + $0x8] sm:$0xff] }
 0x201   : > { %v3292_v38 = vadd.f32 %v5093_v58, %v3255_v6  ;;  %v2852_v26 = vadd.f32 %v2820_v39, %v2751_v20  ;;  %v3225_v55 = vmul.f32 %v4129_v61, %v3188_v42  ;;  %v3226_v0 = vmul.f32 %v4129_v61, %v3189_v48  ;;  %v3612_v6 = vld [vmem:[%s5606_s18 + $0x20] sm:$0xff] }
 0x202   : > { %v3293_v37 = vadd.f32 %v5093_v58, %v3256_v4  ;;  %v2853_v43 = vadd.f32 %v2821_v35, %v2752_v62 }
 0x203   : > { %v3324_v47 = vmax.f32 %v3292_v38, 0.0  ;;  %v2953_v54 = vadd.f32 %v2921_v45, %v2852_v26  ;;  %v3615_v45 = vld [vmem:[%s5606_s18 + $0x38] sm:$0xff]  ;;  %v3613_v38 = vld [vmem:[%s5606_s18 + $0x28] sm:$0xff] }
 0x204   : > { %v3325_v44 = vmax.f32 %v3293_v37, 0.0  ;;  %v2954_v58 = vadd.f32 %v2922_v17, %v2853_v43  ;;  %v3618_v43 = vld [vmem:[%s5606_s18 + $0x50] sm:$0xff] }
 0x205   : > { %v3356_v27 = vmin.f32 %v3324_v47, 6.0  ;;  %v3055_v63 = vadd.f32 %v3023_v31, %v2953_v54 }
 0x206   : > { %v3357_v57 = vmin.f32 %v3325_v44, 6.0  ;;  %v3056_v18 = vadd.f32 %v3023_v31, %v2954_v58  ;;  %v3616_v44 = vld [vmem:[%s5606_s18 + $0x40] sm:$0xff] }
 0x207   : > { %v3156_v2 = vadd.f32 %v3124_v21, %v3055_v63  ;;  %v3619_v21 = vld [vmem:[%s5606_s18 + $0x58] sm:$0xff] }
 0x208   : > { %v3374_v14 = vpack.c.bf16 %v3357_v57, %v3356_v27  ;;  %v3157_v11 = vadd.f32 %v3125_v7, %v3056_v18  ;;  %v3617_v27 = vld [vmem:[%s5606_s18 + $0x48] sm:$0xff] }
 0x209   : > { %v3257_v22 = vadd.f32 %v3225_v55, %v3156_v2 }
 0x20a   : > { %4065 = vmatprep.mubr.bf16.mxu1 %v3374_v14  ;;  %v3258_v46 = vadd.f32 %v3226_v0, %v3157_v11  ;;  %v3622_v0 = vld [vmem:[%s5606_s18 + $0x70] sm:$0xff]  ;;  %v3620_v11 = vld [vmem:[%s5606_s18 + $0x60] sm:$0xff] }
 0x20b   : > { %v3294_v3 = vadd.f32 %v4130_v36, %v3257_v22 }
 0x20c   : > { %v3295_v25 = vadd.f32 %v4130_v36, %v3258_v46  ;;  %v3623_v36 = vld [vmem:[%s5606_s18 + $0x78] sm:$0xff] }
 0x20d   : > { %v3326_v49 = vmax.f32 %v3294_v3, 0.0 }
 0x20e   : > { %v3327_v24 = vmax.f32 %v3295_v25, 0.0 }
 0x20f   : > { %v3358_v59 = vmin.f32 %v3326_v49, 6.0 }
 0x210   : > { %v3359_v51 = vmin.f32 %v3327_v24, 6.0  ;;  %v3621_v24 = vld [vmem:[%s5606_s18 + $0x68] sm:$0xff] }
 0x212   : > { %v3375_v13 = vpack.c.bf16 %v3359_v51, %v3358_v59 }
 0x214   : > { %4066 = vmatmul.mubr.bf16.gmra.mrb[52].mxu1 %v3375_v13 }
 0x21a   : > { %v4039_v28 = vpop.f32.mrb[24].mxu1 }
 0x21b   : > { %v3490_v56 = vadd.f32 %v4039_v28, %v5611_v19  ;;  %v3481_v50 = vpop.f32.mrb[25].mxu1 }
 0x21c   : > { %v3482_v12 = vadd.f32 %v5611_v19, %v3481_v50  ;;  %v4040_v33 = vpop.f32.mrb[26].mxu1 }
 0x21d   : > { %v3642_v32 = vadd.f32 %v3610_v53, %v3490_v56  ;;  %v3493_v8 = vadd.f32 %v4040_v33, %v5611_v19  ;;  %v3484_v9 = vpop.f32.mrb[27].mxu1  ;;  %v3626_v56 = vld [vmem:[%s5606_s18 + $0x90] sm:$0xff] }
 0x21e   : > { %v3640_v60 = vadd.f32 %v3608_v16, %v3482_v12  ;;  %v3485_v39 = vadd.f32 %v5611_v19, %v3484_v9  ;;  %v3624_v12 = vld [vmem:[%s5606_s18 + $0x80] sm:$0xff] }
 0x21f   : > { %3675 = vst.msk [vmem:[%s5619_s22 + $0x10] sm:$0xff] %vm3672_vm2, %v3642_v32  ;;  %v3643_v15 = vadd.f32 %v3611_v1, %v3493_v8  ;;  %v3627_v32 = vld [vmem:[%s5606_s18 + $0x98] sm:$0xff] }
 0x220   : > { %3673 = vst.msk [vmem:[%s5619_s22] sm:$0xff] %vm3672_vm2, %v3640_v60  ;;  %v3641_v30 = vadd.f32 %v3609_v41, %v3485_v39  ;;  %v3625_v60 = vld [vmem:[%s5606_s18 + $0x88] sm:$0xff] }
 0x221   : > { %3676 = vst.msk [vmem:[%s5619_s22 + $0x18] sm:$0xff] %vm3672_vm2, %v3643_v15 }
 0x222   : > { %3674 = vst.msk [vmem:[%s5619_s22 + $0x8] sm:$0xff] %vm3672_vm2, %v3641_v30 }
 0x23f   : > { %v4043_v29 = vpop.f32.mrb[28].mxu1 }
 0x240   : > { %v3506_v10 = vadd.f32 %v4043_v29, %v5611_v19  ;;  %v3497_v35 = vpop.f32.mrb[29].mxu1 }
 0x241   : > { %v3498_v4 = vadd.f32 %v5611_v19, %v3497_v35  ;;  %v4044_v20 = vpop.f32.mrb[30].mxu1 }
 0x242   : > { %v3646_v62 = vadd.f32 %v3614_v40, %v3506_v10  ;;  %v3509_v17 = vadd.f32 %v4044_v20, %v5611_v19  ;;  %v3500_v52 = vpop.f32.mrb[31].mxu1  ;;  %v3630_v10 = vld [vmem:[%s5606_s18 + $0xb0] sm:$0xff] }
 0x243   : > { %v3644_v37 = vadd.f32 %v3612_v6, %v3498_v4  ;;  %v3501_v26 = vadd.f32 %v5611_v19, %v3500_v52  ;;  %v3628_v4 = vld [vmem:[%s5606_s18 + $0xa0] sm:$0xff] }
 0x244   : > { %3679 = vst.msk [vmem:[%s5619_s22 + $0x30] sm:$0xff] %vm3672_vm2, %v3646_v62  ;;  %v3647_v5 = vadd.f32 %v3615_v45, %v3509_v17  ;;  %v3631_v62 = vld [vmem:[%s5606_s18 + $0xb8] sm:$0xff] }
 0x245   : > { %3677 = vst.msk [vmem:[%s5619_s22 + $0x20] sm:$0xff] %vm3672_vm2, %v3644_v37  ;;  %v3645_v31 = vadd.f32 %v3613_v38, %v3501_v26  ;;  %v3629_v37 = vld [vmem:[%s5606_s18 + $0xa8] sm:$0xff] }
 0x246   : > { %3680 = vst.msk [vmem:[%s5619_s22 + $0x38] sm:$0xff] %vm3672_vm2, %v3647_v5 }
 0x247   : > { %3678 = vst.msk [vmem:[%s5619_s22 + $0x28] sm:$0xff] %vm3672_vm2, %v3645_v31 }
 0x275   : > { %v4047_v34 = vpop.f32.mrb[32].mxu1 }
 0x276   : > { %v3522_v42 = vadd.f32 %v4047_v34, %v5611_v19  ;;  %v3513_v47 = vpop.f32.mrb[33].mxu1 }
 0x277   : > { %v3514_v54 = vadd.f32 %v5611_v19, %v3513_v47  ;;  %v4048_v23 = vpop.f32.mrb[34].mxu1 }
 0x278   : > { %v3650_v48 = vadd.f32 %v3618_v43, %v3522_v42  ;;  %v3525_v58 = vadd.f32 %v4048_v23, %v5611_v19  ;;  %v3516_v7 = vpop.f32.mrb[35].mxu1  ;;  %v3634_v42 = vld [vmem:[%s5606_s18 + $0xd0] sm:$0xff] }
 0x279   : > { %v3648_v57 = vadd.f32 %v3616_v44, %v3514_v54  ;;  %v3517_v63 = vadd.f32 %v5611_v19, %v3516_v7  ;;  %v3632_v54 = vld [vmem:[%s5606_s18 + $0xc0] sm:$0xff] }
 0x27a   : > { %3683 = vst.msk [vmem:[%s5619_s22 + $0x50] sm:$0xff] %vm3672_vm2, %v3650_v48  ;;  %v3651_v61 = vadd.f32 %v3619_v21, %v3525_v58  ;;  %v3635_v48 = vld [vmem:[%s5606_s18 + $0xd8] sm:$0xff] }
 0x27b   : > { %3681 = vst.msk [vmem:[%s5619_s22 + $0x40] sm:$0xff] %vm3672_vm2, %v3648_v57  ;;  %v3649_v55 = vadd.f32 %v3617_v27, %v3517_v63  ;;  %v3633_v57 = vld [vmem:[%s5606_s18 + $0xc8] sm:$0xff] }
 0x27c   : > { %3684 = vst.msk [vmem:[%s5619_s22 + $0x58] sm:$0xff] %vm3672_vm2, %v3651_v61 }
 0x27d   : > { %3682 = vst.msk [vmem:[%s5619_s22 + $0x48] sm:$0xff] %vm3672_vm2, %v3649_v55 }
 0x294   : > { %v4051_v18 = vpop.f32.mrb[36].mxu1 }
 0x295   : > { %v3538_v14 = vadd.f32 %v4051_v18, %v5611_v19  ;;  %v3529_v2 = vpop.f32.mrb[37].mxu1 }
 0x296   : > { %v3530_v22 = vadd.f32 %v5611_v19, %v3529_v2  ;;  %v4052_v46 = vpop.f32.mrb[38].mxu1 }
 0x297   : > { %v3654_v3 = vadd.f32 %v3622_v0, %v3538_v14  ;;  %v3541_v25 = vadd.f32 %v4052_v46, %v5611_v19  ;;  %v3532_v49 = vpop.f32.mrb[39].mxu1  ;;  %v3638_v14 = vld [vmem:[%s5606_s18 + $0xf0] sm:$0xff] }
 0x298   : > { %v3652_v59 = vadd.f32 %v3620_v11, %v3530_v22  ;;  %v3533_v51 = vadd.f32 %v5611_v19, %v3532_v49  ;;  %v3636_v22 = vld [vmem:[%s5606_s18 + $0xe0] sm:$0xff] }
 0x299   : > { %3687 = vst.msk [vmem:[%s5619_s22 + $0x70] sm:$0xff] %vm3672_vm2, %v3654_v3  ;;  %v3655_v13 = vadd.f32 %v3623_v36, %v3541_v25  ;;  %v3639_v3 = vld [vmem:[%s5606_s18 + $0xf8] sm:$0xff] }
 0x29a   : > { %3685 = vst.msk [vmem:[%s5619_s22 + $0x60] sm:$0xff] %vm3672_vm2, %v3652_v59  ;;  %v3653_v28 = vadd.f32 %v3621_v24, %v3533_v51  ;;  %v3637_v59 = vld [vmem:[%s5606_s18 + $0xe8] sm:$0xff] }
 0x29b   : > { %3688 = vst.msk [vmem:[%s5619_s22 + $0x78] sm:$0xff] %vm3672_vm2, %v3655_v13 }
 0x29c   : > { %3686 = vst.msk [vmem:[%s5619_s22 + $0x68] sm:$0xff] %vm3672_vm2, %v3653_v28 }
 0x2a9   : > { %v4055_v53 = vpop.f32.mrb[40].mxu1 }
 0x2aa   : > { %v3554_v50 = vadd.f32 %v4055_v53, %v5611_v19  ;;  %v3545_v16 = vpop.f32.mrb[41].mxu1 }
 0x2ab   : > { %v3546_v33 = vadd.f32 %v5611_v19, %v3545_v16  ;;  %v4056_v1 = vpop.f32.mrb[42].mxu1 }
 0x2ac   : > { %v3658_v8 = vadd.f32 %v3626_v56, %v3554_v50  ;;  %v3557_v9 = vadd.f32 %v4056_v1, %v5611_v19  ;;  %v3548_v41 = vpop.f32.mrb[43].mxu1 }
 0x2ad   : > { %v3656_v39 = vadd.f32 %v3624_v12, %v3546_v33  ;;  %v3549_v15 = vadd.f32 %v5611_v19, %v3548_v41 }
 0x2ae   : > { %3691 = vst.msk [vmem:[%s5619_s22 + $0x90] sm:$0xff] %vm3672_vm2, %v3658_v8  ;;  %v3659_v30 = vadd.f32 %v3627_v32, %v3557_v9 }
 0x2af   : > { %3689 = vst.msk [vmem:[%s5619_s22 + $0x80] sm:$0xff] %vm3672_vm2, %v3656_v39  ;;  %v3657_v29 = vadd.f32 %v3625_v60, %v3549_v15 }
 0x2b0   : > { %3692 = vst.msk [vmem:[%s5619_s22 + $0x98] sm:$0xff] %vm3672_vm2, %v3659_v30 }
 0x2b1   : > { %3690 = vst.msk [vmem:[%s5619_s22 + $0x88] sm:$0xff] %vm3672_vm2, %v3657_v29 }
 0x2be   : > { %v4059_v40 = vpop.f32.mrb[44].mxu1 }
 0x2bf   : > { %v3570_v35 = vadd.f32 %v4059_v40, %v5611_v19  ;;  %v3561_v6 = vpop.f32.mrb[45].mxu1 }
 0x2c0   : > { %v3562_v20 = vadd.f32 %v5611_v19, %v3561_v6  ;;  %v4060_v45 = vpop.f32.mrb[46].mxu1 }
 0x2c1   : > { %v3662_v17 = vadd.f32 %v3630_v10, %v3570_v35  ;;  %v3573_v52 = vadd.f32 %v4060_v45, %v5611_v19  ;;  %v3564_v38 = vpop.f32.mrb[47].mxu1 }
 0x2c2   : > { %v3660_v26 = vadd.f32 %v3628_v4, %v3562_v20  ;;  %v3565_v5 = vadd.f32 %v5611_v19, %v3564_v38 }
 0x2c3   : > { %3695 = vst.msk [vmem:[%s5619_s22 + $0xb0] sm:$0xff] %vm3672_vm2, %v3662_v17  ;;  %v3663_v31 = vadd.f32 %v3631_v62, %v3573_v52 }
 0x2c4   : > { %3693 = vst.msk [vmem:[%s5619_s22 + $0xa0] sm:$0xff] %vm3672_vm2, %v3660_v26  ;;  %v3661_v34 = vadd.f32 %v3629_v37, %v3565_v5 }
 0x2c5   : > { %3696 = vst.msk [vmem:[%s5619_s22 + $0xb8] sm:$0xff] %vm3672_vm2, %v3663_v31 }
 0x2c6   : > { %3694 = vst.msk [vmem:[%s5619_s22 + $0xa8] sm:$0xff] %vm3672_vm2, %v3661_v34 }
 0x2d2   : > { %v4063_v43 = vpop.f32.mrb[48].mxu1 }
 0x2d3   : > { %v3586_v47 = vadd.f32 %v4063_v43, %v5611_v19  ;;  %v3577_v44 = vpop.f32.mrb[49].mxu1 }
 0x2d4   : > { %v3578_v23 = vadd.f32 %v5611_v19, %v3577_v44  ;;  %v4064_v21 = vpop.f32.mrb[50].mxu1 }
 0x2d5   : > { %v3666_v58 = vadd.f32 %v3634_v42, %v3586_v47  ;;  %v3589_v7 = vadd.f32 %v4064_v21, %v5611_v19  ;;  %v3580_v27 = vpop.f32.mrb[51].mxu1 }
 0x2d6   : > { %v3664_v63 = vadd.f32 %v3632_v54, %v3578_v23  ;;  %v3581_v61 = vadd.f32 %v5611_v19, %v3580_v27 }
 0x2d7   : > { %3699 = vst.msk [vmem:[%s5619_s22 + $0xd0] sm:$0xff] %vm3672_vm2, %v3666_v58  ;;  %v3667_v55 = vadd.f32 %v3635_v48, %v3589_v7 }
 0x2d8   : > { %3697 = vst.msk [vmem:[%s5619_s22 + $0xc0] sm:$0xff] %vm3672_vm2, %v3664_v63  ;;  %v3665_v18 = vadd.f32 %v3633_v57, %v3581_v61 }
 0x2d9   : > { %3700 = vst.msk [vmem:[%s5619_s22 + $0xd8] sm:$0xff] %vm3672_vm2, %v3667_v55 }
 0x2da   : > { %3698 = vst.msk [vmem:[%s5619_s22 + $0xc8] sm:$0xff] %vm3672_vm2, %v3665_v18 }
 0x2e7   : > { %v4067_v0 = vpop.f32.mrb[52].mxu1 }
 0x2e8   : > { %v3602_v2 = vadd.f32 %v4067_v0, %v5611_v19  ;;  %v3593_v11 = vpop.f32.mrb[53].mxu1 }
 0x2e9   : > { %v3594_v46 = vadd.f32 %v5611_v19, %v3593_v11  ;;  %v4068_v36 = vpop.f32.mrb[54].mxu1 }
 0x2ea   : > { %v3670_v25 = vadd.f32 %v3638_v14, %v3602_v2  ;;  %v3605_v49 = vadd.f32 %v4068_v36, %v5611_v19  ;;  %v3596_v24 = vpop.f32.mrb[55].mxu1 }
 0x2eb   : > { %v3668_v51 = vadd.f32 %v3636_v22, %v3594_v46  ;;  %v3597_v13 = vadd.f32 %v5611_v19, %v3596_v24 }
 0x2ec   : > { %3703 = vst.msk [vmem:[%s5619_s22 + $0xf0] sm:$0xff] %vm3672_vm2, %v3670_v25  ;;  %v3671_v28 = vadd.f32 %v3639_v3, %v3605_v49 }
 0x2ed   : > { %3701 = vst.msk [vmem:[%s5619_s22 + $0xe0] sm:$0xff] %vm3672_vm2, %v3668_v51  ;;  %v3669_v53 = vadd.f32 %v3637_v59, %v3597_v13 }
 0x2ee   : > { %3704 = vst.msk [vmem:[%s5619_s22 + $0xf8] sm:$0xff] %vm3672_vm2, %v3671_v28 }
 0x2ef   : > { %3702 = vst.msk [vmem:[%s5619_s22 + $0xe8] sm:$0xff] %vm3672_vm2, %v3669_v53 }
 0x2f0 PF: > { %s17_s26 = sadd.s32 1, %s4153_s26   ;;  %s5768_s24 = smov %s4149_s25 }
 0x2f1   : > { %p14_p5 = scmp.ge.s32.totalorder %s17_s26, 4   ;;  %s5769_s25 = smov %s5771_s27 }
 0x2f3   :  { %16 = sbr.rel (!%p14_p5) target bundleno = 2 (0x2), region = 89 }

</bundles_post_ra>
